<compile_context>
chip_gen: v7x
topology: tpu7x:2x2x1
jax: 0.10.0
libtpu: 0.0.40
codegen_flags: <defaults>
</compile_context>

<pallas_src>
import math

import jax
import jax.numpy as jnp
from jax.experimental import pallas as pl
from jax.experimental.pallas import tpu as pltpu  # noqa: F401  (TPU backend assumed)

# ----------------------------- small synthetic config -----------------------
VOCAB = 120
MAX_POS = 32
HIDDEN = 128
SEQ = 16
BATCH = 2
TOKENS = BATCH * SEQ
NUM_HEADS = 2
HEAD_DIM = HIDDEN // NUM_HEADS
INTERMEDIATE = 256
NUM_LAYERS = 2
LN_EPS = 1e-5
NUM_SENTIMENT = 2          # matches num_sentiment_classes default
PAD_IDX = 1                # RoBERTa padding idx (positions start at PAD_IDX + 1)

HEAD_PAD = 128             # lane-dense classifier output slab width
# column slots of each task head inside the packed (HIDDEN, HEAD_PAD) head matrix
TASK_SLOTS = {"hate": (0, 2), "offensive": (2, 2), "sentiment": (4, NUM_SENTIMENT)}


# ----------------------------- in-kernel helpers ----------------------------
def _ln(x, g, b):
    mu = jnp.mean(x, axis=-1, keepdims=True)
    var = jnp.mean((x - mu) ** 2, axis=-1, keepdims=True)
    return (x - mu) * jax.lax.rsqrt(var + LN_EPS) * g + b


def _gelu(x):
    # TODO(synk): XLM-R uses exact erf GELU; tanh approximation (EUP tanh) used here.
    c = math.sqrt(2.0 / math.pi)
    return 0.5 * x * (1.0 + jnp.tanh(c * (x + 0.044715 * x * x * x)))


# ----------------------------- the single fused kernel ----------------------
def fused_encoder_kernel(emb_ref, mask_ref, sel_ref, eg_ref, eb_ref,
                         wq_ref, bq_ref, wk_ref, bk_ref, wv_ref, bv_ref,
                         wo_ref, bo_ref, ln1g_ref, ln1b_ref,
                         w1_ref, b1_ref, w2_ref, b2_ref, ln2g_ref, ln2b_ref,
                         wh_ref, bh_ref, out_ref):
    addmask = mask_ref[...]                       # (TOKENS, TOKENS) additive mask (f32)
    scale = 1.0 / math.sqrt(HEAD_DIM)

    # Embedding LayerNorm (f32).
    h = _ln(emb_ref[...].astype(jnp.float32), eg_ref[...], eb_ref[...])   # (TOKENS, H)

    for layer in range(NUM_LAYERS):               # static unroll (NUM_LAYERS == 2)
        h_bf = h.astype(jnp.bfloat16)
        attn = jnp.zeros((TOKENS, HIDDEN), jnp.float32)
        for hd in range(NUM_HEADS):               # static unroll (NUM_HEADS == 2)
            idx = layer * NUM_HEADS + hd          # flattened (layer, head) index
            # Projections: bf16 weights, f32 accumulation. Scale hoisted onto Q.
            q = (jnp.dot(h_bf, wq_ref[idx], preferred_element_type=jnp.float32)
                 + bq_ref[idx]) * scale                                    # (TOKENS, HD)
            k = (jnp.dot(h_bf, wk_ref[idx], preferred_element_type=jnp.float32)
                 + bk_ref[idx])
            v = (jnp.dot(h_bf, wv_ref[idx], preferred_element_type=jnp.float32)
                 + bv_ref[idx])

            # Scores over ALL tokens; block-diagonal + padding handled by addmask.
            s = jnp.dot(q, k.T, preferred_element_type=jnp.float32) + addmask
            s = s - jnp.max(s, axis=-1, keepdims=True)
            p = jnp.exp(s)
            p = p * pl.reciprocal(jnp.sum(p, axis=-1, keepdims=True), approx=True)

            ctx = jnp.dot(p, v, preferred_element_type=jnp.float32)       # (TOKENS, HD)
            # Per-head output projection accumulated into the full-width result
            # (no lane-slicing / head concatenation needed).
            attn = attn + jnp.dot(ctx.astype(jnp.bfloat16), wo_ref[idx],
                                  preferred_element_type=jnp.float32)
        attn = attn + bo_ref[layer]
        h1 = _ln(h + attn, ln1g_ref[layer], ln1b_ref[layer])              # post-LN

        ff = jnp.dot(h1.astype(jnp.bfloat16), w1_ref[layer],
                     preferred_element_type=jnp.float32) + b1_ref[layer]
        ff = _gelu(ff)
        ff = jnp.dot(ff.astype(jnp.bfloat16), w2_ref[layer],
                     preferred_element_type=jnp.float32) + b2_ref[layer]
        h = _ln(h1 + ff, ln2g_ref[layer], ln2b_ref[layer])

    # CLS rows (token 0 of each sequence) via a one-hot selection matmul:
    # (BATCH, TOKENS) @ (TOKENS, HIDDEN) on the MXU — no sublane gather.
    cls = jnp.dot(sel_ref[...], h, preferred_element_type=jnp.float32)    # (BATCH, H)
    # TODO(synk): nn.Dropout(0.3) is identity here (eval-mode semantics); training
    # mode would use pltpu.prng_seed / pltpu.prng_random_bits.
    out_ref[...] = (jnp.dot(cls.astype(jnp.bfloat16), wh_ref[...],
                            preferred_element_type=jnp.float32) + bh_ref[...])


# ----------------------------- parameters ------------------------------------
def init_params(key):
    def nrm(k, shape, dtype=jnp.float32):
        return (0.02 * jax.random.normal(k, shape, dtype=jnp.float32)).astype(dtype)

    LH = NUM_LAYERS * NUM_HEADS
    keys = iter(jax.random.split(key, 32))
    p = {
        "word_emb": nrm(next(keys), (VOCAB, HIDDEN)),
        "pos_emb": nrm(next(keys), (MAX_POS, HIDDEN)),
        "type_emb": nrm(next(keys), (1, HIDDEN)),
        "emb_ln_g": jnp.ones((1, HIDDEN), jnp.float32),
        "emb_ln_b": jnp.zeros((1, HIDDEN), jnp.float32),
        # Stacked per-(layer, head) weights, flattened leading dim: bf16 storage.
        "wq": nrm(next(keys), (LH, HIDDEN, HEAD_DIM), jnp.bfloat16),
        "bq": jnp.zeros((LH, 1, HEAD_DIM), jnp.float32),
        "wk": nrm(next(keys), (LH, HIDDEN, HEAD_DIM), jnp.bfloat16),
        "bk": jnp.zeros((LH, 1, HEAD_DIM), jnp.float32),
        "wv": nrm(next(keys), (LH, HIDDEN, HEAD_DIM), jnp.bfloat16),
        "bv": jnp.zeros((LH, 1, HEAD_DIM), jnp.float32),
        "wo": nrm(next(keys), (LH, HEAD_DIM, HIDDEN), jnp.bfloat16),
        "bo": jnp.zeros((NUM_LAYERS, 1, HIDDEN), jnp.float32),
        "ln1_g": jnp.ones((NUM_LAYERS, 1, HIDDEN), jnp.float32),
        "ln1_b": jnp.zeros((NUM_LAYERS, 1, HIDDEN), jnp.float32),
        "w1": nrm(next(keys), (NUM_LAYERS, HIDDEN, INTERMEDIATE), jnp.bfloat16),
        "b1": jnp.zeros((NUM_LAYERS, 1, INTERMEDIATE), jnp.float32),
        "w2": nrm(next(keys), (NUM_LAYERS, INTERMEDIATE, HIDDEN), jnp.bfloat16),
        "b2": jnp.zeros((NUM_LAYERS, 1, HIDDEN), jnp.float32),
        "ln2_g": jnp.ones((NUM_LAYERS, 1, HIDDEN), jnp.float32),
        "ln2_b": jnp.zeros((NUM_LAYERS, 1, HIDDEN), jnp.float32),
    }
    # All three task heads packed into one lane-dense (HIDDEN, 128) slab.
    wh = jnp.zeros((HIDDEN, HEAD_PAD), jnp.float32)
    for _name, (off, n) in TASK_SLOTS.items():
        wh = wh.at[:, off:off + n].set(nrm(next(keys), (HIDDEN, n)))
    p["w_heads"] = wh.astype(jnp.bfloat16)
    p["b_heads"] = jnp.zeros((1, HEAD_PAD), jnp.float32)
    return p


# ----------------------------- wrappers ---------------------------------------
def _additive_attention_mask(attention_mask):
    """(TOKENS, TOKENS) additive mask: -1e9 where key is padding OR cross-batch."""
    key_ok = attention_mask.astype(jnp.float32).reshape(1, TOKENS)     # key is a real token
    batch_id = jnp.repeat(jnp.arange(BATCH, dtype=jnp.int32), SEQ)
    same_batch = (batch_id[:, None] == batch_id[None, :]).astype(jnp.float32)
    allowed = same_batch * key_ok                                      # (TOKENS, TOKENS)
    return (1.0 - allowed) * (-1e9)


def _cls_selection_matrix():
    """(BATCH, TOKENS) one-hot rows picking token 0 of each sequence (rows b*SEQ)."""
    cols = jnp.arange(TOKENS, dtype=jnp.int32)[None, :]
    targets = (jnp.arange(BATCH, dtype=jnp.int32) * SEQ)[:, None]
    return (cols == targets).astype(jnp.float32)


@jax.jit
def multitask_xlmr_encode(params, input_ids, attention_mask):
    """Embeddings (plain-JAX gather) + ONE fused Pallas encoder+heads kernel.

    Returns a lane-dense (BATCH, HEAD_PAD) logits slab holding all task heads."""
    # TODO(synk): the embedding-table gather (jnp.take) has no clean in-kernel
    # Pallas equivalent at this scale; it stays in plain JAX in front of the kernel.
    pos_ids = (jnp.cumsum(attention_mask, axis=1) * attention_mask).astype(jnp.int32) + PAD_IDX
    emb = (jnp.take(params["word_emb"], input_ids, axis=0)
           + jnp.take(params["pos_emb"], pos_ids, axis=0)
           + params["type_emb"][0][None, None, :])
    emb_flat = emb.reshape(TOKENS, HIDDEN).astype(jnp.float32)
    add_mask = _additive_attention_mask(attention_mask)
    cls_sel = _cls_selection_matrix()

    return pl.pallas_call(
        fused_encoder_kernel,
        out_shape=jax.ShapeDtypeStruct((BATCH, HEAD_PAD), jnp.float32),
    )(emb_flat, add_mask, cls_sel,
      params["emb_ln_g"], params["emb_ln_b"],
      params["wq"], params["bq"], params["wk"], params["bk"],
      params["wv"], params["bv"], params["wo"], params["bo"],
      params["ln1_g"], params["ln1_b"],
      params["w1"], params["b1"], params["w2"], params["b2"],
      params["ln2_g"], params["ln2_b"],
      params["w_heads"], params["b_heads"])


def multitask_xlmr_forward(params, input_ids, attention_mask, task):
    """Mirror of MultiTaskXLMR.forward(input_ids, attention_mask, task)."""
    slab = multitask_xlmr_encode(params, input_ids, attention_mask)
    off, n = TASK_SLOTS[task]
    return slab[:, off:off + n]


# ----------------------------- main -------------------------------------------
if __name__ == "__main__":
    key = jax.random.PRNGKey(0)
    pkey, dkey = jax.random.split(key)
    params = init_params(pkey)

    input_ids = jax.random.randint(dkey, (BATCH, SEQ), 2, VOCAB, dtype=jnp.int32)
    attention_mask = jnp.array(
        [[1] * SEQ,
         [1] * (SEQ // 2) + [0] * (SEQ - SEQ // 2)], dtype=jnp.int32)
    input_ids = jnp.where(attention_mask == 1, input_ids, PAD_IDX)

    # Run the encoder ONCE; all three task heads come out of the same fused kernel.
    slab = multitask_xlmr_encode(params, input_ids, attention_mask)
    outs = {task: slab[:, off:off + n] for task, (off, n) in TASK_SLOTS.items()}
    jax.block_until_ready(outs)
    print("KERNEL_OK")
</pallas_src>

<mosaic_0001>
module attributes {stable_mosaic.version = 11 : i64} {
  func.func @fused_encoder_kernel(%arg0: memref<32x128xf32, #tpu.memory_space<vmem>>, %arg1: memref<32x32xf32, #tpu.memory_space<vmem>>, %arg2: memref<2x32xf32, #tpu.memory_space<vmem>>, %arg3: memref<1x128xf32, #tpu.memory_space<vmem>>, %arg4: memref<1x128xf32, #tpu.memory_space<vmem>>, %arg5: memref<4x128x64xbf16, #tpu.memory_space<vmem>>, %arg6: memref<4x1x64xf32, #tpu.memory_space<vmem>>, %arg7: memref<4x128x64xbf16, #tpu.memory_space<vmem>>, %arg8: memref<4x1x64xf32, #tpu.memory_space<vmem>>, %arg9: memref<4x128x64xbf16, #tpu.memory_space<vmem>>, %arg10: memref<4x1x64xf32, #tpu.memory_space<vmem>>, %arg11: memref<4x64x128xbf16, #tpu.memory_space<vmem>>, %arg12: memref<2x1x128xf32, #tpu.memory_space<vmem>>, %arg13: memref<2x1x128xf32, #tpu.memory_space<vmem>>, %arg14: memref<2x1x128xf32, #tpu.memory_space<vmem>>, %arg15: memref<2x128x256xbf16, #tpu.memory_space<vmem>>, %arg16: memref<2x1x256xf32, #tpu.memory_space<vmem>>, %arg17: memref<2x256x128xbf16, #tpu.memory_space<vmem>>, %arg18: memref<2x1x128xf32, #tpu.memory_space<vmem>>, %arg19: memref<2x1x128xf32, #tpu.memory_space<vmem>>, %arg20: memref<2x1x128xf32, #tpu.memory_space<vmem>>, %arg21: memref<128x128xbf16, #tpu.memory_space<vmem>>, %arg22: memref<1x128xf32, #tpu.memory_space<vmem>>, %arg23: memref<2x128xf32, #tpu.memory_space<vmem>>) attributes {dimension_semantics = [], scalar_prefetch = 0 : i64, scratch_operands = 0 : i64, tpu.core_type = #tpu.core_type<tc>} {
    %c0 = arith.constant 0 : index
    %c0_0 = arith.constant 0 : index
    %0 = vector.load %arg1[%c0, %c0_0] : memref<32x32xf32, #tpu.memory_space<vmem>>, vector<32x32xf32>
    %c0_1 = arith.constant 0 : index
    %c0_2 = arith.constant 0 : index
    %1 = vector.load %arg0[%c0_1, %c0_2] : memref<32x128xf32, #tpu.memory_space<vmem>>, vector<32x128xf32>
    %c0_3 = arith.constant 0 : index
    %c0_4 = arith.constant 0 : index
    %2 = vector.load %arg3[%c0_3, %c0_4] : memref<1x128xf32, #tpu.memory_space<vmem>>, vector<1x128xf32>
    %c0_5 = arith.constant 0 : index
    %c0_6 = arith.constant 0 : index
    %3 = vector.load %arg4[%c0_5, %c0_6] : memref<1x128xf32, #tpu.memory_space<vmem>>, vector<1x128xf32>
    %cst = arith.constant dense<0.000000e+00> : vector<32xf32>
    %4 = vector.multi_reduction <add>, %1, %cst [1] : vector<32x128xf32> to vector<32xf32>
    %5 = vector.shape_cast %4 : vector<32xf32> to vector<32x1xf32>
    %cst_7 = arith.constant 1.280000e+02 : f32
    %6 = vector.broadcast %cst_7 : f32 to vector<32x1xf32>
    %7 = arith.divf %5, %6 : vector<32x1xf32>
    %8 = vector.broadcast %7 : vector<32x1xf32> to vector<32x128xf32>
    %9 = arith.subf %1, %8 : vector<32x128xf32>
    %10 = arith.mulf %9, %9 : vector<32x128xf32>
    %cst_8 = arith.constant dense<0.000000e+00> : vector<32xf32>
    %11 = vector.multi_reduction <add>, %10, %cst_8 [1] : vector<32x128xf32> to vector<32xf32>
    %12 = vector.shape_cast %11 : vector<32xf32> to vector<32x1xf32>
    %cst_9 = arith.constant 1.280000e+02 : f32
    %13 = vector.broadcast %cst_9 : f32 to vector<32x1xf32>
    %14 = arith.divf %12, %13 : vector<32x1xf32>
    %15 = vector.broadcast %7 : vector<32x1xf32> to vector<32x128xf32>
    %16 = arith.subf %1, %15 : vector<32x128xf32>
    %cst_10 = arith.constant 9.99999974E-6 : f32
    %17 = vector.broadcast %cst_10 : f32 to vector<32x1xf32>
    %18 = arith.addf %14, %17 : vector<32x1xf32>
    %19 = math.rsqrt %18 : vector<32x1xf32>
    %20 = vector.broadcast %19 : vector<32x1xf32> to vector<32x128xf32>
    %21 = arith.mulf %16, %20 : vector<32x128xf32>
    %22 = vector.broadcast %2 : vector<1x128xf32> to vector<32x128xf32>
    %23 = arith.mulf %21, %22 : vector<32x128xf32>
    %24 = vector.broadcast %3 : vector<1x128xf32> to vector<32x128xf32>
    %25 = arith.addf %23, %24 : vector<32x128xf32>
    %26 = arith.truncf %25 : vector<32x128xf32> to vector<32x128xbf16>
    %cst_11 = arith.constant 0.000000e+00 : f32
    %27 = vector.broadcast %cst_11 : f32 to vector<32x128xf32>
    %c0_12 = arith.constant 0 : index
    %c0_13 = arith.constant 0 : index
    %c0_14 = arith.constant 0 : index
    %28 = vector.load %arg5[%c0_12, %c0_13, %c0_14] : memref<4x128x64xbf16, #tpu.memory_space<vmem>>, vector<1x128x64xbf16>
    %29 = vector.shape_cast %28 : vector<1x128x64xbf16> to vector<128x64xbf16>
    %cst_15 = arith.constant dense<0.000000e+00> : vector<32x64xf32>
    %30 = tpu.matmul %26, %29, %cst_15 {dimension_numbers = #tpu.dot_dimension_numbers<[1], [0], [0], [1], [0, 0, 1, 1], [], []>} : vector<32x128xbf16>, vector<128x64xbf16>, vector<32x64xf32> -> vector<32x64xf32>
    %c0_16 = arith.constant 0 : index
    %c0_17 = arith.constant 0 : index
    %c0_18 = arith.constant 0 : index
    %31 = vector.load %arg6[%c0_16, %c0_17, %c0_18] : memref<4x1x64xf32, #tpu.memory_space<vmem>>, vector<1x1x64xf32>
    %32 = vector.shape_cast %31 : vector<1x1x64xf32> to vector<1x64xf32>
    %33 = vector.broadcast %32 : vector<1x64xf32> to vector<32x64xf32>
    %34 = arith.addf %30, %33 : vector<32x64xf32>
    %cst_19 = arith.constant 1.250000e-01 : f32
    %35 = vector.broadcast %cst_19 : f32 to vector<32x64xf32>
    %36 = arith.mulf %34, %35 : vector<32x64xf32>
    %c0_20 = arith.constant 0 : index
    %c0_21 = arith.constant 0 : index
    %c0_22 = arith.constant 0 : index
    %37 = vector.load %arg7[%c0_20, %c0_21, %c0_22] : memref<4x128x64xbf16, #tpu.memory_space<vmem>>, vector<1x128x64xbf16>
    %38 = vector.shape_cast %37 : vector<1x128x64xbf16> to vector<128x64xbf16>
    %cst_23 = arith.constant dense<0.000000e+00> : vector<32x64xf32>
    %39 = tpu.matmul %26, %38, %cst_23 {dimension_numbers = #tpu.dot_dimension_numbers<[1], [0], [0], [1], [0, 0, 1, 1], [], []>} : vector<32x128xbf16>, vector<128x64xbf16>, vector<32x64xf32> -> vector<32x64xf32>
    %c0_24 = arith.constant 0 : index
    %c0_25 = arith.constant 0 : index
    %c0_26 = arith.constant 0 : index
    %40 = vector.load %arg8[%c0_24, %c0_25, %c0_26] : memref<4x1x64xf32, #tpu.memory_space<vmem>>, vector<1x1x64xf32>
    %41 = vector.shape_cast %40 : vector<1x1x64xf32> to vector<1x64xf32>
    %42 = vector.broadcast %41 : vector<1x64xf32> to vector<32x64xf32>
    %43 = arith.addf %39, %42 : vector<32x64xf32>
    %c0_27 = arith.constant 0 : index
    %c0_28 = arith.constant 0 : index
    %c0_29 = arith.constant 0 : index
    %44 = vector.load %arg9[%c0_27, %c0_28, %c0_29] : memref<4x128x64xbf16, #tpu.memory_space<vmem>>, vector<1x128x64xbf16>
    %45 = vector.shape_cast %44 : vector<1x128x64xbf16> to vector<128x64xbf16>
    %cst_30 = arith.constant dense<0.000000e+00> : vector<32x64xf32>
    %46 = tpu.matmul %26, %45, %cst_30 {dimension_numbers = #tpu.dot_dimension_numbers<[1], [0], [0], [1], [0, 0, 1, 1], [], []>} : vector<32x128xbf16>, vector<128x64xbf16>, vector<32x64xf32> -> vector<32x64xf32>
    %c0_31 = arith.constant 0 : index
    %c0_32 = arith.constant 0 : index
    %c0_33 = arith.constant 0 : index
    %47 = vector.load %arg10[%c0_31, %c0_32, %c0_33] : memref<4x1x64xf32, #tpu.memory_space<vmem>>, vector<1x1x64xf32>
    %48 = vector.shape_cast %47 : vector<1x1x64xf32> to vector<1x64xf32>
    %49 = vector.broadcast %48 : vector<1x64xf32> to vector<32x64xf32>
    %50 = arith.addf %46, %49 : vector<32x64xf32>
    %51 = tpu.transpose %43, [1, 0] : vector<32x64xf32> -> vector<64x32xf32>
    %cst_34 = arith.constant dense<0.000000e+00> : vector<32x32xf32>
    %52 = tpu.matmul %36, %51, %cst_34 {dimension_numbers = #tpu.dot_dimension_numbers<[1], [0], [0], [1], [0, 0, 1, 1], [], []>} : vector<32x64xf32>, vector<64x32xf32>, vector<32x32xf32> -> vector<32x32xf32>
    %53 = arith.addf %52, %0 : vector<32x32xf32>
    %cst_35 = arith.constant dense<0xFF800000> : vector<32xf32>
    %54 = vector.multi_reduction <maximumf>, %53, %cst_35 [1] : vector<32x32xf32> to vector<32xf32>
    %55 = vector.shape_cast %54 : vector<32xf32> to vector<32x1xf32>
    %56 = vector.broadcast %55 : vector<32x1xf32> to vector<32x32xf32>
    %57 = arith.subf %53, %56 : vector<32x32xf32>
    %58 = math.exp %57 : vector<32x32xf32>
    %cst_36 = arith.constant dense<0.000000e+00> : vector<32xf32>
    %59 = vector.multi_reduction <add>, %58, %cst_36 [1] : vector<32x32xf32> to vector<32xf32>
    %60 = vector.shape_cast %59 : vector<32xf32> to vector<32x1xf32>
    %61 = tpu.reciprocal %60 {approx = true} : vector<32x1xf32> -> vector<32x1xf32>
    %62 = vector.broadcast %61 : vector<32x1xf32> to vector<32x32xf32>
    %63 = arith.mulf %58, %62 : vector<32x32xf32>
    %cst_37 = arith.constant dense<0.000000e+00> : vector<32x64xf32>
    %64 = tpu.matmul %63, %50, %cst_37 {dimension_numbers = #tpu.dot_dimension_numbers<[1], [0], [0], [1], [0, 0, 1, 1], [], []>} : vector<32x32xf32>, vector<32x64xf32>, vector<32x64xf32> -> vector<32x64xf32>
    %65 = arith.truncf %64 : vector<32x64xf32> to vector<32x64xbf16>
    %c0_38 = arith.constant 0 : index
    %c0_39 = arith.constant 0 : index
    %c0_40 = arith.constant 0 : index
    %66 = vector.load %arg11[%c0_38, %c0_39, %c0_40] : memref<4x64x128xbf16, #tpu.memory_space<vmem>>, vector<1x64x128xbf16>
    %67 = vector.shape_cast %66 : vector<1x64x128xbf16> to vector<64x128xbf16>
    %cst_41 = arith.constant dense<0.000000e+00> : vector<32x128xf32>
    %68 = tpu.matmul %65, %67, %cst_41 {dimension_numbers = #tpu.dot_dimension_numbers<[1], [0], [0], [1], [0, 0, 1, 1], [], []>} : vector<32x64xbf16>, vector<64x128xbf16>, vector<32x128xf32> -> vector<32x128xf32>
    %69 = arith.addf %27, %68 : vector<32x128xf32>
    %c1 = arith.constant 1 : index
    %c0_42 = arith.constant 0 : index
    %c0_43 = arith.constant 0 : index
    %70 = vector.load %arg5[%c1, %c0_42, %c0_43] : memref<4x128x64xbf16, #tpu.memory_space<vmem>>, vector<1x128x64xbf16>
    %71 = vector.shape_cast %70 : vector<1x128x64xbf16> to vector<128x64xbf16>
    %cst_44 = arith.constant dense<0.000000e+00> : vector<32x64xf32>
    %72 = tpu.matmul %26, %71, %cst_44 {dimension_numbers = #tpu.dot_dimension_numbers<[1], [0], [0], [1], [0, 0, 1, 1], [], []>} : vector<32x128xbf16>, vector<128x64xbf16>, vector<32x64xf32> -> vector<32x64xf32>
    %c1_45 = arith.constant 1 : index
    %c0_46 = arith.constant 0 : index
    %c0_47 = arith.constant 0 : index
    %73 = vector.load %arg6[%c1_45, %c0_46, %c0_47] : memref<4x1x64xf32, #tpu.memory_space<vmem>>, vector<1x1x64xf32>
    %74 = vector.shape_cast %73 : vector<1x1x64xf32> to vector<1x64xf32>
    %75 = vector.broadcast %74 : vector<1x64xf32> to vector<32x64xf32>
    %76 = arith.addf %72, %75 : vector<32x64xf32>
    %cst_48 = arith.constant 1.250000e-01 : f32
    %77 = vector.broadcast %cst_48 : f32 to vector<32x64xf32>
    %78 = arith.mulf %76, %77 : vector<32x64xf32>
    %c1_49 = arith.constant 1 : index
    %c0_50 = arith.constant 0 : index
    %c0_51 = arith.constant 0 : index
    %79 = vector.load %arg7[%c1_49, %c0_50, %c0_51] : memref<4x128x64xbf16, #tpu.memory_space<vmem>>, vector<1x128x64xbf16>
    %80 = vector.shape_cast %79 : vector<1x128x64xbf16> to vector<128x64xbf16>
    %cst_52 = arith.constant dense<0.000000e+00> : vector<32x64xf32>
    %81 = tpu.matmul %26, %80, %cst_52 {dimension_numbers = #tpu.dot_dimension_numbers<[1], [0], [0], [1], [0, 0, 1, 1], [], []>} : vector<32x128xbf16>, vector<128x64xbf16>, vector<32x64xf32> -> vector<32x64xf32>
    %c1_53 = arith.constant 1 : index
    %c0_54 = arith.constant 0 : index
    %c0_55 = arith.constant 0 : index
    %82 = vector.load %arg8[%c1_53, %c0_54, %c0_55] : memref<4x1x64xf32, #tpu.memory_space<vmem>>, vector<1x1x64xf32>
    %83 = vector.shape_cast %82 : vector<1x1x64xf32> to vector<1x64xf32>
    %84 = vector.broadcast %83 : vector<1x64xf32> to vector<32x64xf32>
    %85 = arith.addf %81, %84 : vector<32x64xf32>
    %c1_56 = arith.constant 1 : index
    %c0_57 = arith.constant 0 : index
    %c0_58 = arith.constant 0 : index
    %86 = vector.load %arg9[%c1_56, %c0_57, %c0_58] : memref<4x128x64xbf16, #tpu.memory_space<vmem>>, vector<1x128x64xbf16>
    %87 = vector.shape_cast %86 : vector<1x128x64xbf16> to vector<128x64xbf16>
    %cst_59 = arith.constant dense<0.000000e+00> : vector<32x64xf32>
    %88 = tpu.matmul %26, %87, %cst_59 {dimension_numbers = #tpu.dot_dimension_numbers<[1], [0], [0], [1], [0, 0, 1, 1], [], []>} : vector<32x128xbf16>, vector<128x64xbf16>, vector<32x64xf32> -> vector<32x64xf32>
    %c1_60 = arith.constant 1 : index
    %c0_61 = arith.constant 0 : index
    %c0_62 = arith.constant 0 : index
    %89 = vector.load %arg10[%c1_60, %c0_61, %c0_62] : memref<4x1x64xf32, #tpu.memory_space<vmem>>, vector<1x1x64xf32>
    %90 = vector.shape_cast %89 : vector<1x1x64xf32> to vector<1x64xf32>
    %91 = vector.broadcast %90 : vector<1x64xf32> to vector<32x64xf32>
    %92 = arith.addf %88, %91 : vector<32x64xf32>
    %93 = tpu.transpose %85, [1, 0] : vector<32x64xf32> -> vector<64x32xf32>
    %cst_63 = arith.constant dense<0.000000e+00> : vector<32x32xf32>
    %94 = tpu.matmul %78, %93, %cst_63 {dimension_numbers = #tpu.dot_dimension_numbers<[1], [0], [0], [1], [0, 0, 1, 1], [], []>} : vector<32x64xf32>, vector<64x32xf32>, vector<32x32xf32> -> vector<32x32xf32>
    %95 = arith.addf %94, %0 : vector<32x32xf32>
    %cst_64 = arith.constant dense<0xFF800000> : vector<32xf32>
    %96 = vector.multi_reduction <maximumf>, %95, %cst_64 [1] : vector<32x32xf32> to vector<32xf32>
    %97 = vector.shape_cast %96 : vector<32xf32> to vector<32x1xf32>
    %98 = vector.broadcast %97 : vector<32x1xf32> to vector<32x32xf32>
    %99 = arith.subf %95, %98 : vector<32x32xf32>
    %100 = math.exp %99 : vector<32x32xf32>
    %cst_65 = arith.constant dense<0.000000e+00> : vector<32xf32>
    %101 = vector.multi_reduction <add>, %100, %cst_65 [1] : vector<32x32xf32> to vector<32xf32>
    %102 = vector.shape_cast %101 : vector<32xf32> to vector<32x1xf32>
    %103 = tpu.reciprocal %102 {approx = true} : vector<32x1xf32> -> vector<32x1xf32>
    %104 = vector.broadcast %103 : vector<32x1xf32> to vector<32x32xf32>
    %105 = arith.mulf %100, %104 : vector<32x32xf32>
    %cst_66 = arith.constant dense<0.000000e+00> : vector<32x64xf32>
    %106 = tpu.matmul %105, %92, %cst_66 {dimension_numbers = #tpu.dot_dimension_numbers<[1], [0], [0], [1], [0, 0, 1, 1], [], []>} : vector<32x32xf32>, vector<32x64xf32>, vector<32x64xf32> -> vector<32x64xf32>
    %107 = arith.truncf %106 : vector<32x64xf32> to vector<32x64xbf16>
    %c1_67 = arith.constant 1 : index
    %c0_68 = arith.constant 0 : index
    %c0_69 = arith.constant 0 : index
    %108 = vector.load %arg11[%c1_67, %c0_68, %c0_69] : memref<4x64x128xbf16, #tpu.memory_space<vmem>>, vector<1x64x128xbf16>
    %109 = vector.shape_cast %108 : vector<1x64x128xbf16> to vector<64x128xbf16>
    %cst_70 = arith.constant dense<0.000000e+00> : vector<32x128xf32>
    %110 = tpu.matmul %107, %109, %cst_70 {dimension_numbers = #tpu.dot_dimension_numbers<[1], [0], [0], [1], [0, 0, 1, 1], [], []>} : vector<32x64xbf16>, vector<64x128xbf16>, vector<32x128xf32> -> vector<32x128xf32>
    %111 = arith.addf %69, %110 : vector<32x128xf32>
    %c0_71 = arith.constant 0 : index
    %c0_72 = arith.constant 0 : index
    %c0_73 = arith.constant 0 : index
    %112 = vector.load %arg12[%c0_71, %c0_72, %c0_73] : memref<2x1x128xf32, #tpu.memory_space<vmem>>, vector<1x1x128xf32>
    %113 = vector.shape_cast %112 : vector<1x1x128xf32> to vector<1x128xf32>
    %114 = vector.broadcast %113 : vector<1x128xf32> to vector<32x128xf32>
    %115 = arith.addf %111, %114 : vector<32x128xf32>
    %116 = arith.addf %25, %115 : vector<32x128xf32>
    %c0_74 = arith.constant 0 : index
    %c0_75 = arith.constant 0 : index
    %c0_76 = arith.constant 0 : index
    %117 = vector.load %arg13[%c0_74, %c0_75, %c0_76] : memref<2x1x128xf32, #tpu.memory_space<vmem>>, vector<1x1x128xf32>
    %118 = vector.shape_cast %117 : vector<1x1x128xf32> to vector<1x128xf32>
    %c0_77 = arith.constant 0 : index
    %c0_78 = arith.constant 0 : index
    %c0_79 = arith.constant 0 : index
    %119 = vector.load %arg14[%c0_77, %c0_78, %c0_79] : memref<2x1x128xf32, #tpu.memory_space<vmem>>, vector<1x1x128xf32>
    %120 = vector.shape_cast %119 : vector<1x1x128xf32> to vector<1x128xf32>
    %cst_80 = arith.constant dense<0.000000e+00> : vector<32xf32>
    %121 = vector.multi_reduction <add>, %116, %cst_80 [1] : vector<32x128xf32> to vector<32xf32>
    %122 = vector.shape_cast %121 : vector<32xf32> to vector<32x1xf32>
    %cst_81 = arith.constant 1.280000e+02 : f32
    %123 = vector.broadcast %cst_81 : f32 to vector<32x1xf32>
    %124 = arith.divf %122, %123 : vector<32x1xf32>
    %125 = vector.broadcast %124 : vector<32x1xf32> to vector<32x128xf32>
    %126 = arith.subf %116, %125 : vector<32x128xf32>
    %127 = arith.mulf %126, %126 : vector<32x128xf32>
    %cst_82 = arith.constant dense<0.000000e+00> : vector<32xf32>
    %128 = vector.multi_reduction <add>, %127, %cst_82 [1] : vector<32x128xf32> to vector<32xf32>
    %129 = vector.shape_cast %128 : vector<32xf32> to vector<32x1xf32>
    %cst_83 = arith.constant 1.280000e+02 : f32
    %130 = vector.broadcast %cst_83 : f32 to vector<32x1xf32>
    %131 = arith.divf %129, %130 : vector<32x1xf32>
    %132 = vector.broadcast %124 : vector<32x1xf32> to vector<32x128xf32>
    %133 = arith.subf %116, %132 : vector<32x128xf32>
    %cst_84 = arith.constant 9.99999974E-6 : f32
    %134 = vector.broadcast %cst_84 : f32 to vector<32x1xf32>
    %135 = arith.addf %131, %134 : vector<32x1xf32>
    %136 = math.rsqrt %135 : vector<32x1xf32>
    %137 = vector.broadcast %136 : vector<32x1xf32> to vector<32x128xf32>
    %138 = arith.mulf %133, %137 : vector<32x128xf32>
    %139 = vector.broadcast %118 : vector<1x128xf32> to vector<32x128xf32>
    %140 = arith.mulf %138, %139 : vector<32x128xf32>
    %141 = vector.broadcast %120 : vector<1x128xf32> to vector<32x128xf32>
    %142 = arith.addf %140, %141 : vector<32x128xf32>
    %143 = arith.truncf %142 : vector<32x128xf32> to vector<32x128xbf16>
    %c0_85 = arith.constant 0 : index
    %c0_86 = arith.constant 0 : index
    %c0_87 = arith.constant 0 : index
    %144 = vector.load %arg15[%c0_85, %c0_86, %c0_87] : memref<2x128x256xbf16, #tpu.memory_space<vmem>>, vector<1x128x256xbf16>
    %145 = vector.shape_cast %144 : vector<1x128x256xbf16> to vector<128x256xbf16>
    %cst_88 = arith.constant dense<0.000000e+00> : vector<32x256xf32>
    %146 = tpu.matmul %143, %145, %cst_88 {dimension_numbers = #tpu.dot_dimension_numbers<[1], [0], [0], [1], [0, 0, 1, 1], [], []>} : vector<32x128xbf16>, vector<128x256xbf16>, vector<32x256xf32> -> vector<32x256xf32>
    %c0_89 = arith.constant 0 : index
    %c0_90 = arith.constant 0 : index
    %c0_91 = arith.constant 0 : index
    %147 = vector.load %arg16[%c0_89, %c0_90, %c0_91] : memref<2x1x256xf32, #tpu.memory_space<vmem>>, vector<1x1x256xf32>
    %148 = vector.shape_cast %147 : vector<1x1x256xf32> to vector<1x256xf32>
    %149 = vector.broadcast %148 : vector<1x256xf32> to vector<32x256xf32>
    %150 = arith.addf %146, %149 : vector<32x256xf32>
    %cst_92 = arith.constant 5.000000e-01 : f32
    %151 = vector.broadcast %cst_92 : f32 to vector<32x256xf32>
    %152 = arith.mulf %151, %150 : vector<32x256xf32>
    %cst_93 = arith.constant 4.471500e-02 : f32
    %153 = vector.broadcast %cst_93 : f32 to vector<32x256xf32>
    %154 = arith.mulf %153, %150 : vector<32x256xf32>
    %155 = arith.mulf %154, %150 : vector<32x256xf32>
    %156 = arith.mulf %155, %150 : vector<32x256xf32>
    %157 = arith.addf %150, %156 : vector<32x256xf32>
    %cst_94 = arith.constant 0.797884583 : f32
    %158 = vector.broadcast %cst_94 : f32 to vector<32x256xf32>
    %159 = arith.mulf %158, %157 : vector<32x256xf32>
    %160 = math.tanh %159 : vector<32x256xf32>
    %cst_95 = arith.constant 1.000000e+00 : f32
    %161 = vector.broadcast %cst_95 : f32 to vector<32x256xf32>
    %162 = arith.addf %161, %160 : vector<32x256xf32>
    %163 = arith.mulf %152, %162 : vector<32x256xf32>
    %164 = arith.truncf %163 : vector<32x256xf32> to vector<32x256xbf16>
    %c0_96 = arith.constant 0 : index
    %c0_97 = arith.constant 0 : index
    %c0_98 = arith.constant 0 : index
    %165 = vector.load %arg17[%c0_96, %c0_97, %c0_98] : memref<2x256x128xbf16, #tpu.memory_space<vmem>>, vector<1x256x128xbf16>
    %166 = vector.shape_cast %165 : vector<1x256x128xbf16> to vector<256x128xbf16>
    %cst_99 = arith.constant dense<0.000000e+00> : vector<32x128xf32>
    %167 = tpu.matmul %164, %166, %cst_99 {dimension_numbers = #tpu.dot_dimension_numbers<[1], [0], [0], [1], [0, 0, 1, 1], [], []>} : vector<32x256xbf16>, vector<256x128xbf16>, vector<32x128xf32> -> vector<32x128xf32>
    %c0_100 = arith.constant 0 : index
    %c0_101 = arith.constant 0 : index
    %c0_102 = arith.constant 0 : index
    %168 = vector.load %arg18[%c0_100, %c0_101, %c0_102] : memref<2x1x128xf32, #tpu.memory_space<vmem>>, vector<1x1x128xf32>
    %169 = vector.shape_cast %168 : vector<1x1x128xf32> to vector<1x128xf32>
    %170 = vector.broadcast %169 : vector<1x128xf32> to vector<32x128xf32>
    %171 = arith.addf %167, %170 : vector<32x128xf32>
    %172 = arith.addf %142, %171 : vector<32x128xf32>
    %c0_103 = arith.constant 0 : index
    %c0_104 = arith.constant 0 : index
    %c0_105 = arith.constant 0 : index
    %173 = vector.load %arg19[%c0_103, %c0_104, %c0_105] : memref<2x1x128xf32, #tpu.memory_space<vmem>>, vector<1x1x128xf32>
    %174 = vector.shape_cast %173 : vector<1x1x128xf32> to vector<1x128xf32>
    %c0_106 = arith.constant 0 : index
    %c0_107 = arith.constant 0 : index
    %c0_108 = arith.constant 0 : index
    %175 = vector.load %arg20[%c0_106, %c0_107, %c0_108] : memref<2x1x128xf32, #tpu.memory_space<vmem>>, vector<1x1x128xf32>
    %176 = vector.shape_cast %175 : vector<1x1x128xf32> to vector<1x128xf32>
    %cst_109 = arith.constant dense<0.000000e+00> : vector<32xf32>
    %177 = vector.multi_reduction <add>, %172, %cst_109 [1] : vector<32x128xf32> to vector<32xf32>
    %178 = vector.shape_cast %177 : vector<32xf32> to vector<32x1xf32>
    %cst_110 = arith.constant 1.280000e+02 : f32
    %179 = vector.broadcast %cst_110 : f32 to vector<32x1xf32>
    %180 = arith.divf %178, %179 : vector<32x1xf32>
    %181 = vector.broadcast %180 : vector<32x1xf32> to vector<32x128xf32>
    %182 = arith.subf %172, %181 : vector<32x128xf32>
    %183 = arith.mulf %182, %182 : vector<32x128xf32>
    %cst_111 = arith.constant dense<0.000000e+00> : vector<32xf32>
    %184 = vector.multi_reduction <add>, %183, %cst_111 [1] : vector<32x128xf32> to vector<32xf32>
    %185 = vector.shape_cast %184 : vector<32xf32> to vector<32x1xf32>
    %cst_112 = arith.constant 1.280000e+02 : f32
    %186 = vector.broadcast %cst_112 : f32 to vector<32x1xf32>
    %187 = arith.divf %185, %186 : vector<32x1xf32>
    %188 = vector.broadcast %180 : vector<32x1xf32> to vector<32x128xf32>
    %189 = arith.subf %172, %188 : vector<32x128xf32>
    %cst_113 = arith.constant 9.99999974E-6 : f32
    %190 = vector.broadcast %cst_113 : f32 to vector<32x1xf32>
    %191 = arith.addf %187, %190 : vector<32x1xf32>
    %192 = math.rsqrt %191 : vector<32x1xf32>
    %193 = vector.broadcast %192 : vector<32x1xf32> to vector<32x128xf32>
    %194 = arith.mulf %189, %193 : vector<32x128xf32>
    %195 = vector.broadcast %174 : vector<1x128xf32> to vector<32x128xf32>
    %196 = arith.mulf %194, %195 : vector<32x128xf32>
    %197 = vector.broadcast %176 : vector<1x128xf32> to vector<32x128xf32>
    %198 = arith.addf %196, %197 : vector<32x128xf32>
    %199 = arith.truncf %198 : vector<32x128xf32> to vector<32x128xbf16>
    %cst_114 = arith.constant 0.000000e+00 : f32
    %200 = vector.broadcast %cst_114 : f32 to vector<32x128xf32>
    %c2 = arith.constant 2 : index
    %c0_115 = arith.constant 0 : index
    %c0_116 = arith.constant 0 : index
    %201 = vector.load %arg5[%c2, %c0_115, %c0_116] : memref<4x128x64xbf16, #tpu.memory_space<vmem>>, vector<1x128x64xbf16>
    %202 = vector.shape_cast %201 : vector<1x128x64xbf16> to vector<128x64xbf16>
    %cst_117 = arith.constant dense<0.000000e+00> : vector<32x64xf32>
    %203 = tpu.matmul %199, %202, %cst_117 {dimension_numbers = #tpu.dot_dimension_numbers<[1], [0], [0], [1], [0, 0, 1, 1], [], []>} : vector<32x128xbf16>, vector<128x64xbf16>, vector<32x64xf32> -> vector<32x64xf32>
    %c2_118 = arith.constant 2 : index
    %c0_119 = arith.constant 0 : index
    %c0_120 = arith.constant 0 : index
    %204 = vector.load %arg6[%c2_118, %c0_119, %c0_120] : memref<4x1x64xf32, #tpu.memory_space<vmem>>, vector<1x1x64xf32>
    %205 = vector.shape_cast %204 : vector<1x1x64xf32> to vector<1x64xf32>
    %206 = vector.broadcast %205 : vector<1x64xf32> to vector<32x64xf32>
    %207 = arith.addf %203, %206 : vector<32x64xf32>
    %cst_121 = arith.constant 1.250000e-01 : f32
    %208 = vector.broadcast %cst_121 : f32 to vector<32x64xf32>
    %209 = arith.mulf %207, %208 : vector<32x64xf32>
    %c2_122 = arith.constant 2 : index
    %c0_123 = arith.constant 0 : index
    %c0_124 = arith.constant 0 : index
    %210 = vector.load %arg7[%c2_122, %c0_123, %c0_124] : memref<4x128x64xbf16, #tpu.memory_space<vmem>>, vector<1x128x64xbf16>
    %211 = vector.shape_cast %210 : vector<1x128x64xbf16> to vector<128x64xbf16>
    %cst_125 = arith.constant dense<0.000000e+00> : vector<32x64xf32>
    %212 = tpu.matmul %199, %211, %cst_125 {dimension_numbers = #tpu.dot_dimension_numbers<[1], [0], [0], [1], [0, 0, 1, 1], [], []>} : vector<32x128xbf16>, vector<128x64xbf16>, vector<32x64xf32> -> vector<32x64xf32>
    %c2_126 = arith.constant 2 : index
    %c0_127 = arith.constant 0 : index
    %c0_128 = arith.constant 0 : index
    %213 = vector.load %arg8[%c2_126, %c0_127, %c0_128] : memref<4x1x64xf32, #tpu.memory_space<vmem>>, vector<1x1x64xf32>
    %214 = vector.shape_cast %213 : vector<1x1x64xf32> to vector<1x64xf32>
    %215 = vector.broadcast %214 : vector<1x64xf32> to vector<32x64xf32>
    %216 = arith.addf %212, %215 : vector<32x64xf32>
    %c2_129 = arith.constant 2 : index
    %c0_130 = arith.constant 0 : index
    %c0_131 = arith.constant 0 : index
    %217 = vector.load %arg9[%c2_129, %c0_130, %c0_131] : memref<4x128x64xbf16, #tpu.memory_space<vmem>>, vector<1x128x64xbf16>
    %218 = vector.shape_cast %217 : vector<1x128x64xbf16> to vector<128x64xbf16>
    %cst_132 = arith.constant dense<0.000000e+00> : vector<32x64xf32>
    %219 = tpu.matmul %199, %218, %cst_132 {dimension_numbers = #tpu.dot_dimension_numbers<[1], [0], [0], [1], [0, 0, 1, 1], [], []>} : vector<32x128xbf16>, vector<128x64xbf16>, vector<32x64xf32> -> vector<32x64xf32>
    %c2_133 = arith.constant 2 : index
    %c0_134 = arith.constant 0 : index
    %c0_135 = arith.constant 0 : index
    %220 = vector.load %arg10[%c2_133, %c0_134, %c0_135] : memref<4x1x64xf32, #tpu.memory_space<vmem>>, vector<1x1x64xf32>
    %221 = vector.shape_cast %220 : vector<1x1x64xf32> to vector<1x64xf32>
    %222 = vector.broadcast %221 : vector<1x64xf32> to vector<32x64xf32>
    %223 = arith.addf %219, %222 : vector<32x64xf32>
    %224 = tpu.transpose %216, [1, 0] : vector<32x64xf32> -> vector<64x32xf32>
    %cst_136 = arith.constant dense<0.000000e+00> : vector<32x32xf32>
    %225 = tpu.matmul %209, %224, %cst_136 {dimension_numbers = #tpu.dot_dimension_numbers<[1], [0], [0], [1], [0, 0, 1, 1], [], []>} : vector<32x64xf32>, vector<64x32xf32>, vector<32x32xf32> -> vector<32x32xf32>
    %226 = arith.addf %225, %0 : vector<32x32xf32>
    %cst_137 = arith.constant dense<0xFF800000> : vector<32xf32>
    %227 = vector.multi_reduction <maximumf>, %226, %cst_137 [1] : vector<32x32xf32> to vector<32xf32>
    %228 = vector.shape_cast %227 : vector<32xf32> to vector<32x1xf32>
    %229 = vector.broadcast %228 : vector<32x1xf32> to vector<32x32xf32>
    %230 = arith.subf %226, %229 : vector<32x32xf32>
    %231 = math.exp %230 : vector<32x32xf32>
    %cst_138 = arith.constant dense<0.000000e+00> : vector<32xf32>
    %232 = vector.multi_reduction <add>, %231, %cst_138 [1] : vector<32x32xf32> to vector<32xf32>
    %233 = vector.shape_cast %232 : vector<32xf32> to vector<32x1xf32>
    %234 = tpu.reciprocal %233 {approx = true} : vector<32x1xf32> -> vector<32x1xf32>
    %235 = vector.broadcast %234 : vector<32x1xf32> to vector<32x32xf32>
    %236 = arith.mulf %231, %235 : vector<32x32xf32>
    %cst_139 = arith.constant dense<0.000000e+00> : vector<32x64xf32>
    %237 = tpu.matmul %236, %223, %cst_139 {dimension_numbers = #tpu.dot_dimension_numbers<[1], [0], [0], [1], [0, 0, 1, 1], [], []>} : vector<32x32xf32>, vector<32x64xf32>, vector<32x64xf32> -> vector<32x64xf32>
    %238 = arith.truncf %237 : vector<32x64xf32> to vector<32x64xbf16>
    %c2_140 = arith.constant 2 : index
    %c0_141 = arith.constant 0 : index
    %c0_142 = arith.constant 0 : index
    %239 = vector.load %arg11[%c2_140, %c0_141, %c0_142] : memref<4x64x128xbf16, #tpu.memory_space<vmem>>, vector<1x64x128xbf16>
    %240 = vector.shape_cast %239 : vector<1x64x128xbf16> to vector<64x128xbf16>
    %cst_143 = arith.constant dense<0.000000e+00> : vector<32x128xf32>
    %241 = tpu.matmul %238, %240, %cst_143 {dimension_numbers = #tpu.dot_dimension_numbers<[1], [0], [0], [1], [0, 0, 1, 1], [], []>} : vector<32x64xbf16>, vector<64x128xbf16>, vector<32x128xf32> -> vector<32x128xf32>
    %242 = arith.addf %200, %241 : vector<32x128xf32>
    %c3 = arith.constant 3 : index
    %c0_144 = arith.constant 0 : index
    %c0_145 = arith.constant 0 : index
    %243 = vector.load %arg5[%c3, %c0_144, %c0_145] : memref<4x128x64xbf16, #tpu.memory_space<vmem>>, vector<1x128x64xbf16>
    %244 = vector.shape_cast %243 : vector<1x128x64xbf16> to vector<128x64xbf16>
    %cst_146 = arith.constant dense<0.000000e+00> : vector<32x64xf32>
    %245 = tpu.matmul %199, %244, %cst_146 {dimension_numbers = #tpu.dot_dimension_numbers<[1], [0], [0], [1], [0, 0, 1, 1], [], []>} : vector<32x128xbf16>, vector<128x64xbf16>, vector<32x64xf32> -> vector<32x64xf32>
    %c3_147 = arith.constant 3 : index
    %c0_148 = arith.constant 0 : index
    %c0_149 = arith.constant 0 : index
    %246 = vector.load %arg6[%c3_147, %c0_148, %c0_149] : memref<4x1x64xf32, #tpu.memory_space<vmem>>, vector<1x1x64xf32>
    %247 = vector.shape_cast %246 : vector<1x1x64xf32> to vector<1x64xf32>
    %248 = vector.broadcast %247 : vector<1x64xf32> to vector<32x64xf32>
    %249 = arith.addf %245, %248 : vector<32x64xf32>
    %cst_150 = arith.constant 1.250000e-01 : f32
    %250 = vector.broadcast %cst_150 : f32 to vector<32x64xf32>
    %251 = arith.mulf %249, %250 : vector<32x64xf32>
    %c3_151 = arith.constant 3 : index
    %c0_152 = arith.constant 0 : index
    %c0_153 = arith.constant 0 : index
    %252 = vector.load %arg7[%c3_151, %c0_152, %c0_153] : memref<4x128x64xbf16, #tpu.memory_space<vmem>>, vector<1x128x64xbf16>
    %253 = vector.shape_cast %252 : vector<1x128x64xbf16> to vector<128x64xbf16>
    %cst_154 = arith.constant dense<0.000000e+00> : vector<32x64xf32>
    %254 = tpu.matmul %199, %253, %cst_154 {dimension_numbers = #tpu.dot_dimension_numbers<[1], [0], [0], [1], [0, 0, 1, 1], [], []>} : vector<32x128xbf16>, vector<128x64xbf16>, vector<32x64xf32> -> vector<32x64xf32>
    %c3_155 = arith.constant 3 : index
    %c0_156 = arith.constant 0 : index
    %c0_157 = arith.constant 0 : index
    %255 = vector.load %arg8[%c3_155, %c0_156, %c0_157] : memref<4x1x64xf32, #tpu.memory_space<vmem>>, vector<1x1x64xf32>
    %256 = vector.shape_cast %255 : vector<1x1x64xf32> to vector<1x64xf32>
    %257 = vector.broadcast %256 : vector<1x64xf32> to vector<32x64xf32>
    %258 = arith.addf %254, %257 : vector<32x64xf32>
    %c3_158 = arith.constant 3 : index
    %c0_159 = arith.constant 0 : index
    %c0_160 = arith.constant 0 : index
    %259 = vector.load %arg9[%c3_158, %c0_159, %c0_160] : memref<4x128x64xbf16, #tpu.memory_space<vmem>>, vector<1x128x64xbf16>
    %260 = vector.shape_cast %259 : vector<1x128x64xbf16> to vector<128x64xbf16>
    %cst_161 = arith.constant dense<0.000000e+00> : vector<32x64xf32>
    %261 = tpu.matmul %199, %260, %cst_161 {dimension_numbers = #tpu.dot_dimension_numbers<[1], [0], [0], [1], [0, 0, 1, 1], [], []>} : vector<32x128xbf16>, vector<128x64xbf16>, vector<32x64xf32> -> vector<32x64xf32>
    %c3_162 = arith.constant 3 : index
    %c0_163 = arith.constant 0 : index
    %c0_164 = arith.constant 0 : index
    %262 = vector.load %arg10[%c3_162, %c0_163, %c0_164] : memref<4x1x64xf32, #tpu.memory_space<vmem>>, vector<1x1x64xf32>
    %263 = vector.shape_cast %262 : vector<1x1x64xf32> to vector<1x64xf32>
    %264 = vector.broadcast %263 : vector<1x64xf32> to vector<32x64xf32>
    %265 = arith.addf %261, %264 : vector<32x64xf32>
    %266 = tpu.transpose %258, [1, 0] : vector<32x64xf32> -> vector<64x32xf32>
    %cst_165 = arith.constant dense<0.000000e+00> : vector<32x32xf32>
    %267 = tpu.matmul %251, %266, %cst_165 {dimension_numbers = #tpu.dot_dimension_numbers<[1], [0], [0], [1], [0, 0, 1, 1], [], []>} : vector<32x64xf32>, vector<64x32xf32>, vector<32x32xf32> -> vector<32x32xf32>
    %268 = arith.addf %267, %0 : vector<32x32xf32>
    %cst_166 = arith.constant dense<0xFF800000> : vector<32xf32>
    %269 = vector.multi_reduction <maximumf>, %268, %cst_166 [1] : vector<32x32xf32> to vector<32xf32>
    %270 = vector.shape_cast %269 : vector<32xf32> to vector<32x1xf32>
    %271 = vector.broadcast %270 : vector<32x1xf32> to vector<32x32xf32>
    %272 = arith.subf %268, %271 : vector<32x32xf32>
    %273 = math.exp %272 : vector<32x32xf32>
    %cst_167 = arith.constant dense<0.000000e+00> : vector<32xf32>
    %274 = vector.multi_reduction <add>, %273, %cst_167 [1] : vector<32x32xf32> to vector<32xf32>
    %275 = vector.shape_cast %274 : vector<32xf32> to vector<32x1xf32>
    %276 = tpu.reciprocal %275 {approx = true} : vector<32x1xf32> -> vector<32x1xf32>
    %277 = vector.broadcast %276 : vector<32x1xf32> to vector<32x32xf32>
    %278 = arith.mulf %273, %277 : vector<32x32xf32>
    %cst_168 = arith.constant dense<0.000000e+00> : vector<32x64xf32>
    %279 = tpu.matmul %278, %265, %cst_168 {dimension_numbers = #tpu.dot_dimension_numbers<[1], [0], [0], [1], [0, 0, 1, 1], [], []>} : vector<32x32xf32>, vector<32x64xf32>, vector<32x64xf32> -> vector<32x64xf32>
    %280 = arith.truncf %279 : vector<32x64xf32> to vector<32x64xbf16>
    %c3_169 = arith.constant 3 : index
    %c0_170 = arith.constant 0 : index
    %c0_171 = arith.constant 0 : index
    %281 = vector.load %arg11[%c3_169, %c0_170, %c0_171] : memref<4x64x128xbf16, #tpu.memory_space<vmem>>, vector<1x64x128xbf16>
    %282 = vector.shape_cast %281 : vector<1x64x128xbf16> to vector<64x128xbf16>
    %cst_172 = arith.constant dense<0.000000e+00> : vector<32x128xf32>
    %283 = tpu.matmul %280, %282, %cst_172 {dimension_numbers = #tpu.dot_dimension_numbers<[1], [0], [0], [1], [0, 0, 1, 1], [], []>} : vector<32x64xbf16>, vector<64x128xbf16>, vector<32x128xf32> -> vector<32x128xf32>
    %284 = arith.addf %242, %283 : vector<32x128xf32>
    %c1_173 = arith.constant 1 : index
    %c0_174 = arith.constant 0 : index
    %c0_175 = arith.constant 0 : index
    %285 = vector.load %arg12[%c1_173, %c0_174, %c0_175] : memref<2x1x128xf32, #tpu.memory_space<vmem>>, vector<1x1x128xf32>
    %286 = vector.shape_cast %285 : vector<1x1x128xf32> to vector<1x128xf32>
    %287 = vector.broadcast %286 : vector<1x128xf32> to vector<32x128xf32>
    %288 = arith.addf %284, %287 : vector<32x128xf32>
    %289 = arith.addf %198, %288 : vector<32x128xf32>
    %c1_176 = arith.constant 1 : index
    %c0_177 = arith.constant 0 : index
    %c0_178 = arith.constant 0 : index
    %290 = vector.load %arg13[%c1_176, %c0_177, %c0_178] : memref<2x1x128xf32, #tpu.memory_space<vmem>>, vector<1x1x128xf32>
    %291 = vector.shape_cast %290 : vector<1x1x128xf32> to vector<1x128xf32>
    %c1_179 = arith.constant 1 : index
    %c0_180 = arith.constant 0 : index
    %c0_181 = arith.constant 0 : index
    %292 = vector.load %arg14[%c1_179, %c0_180, %c0_181] : memref<2x1x128xf32, #tpu.memory_space<vmem>>, vector<1x1x128xf32>
    %293 = vector.shape_cast %292 : vector<1x1x128xf32> to vector<1x128xf32>
    %cst_182 = arith.constant dense<0.000000e+00> : vector<32xf32>
    %294 = vector.multi_reduction <add>, %289, %cst_182 [1] : vector<32x128xf32> to vector<32xf32>
    %295 = vector.shape_cast %294 : vector<32xf32> to vector<32x1xf32>
    %cst_183 = arith.constant 1.280000e+02 : f32
    %296 = vector.broadcast %cst_183 : f32 to vector<32x1xf32>
    %297 = arith.divf %295, %296 : vector<32x1xf32>
    %298 = vector.broadcast %297 : vector<32x1xf32> to vector<32x128xf32>
    %299 = arith.subf %289, %298 : vector<32x128xf32>
    %300 = arith.mulf %299, %299 : vector<32x128xf32>
    %cst_184 = arith.constant dense<0.000000e+00> : vector<32xf32>
    %301 = vector.multi_reduction <add>, %300, %cst_184 [1] : vector<32x128xf32> to vector<32xf32>
    %302 = vector.shape_cast %301 : vector<32xf32> to vector<32x1xf32>
    %cst_185 = arith.constant 1.280000e+02 : f32
    %303 = vector.broadcast %cst_185 : f32 to vector<32x1xf32>
    %304 = arith.divf %302, %303 : vector<32x1xf32>
    %305 = vector.broadcast %297 : vector<32x1xf32> to vector<32x128xf32>
    %306 = arith.subf %289, %305 : vector<32x128xf32>
    %cst_186 = arith.constant 9.99999974E-6 : f32
    %307 = vector.broadcast %cst_186 : f32 to vector<32x1xf32>
    %308 = arith.addf %304, %307 : vector<32x1xf32>
    %309 = math.rsqrt %308 : vector<32x1xf32>
    %310 = vector.broadcast %309 : vector<32x1xf32> to vector<32x128xf32>
    %311 = arith.mulf %306, %310 : vector<32x128xf32>
    %312 = vector.broadcast %291 : vector<1x128xf32> to vector<32x128xf32>
    %313 = arith.mulf %311, %312 : vector<32x128xf32>
    %314 = vector.broadcast %293 : vector<1x128xf32> to vector<32x128xf32>
    %315 = arith.addf %313, %314 : vector<32x128xf32>
    %316 = arith.truncf %315 : vector<32x128xf32> to vector<32x128xbf16>
    %c1_187 = arith.constant 1 : index
    %c0_188 = arith.constant 0 : index
    %c0_189 = arith.constant 0 : index
    %317 = vector.load %arg15[%c1_187, %c0_188, %c0_189] : memref<2x128x256xbf16, #tpu.memory_space<vmem>>, vector<1x128x256xbf16>
    %318 = vector.shape_cast %317 : vector<1x128x256xbf16> to vector<128x256xbf16>
    %cst_190 = arith.constant dense<0.000000e+00> : vector<32x256xf32>
    %319 = tpu.matmul %316, %318, %cst_190 {dimension_numbers = #tpu.dot_dimension_numbers<[1], [0], [0], [1], [0, 0, 1, 1], [], []>} : vector<32x128xbf16>, vector<128x256xbf16>, vector<32x256xf32> -> vector<32x256xf32>
    %c1_191 = arith.constant 1 : index
    %c0_192 = arith.constant 0 : index
    %c0_193 = arith.constant 0 : index
    %320 = vector.load %arg16[%c1_191, %c0_192, %c0_193] : memref<2x1x256xf32, #tpu.memory_space<vmem>>, vector<1x1x256xf32>
    %321 = vector.shape_cast %320 : vector<1x1x256xf32> to vector<1x256xf32>
    %322 = vector.broadcast %321 : vector<1x256xf32> to vector<32x256xf32>
    %323 = arith.addf %319, %322 : vector<32x256xf32>
    %cst_194 = arith.constant 5.000000e-01 : f32
    %324 = vector.broadcast %cst_194 : f32 to vector<32x256xf32>
    %325 = arith.mulf %324, %323 : vector<32x256xf32>
    %cst_195 = arith.constant 4.471500e-02 : f32
    %326 = vector.broadcast %cst_195 : f32 to vector<32x256xf32>
    %327 = arith.mulf %326, %323 : vector<32x256xf32>
    %328 = arith.mulf %327, %323 : vector<32x256xf32>
    %329 = arith.mulf %328, %323 : vector<32x256xf32>
    %330 = arith.addf %323, %329 : vector<32x256xf32>
    %cst_196 = arith.constant 0.797884583 : f32
    %331 = vector.broadcast %cst_196 : f32 to vector<32x256xf32>
    %332 = arith.mulf %331, %330 : vector<32x256xf32>
    %333 = math.tanh %332 : vector<32x256xf32>
    %cst_197 = arith.constant 1.000000e+00 : f32
    %334 = vector.broadcast %cst_197 : f32 to vector<32x256xf32>
    %335 = arith.addf %334, %333 : vector<32x256xf32>
    %336 = arith.mulf %325, %335 : vector<32x256xf32>
    %337 = arith.truncf %336 : vector<32x256xf32> to vector<32x256xbf16>
    %c1_198 = arith.constant 1 : index
    %c0_199 = arith.constant 0 : index
    %c0_200 = arith.constant 0 : index
    %338 = vector.load %arg17[%c1_198, %c0_199, %c0_200] : memref<2x256x128xbf16, #tpu.memory_space<vmem>>, vector<1x256x128xbf16>
    %339 = vector.shape_cast %338 : vector<1x256x128xbf16> to vector<256x128xbf16>
    %cst_201 = arith.constant dense<0.000000e+00> : vector<32x128xf32>
    %340 = tpu.matmul %337, %339, %cst_201 {dimension_numbers = #tpu.dot_dimension_numbers<[1], [0], [0], [1], [0, 0, 1, 1], [], []>} : vector<32x256xbf16>, vector<256x128xbf16>, vector<32x128xf32> -> vector<32x128xf32>
    %c1_202 = arith.constant 1 : index
    %c0_203 = arith.constant 0 : index
    %c0_204 = arith.constant 0 : index
    %341 = vector.load %arg18[%c1_202, %c0_203, %c0_204] : memref<2x1x128xf32, #tpu.memory_space<vmem>>, vector<1x1x128xf32>
    %342 = vector.shape_cast %341 : vector<1x1x128xf32> to vector<1x128xf32>
    %343 = vector.broadcast %342 : vector<1x128xf32> to vector<32x128xf32>
    %344 = arith.addf %340, %343 : vector<32x128xf32>
    %345 = arith.addf %315, %344 : vector<32x128xf32>
    %c1_205 = arith.constant 1 : index
    %c0_206 = arith.constant 0 : index
    %c0_207 = arith.constant 0 : index
    %346 = vector.load %arg19[%c1_205, %c0_206, %c0_207] : memref<2x1x128xf32, #tpu.memory_space<vmem>>, vector<1x1x128xf32>
    %347 = vector.shape_cast %346 : vector<1x1x128xf32> to vector<1x128xf32>
    %c1_208 = arith.constant 1 : index
    %c0_209 = arith.constant 0 : index
    %c0_210 = arith.constant 0 : index
    %348 = vector.load %arg20[%c1_208, %c0_209, %c0_210] : memref<2x1x128xf32, #tpu.memory_space<vmem>>, vector<1x1x128xf32>
    %349 = vector.shape_cast %348 : vector<1x1x128xf32> to vector<1x128xf32>
    %cst_211 = arith.constant dense<0.000000e+00> : vector<32xf32>
    %350 = vector.multi_reduction <add>, %345, %cst_211 [1] : vector<32x128xf32> to vector<32xf32>
    %351 = vector.shape_cast %350 : vector<32xf32> to vector<32x1xf32>
    %cst_212 = arith.constant 1.280000e+02 : f32
    %352 = vector.broadcast %cst_212 : f32 to vector<32x1xf32>
    %353 = arith.divf %351, %352 : vector<32x1xf32>
    %354 = vector.broadcast %353 : vector<32x1xf32> to vector<32x128xf32>
    %355 = arith.subf %345, %354 : vector<32x128xf32>
    %356 = arith.mulf %355, %355 : vector<32x128xf32>
    %cst_213 = arith.constant dense<0.000000e+00> : vector<32xf32>
    %357 = vector.multi_reduction <add>, %356, %cst_213 [1] : vector<32x128xf32> to vector<32xf32>
    %358 = vector.shape_cast %357 : vector<32xf32> to vector<32x1xf32>
    %cst_214 = arith.constant 1.280000e+02 : f32
    %359 = vector.broadcast %cst_214 : f32 to vector<32x1xf32>
    %360 = arith.divf %358, %359 : vector<32x1xf32>
    %361 = vector.broadcast %353 : vector<32x1xf32> to vector<32x128xf32>
    %362 = arith.subf %345, %361 : vector<32x128xf32>
    %cst_215 = arith.constant 9.99999974E-6 : f32
    %363 = vector.broadcast %cst_215 : f32 to vector<32x1xf32>
    %364 = arith.addf %360, %363 : vector<32x1xf32>
    %365 = math.rsqrt %364 : vector<32x1xf32>
    %366 = vector.broadcast %365 : vector<32x1xf32> to vector<32x128xf32>
    %367 = arith.mulf %362, %366 : vector<32x128xf32>
    %368 = vector.broadcast %347 : vector<1x128xf32> to vector<32x128xf32>
    %369 = arith.mulf %367, %368 : vector<32x128xf32>
    %370 = vector.broadcast %349 : vector<1x128xf32> to vector<32x128xf32>
    %371 = arith.addf %369, %370 : vector<32x128xf32>
    %c0_216 = arith.constant 0 : index
    %c0_217 = arith.constant 0 : index
    %372 = vector.load %arg2[%c0_216, %c0_217] : memref<2x32xf32, #tpu.memory_space<vmem>>, vector<2x32xf32>
    %cst_218 = arith.constant dense<0.000000e+00> : vector<2x128xf32>
    %373 = tpu.matmul %372, %371, %cst_218 {dimension_numbers = #tpu.dot_dimension_numbers<[1], [0], [0], [1], [0, 0, 1, 1], [], []>} : vector<2x32xf32>, vector<32x128xf32>, vector<2x128xf32> -> vector<2x128xf32>
    %374 = arith.truncf %373 : vector<2x128xf32> to vector<2x128xbf16>
    %c0_219 = arith.constant 0 : index
    %c0_220 = arith.constant 0 : index
    %375 = vector.load %arg21[%c0_219, %c0_220] : memref<128x128xbf16, #tpu.memory_space<vmem>>, vector<128x128xbf16>
    %cst_221 = arith.constant dense<0.000000e+00> : vector<2x128xf32>
    %376 = tpu.matmul %374, %375, %cst_221 {dimension_numbers = #tpu.dot_dimension_numbers<[1], [0], [0], [1], [0, 0, 1, 1], [], []>} : vector<2x128xbf16>, vector<128x128xbf16>, vector<2x128xf32> -> vector<2x128xf32>
    %c0_222 = arith.constant 0 : index
    %c0_223 = arith.constant 0 : index
    %377 = vector.load %arg22[%c0_222, %c0_223] : memref<1x128xf32, #tpu.memory_space<vmem>>, vector<1x128xf32>
    %378 = vector.broadcast %377 : vector<1x128xf32> to vector<2x128xf32>
    %379 = arith.addf %376, %378 : vector<2x128xf32>
    %c0_224 = arith.constant 0 : index
    %c0_225 = arith.constant 0 : index
    %380 = vector.load %arg23[%c0_224, %c0_225] : memref<2x128xf32, #tpu.memory_space<vmem>>, vector<2x128xf32>
    tpu.vector_store %arg23[%c0_224, %c0_225], %379 {strides = array<i32>} : memref<2x128xf32, #tpu.memory_space<vmem>>, vector<2x128xf32>,
    return
  }
}

</mosaic_0001>

<bundles_post_ra>
// kernel: mul.11
= control target key start
LH: loop header
LB: loop body
LE: loop exit
PB: predicated region body
PF: predicated region fallthrough
CT: control target
= control target key end

     0   :  { %vm7_vm0 = vcmask 130048   ;;  %vm13_vm1 = vcmask 261248   ;;  %s39_s0 = inlined_call_operand.vmem [shape: f32[2,16], index: 0, kind: input, shape index: {}]   ;;  %s40_s1 = inlined_call_operand.vmem [shape: f32[32], index: 1, kind: output, shape index: {}]  }
   0x1   :  { %v4_v0 = vld [vmem:[%s39_s0] sm:$0x3]  ;;  %s22_s0 = smov 16  }
   0x2   :  { %5 = vst [vmem:[#allocation1] sm:$0x3] %v4_v0 }
   0x9   :  { %v10_v1 = vld [vmem:[#allocation1 + $0x1] sm:$0x1]   ;;  %v6_v2 = vld [vmem:[#allocation1] sm:$0x1]  }
   0xa   :  { %11 = vrot.lane.b32.xlu0 %v10_v1, %s22_s0  ;;  %8 = vst.msk [vmem:[#allocation0] sm:$0x1] %vm7_vm0, %v6_v2  }
  0x7c   :  { %v12_v3 = vpop.permute.xlu0 %11  }
  0x7d   :  { %14 = vst.msk [vmem:[#allocation0] sm:$0x1] %vm13_vm1, %v12_v3  }
  0x84   :  { %v18_v4 = vld [vmem:[#allocation0] sm:$0x1] }
  0x85   :  { %20 = vst [vmem:[%s40_s1] sm:$0x1] %v18_v4 }

// kernel: multitask_xlmr_encode.1
= control target key start
LH: loop header
LB: loop body
LE: loop exit
PB: predicated region body
PF: predicated region fallthrough
CT: control target
= control target key end

     0   :  { %s7270_s0 = inlined_call_operand.vmem [shape: f32[32,128], index: 0, kind: input, shape index: {}]   ;;  %s7271_s1 = inlined_call_operand.vmem [shape: f32[32,32], index: 1, kind: input, shape index: {}]   ;;  %s7272_s2 = inlined_call_operand.vmem [shape: f32[2,32], index: 2, kind: input, shape index: {}]   ;;  %s7273_s3 = inlined_call_operand.vmem [shape: f32[1,128], index: 3, kind: input, shape index: {}]   ;;  %s7274_s4 = inlined_call_operand.vmem [shape: f32[1,128], index: 4, kind: input, shape index: {}]   ;;  %s7275_s5 = inlined_call_operand.vmem [shape: bf16[4,128,64], index: 5, kind: input, shape index: {}]   ;;  %s7276_s6 = inlined_call_operand.vmem [shape: f32[4,1,64], index: 6, kind: input, shape index: {}]   ;;  %s7277_s7 = inlined_call_operand.vmem [shape: bf16[4,128,64], index: 7, kind: input, shape index: {}]   ;;  %s7278_s8 = inlined_call_operand.vmem [shape: f32[4,1,64], index: 8, kind: input, shape index: {}]   ;;  %s7279_s9 = inlined_call_operand.vmem [shape: bf16[4,128,64], index: 9, kind: input, shape index: {}]   ;;  %s7280_s10 = inlined_call_operand.vmem [shape: f32[4,1,64], index: 10, kind: input, shape index: {}]   ;;  %s7281_s11 = inlined_call_operand.vmem [shape: bf16[4,64,128], index: 11, kind: input, shape index: {}]   ;;  %s7282_s12 = inlined_call_operand.vmem [shape: f32[2,1,128], index: 12, kind: input, shape index: {}]   ;;  %s7283_s13 = inlined_call_operand.vmem [shape: f32[2,1,128], index: 13, kind: input, shape index: {}]   ;;  %s7284_s14 = inlined_call_operand.vmem [shape: f32[2,1,128], index: 14, kind: input, shape index: {}]   ;;  %s7285_s15 = inlined_call_operand.vmem [shape: bf16[2,128,256], index: 15, kind: input, shape index: {}]   ;;  %s7286_s16 = inlined_call_operand.vmem [shape: f32[2,1,256], index: 16, kind: input, shape index: {}]   ;;  %s7287_s17 = inlined_call_operand.vmem [shape: bf16[2,256,128], index: 17, kind: input, shape index: {}]   ;;  %s7288_s18 = inlined_call_operand.vmem [shape: f32[2,1,128], index: 18, kind: input, shape index: {}]   ;;  %s7289_s19 = inlined_call_operand.vmem [shape: f32[2,1,128], index: 19, kind: input, shape index: {}]   ;;  %s7290_s20 = inlined_call_operand.vmem [shape: f32[2,1,128], index: 20, kind: input, shape index: {}]   ;;  %s7291_s21 = inlined_call_operand.vmem [shape: bf16[128,128], index: 21, kind: input, shape index: {}]   ;;  %s7292_s22 = inlined_call_operand.vmem [shape: f32[1,128], index: 22, kind: input, shape index: {}]   ;;  %s7293_s23 = inlined_call_operand.hbm [shape: f32[2,128], index: 23, kind: output, shape index: {}]  }
   0x1   :  { %7299 = sst [smem:[#allocation5_spill]] %s7270_s0 }
   0x2   :  { %7300 = sst [smem:[#allocation6_spill]] %s7271_s1 }
   0x3   :  { %7301 = sst [smem:[#allocation7_spill]] %s7272_s2 }
   0x4   :  { %7302 = sst [smem:[#allocation8_spill]] %s7273_s3 }
   0x5   :  { %7303 = sst [smem:[#allocation9_spill]] %s7274_s4 }
   0x6   :  { %7304 = sst [smem:[#allocation10_spill]] %s7275_s5 }
   0x7   :  { %7305 = sst [smem:[#allocation11_spill]] %s7276_s6 }
   0x8   :  { %7306 = sst [smem:[#allocation12_spill]] %s7277_s7 }
   0x9   :  { %s7307_s24 = sld [smem:[#allocation5_spill]]  ;;  %s7308_s28 = sld [smem:[#allocation10_spill]] }
   0xa   :  { %s7309_s0 = sld [smem:[#allocation12_spill]] }
   0xf   :  { %v80_v0 = vld [vmem:[%s7307_s24] sm:$0xff]  ;;  %v82_v1 = vld [vmem:[%s7307_s24 + $0x10] sm:$0xff]  ;;  %v81_v2 = vld [vmem:[%s7307_s24 + $0x8] sm:$0xff] }
  0x10   :  { %86 = vadd.xlane.f32.xlu0 %v80_v0  ;;  %90 = vadd.xlane.f32.xlu1 %v82_v1  ;;  %v83_v3 = vld [vmem:[%s7307_s24 + $0x18] sm:$0xff]  ;;  %v5656_v4 = vld [vmem:[%s7308_s28] sm:$0xff]  }
  0x11   :  { %v5657_v5 = vld [vmem:[%s7309_s0] sm:$0xff]   ;;  %5126 = vmatprep.subr.bf16.mxu0 %v5656_v4 }
  0x12   :  { %5146 = vmatprep.subr.bf16.mxu1 %v5657_v5  ;;  %5127 = vmatpush3.bf16.msra.mxu0 %v5656_v4 }
  0x13   :  { %5147 = vmatpush3.bf16.msra.mxu1 %v5657_v5 }
  0x14   :  { %88 = vadd.xlane.f32.xlu0 %v81_v2  ;;  %92 = vadd.xlane.f32.xlu1 %v83_v3 }
  0x15   :  { %28 = vsyncpa [#allocation3], 0  ;;  %v5658_v22 = vld [vmem:[%s7308_s28 + $0x8] sm:$0xff]   ;;  %v5660_v24 = vld [vmem:[%s7308_s28 + $0x10] sm:$0xff]   ;;  %s7310_s26 = sld [smem:[#allocation8_spill]]  ;;  %s7311_s27 = sld [smem:[#allocation9_spill]] }
  0x16   :  { %v5659_v23 = vld [vmem:[%s7309_s0 + $0x8] sm:$0xff]   ;;  %5128 = vmatprep.subr.bf16.mxu0 %v5658_v22  ;;  %v5661_v25 = vld [vmem:[%s7309_s0 + $0x10] sm:$0xff]   ;;  %v5662_v26 = vld [vmem:[%s7308_s28 + $0x18] sm:$0xff]   ;;  %s7312_s25 = sld [smem:[#allocation11_spill]]  ;;  %vm517_vm0 = vcmask 523264   ;;  %s7315_s3 = sld [smem:[#allocation6_spill]] }
  0x17   :  { %5129 = vmatpush3.bf16.msra.mxu0 %v5658_v22  ;;  %5148 = vmatprep.subr.bf16.mxu1 %v5659_v23  ;;  %v5663_v27 = vld [vmem:[%s7309_s0 + $0x18] sm:$0xff]   ;;  %v5664_v28 = vld [vmem:[%s7308_s28 + $0x20] sm:$0xff]   ;;  %v5666_v30 = vld [vmem:[%s7308_s28 + $0x28] sm:$0xff]   ;;  %vm627_vm2 = vcmask 261120   ;;  %vm6022_vm3 = vmmov 0   ;;  %s6024_s7 = smov [#allocation2]  }
  0x18   :  { %5149 = vmatpush3.bf16.msra.mxu1 %v5659_v23  ;;  %5130 = vmatprep.subr.bf16.mxu0 %v5660_v24  ;;  %v5665_v29 = vld [vmem:[%s7309_s0 + $0x20] sm:$0xff]   ;;  %v5667_v31 = vld [vmem:[%s7309_s0 + $0x28] sm:$0xff]   ;;  %v5668_v32 = vld [vmem:[%s7308_s28 + $0x30] sm:$0xff]  }
  0x19   :  { %5150 = vmatprep.subr.bf16.mxu1 %v5661_v25  ;;  %v5669_v33 = vld [vmem:[%s7309_s0 + $0x30] sm:$0xff]   ;;  %v5670_v34 = vld [vmem:[%s7308_s28 + $0x38] sm:$0xff]   ;;  %v5672_v36 = vld [vmem:[%s7279_s9] sm:$0xff]  }
  0x1a   :  { %v5671_v35 = vld [vmem:[%s7309_s0 + $0x38] sm:$0xff]   ;;  %v5673_v5 = vld [vmem:[%s7279_s9 + $0x8] sm:$0xff]   ;;  %v4359_v23 = vld [vmem:[%s7278_s8] ss:$0 sm:$0xff] }
  0x1b   :  { %5131 = vmatpush3.bf16.msra.mxu0 %v5660_v24  ;;  %v4348_v51 = vld [vmem:[%s7310_s26] ss:$0 sm:$0xff]  ;;  %vm6311_vm1 = vmpackc.low %vm517_vm0, %vm517_vm0 }
  0x1c   :  { %5151 = vmatpush3.bf16.msra.mxu1 %v5661_v25  ;;  %5132 = vmatprep.subr.bf16.mxu0 %v5662_v26  ;;  %v4349_v56 = vld [vmem:[%s7311_s27] ss:$0 sm:$0xff] }
  0x1d   :  { %5152 = vmatprep.subr.bf16.mxu1 %v5663_v27 }
  0x1f   :  { %5133 = vmatpush3.bf16.msra.mxu0 %v5662_v26 }
  0x20   :  { %5153 = vmatpush3.bf16.msra.mxu1 %v5663_v27  ;;  %5134 = vmatprep.subr.bf16.mxu0 %v5664_v28 }
  0x21   :  { %5154 = vmatprep.subr.bf16.mxu1 %v5665_v29 }
  0x23   :  { %5135 = vmatpush3.bf16.msra.mxu0 %v5664_v28 }
  0x24   :  { %5155 = vmatpush3.bf16.msra.mxu1 %v5665_v29  ;;  %5136 = vmatprep.subr.bf16.mxu0 %v5666_v30 }
  0x25   :  { %5156 = vmatprep.subr.bf16.mxu1 %v5667_v31 }
  0x27   :  { %5137 = vmatpush3.bf16.msra.mxu0 %v5666_v30 }
  0x28   :  { %5157 = vmatpush3.bf16.msra.mxu1 %v5667_v31  ;;  %5138 = vmatprep.subr.bf16.mxu0 %v5668_v32 }
  0x29   :  { %5158 = vmatprep.subr.bf16.mxu1 %v5669_v33 }
  0x2b   :  { %5139 = vmatpush3.bf16.msra.mxu0 %v5668_v32 }
  0x2c   :  { %5159 = vmatpush3.bf16.msra.mxu1 %v5669_v33  ;;  %5140 = vmatprep.subr.bf16.mxu0 %v5670_v34 }
  0x2d   :  { %5160 = vmatprep.subr.bf16.mxu1 %v5671_v35 }
  0x2f   :  { %5141 = vmatpush3.bf16.msra.mxu0 %v5670_v34 }
  0x30   :  { %5161 = vmatpush3.bf16.msra.mxu1 %v5671_v35  ;;  %5166 = vmatprep.subr.bf16.mxu0 %v5672_v36 }
  0x9d   :  { %v87_v6 = vpop.xlane.xlu0 %86  ;;  %v91_v7 = vpop.xlane.xlu1 %90 }
  0x9e   :  { %v95_v8 = vmul.f32 0.0078125, %v87_v6  ;;  %v97_v9 = vmul.f32 0.0078125, %v91_v7  ;;  %v5674_v6 = vld [vmem:[%s7279_s9 + $0x10] sm:$0xff]   ;;  %v5675_v7 = vld [vmem:[%s7279_s9 + $0x18] sm:$0xff]  }
  0xa0   :  { %v6163_v10 = vsub.f32 %v80_v0, %v95_v8  ;;  %v6165_v11 = vsub.f32 %v82_v1, %v97_v9  ;;  %v5676_v8 = vld [vmem:[%s7279_s9 + $0x20] sm:$0xff]   ;;  %v5677_v9 = vld [vmem:[%s7279_s9 + $0x28] sm:$0xff]  }
  0xa1   :  { %v89_v12 = vpop.xlane.xlu0 %88  ;;  %v93_v13 = vpop.xlane.xlu1 %92 }
  0xa2   :  { %v96_v14 = vmul.f32 0.0078125, %v89_v12  ;;  %v103_v15 = vmul.f32 %v6163_v10, %v6163_v10  ;;  %v98_v16 = vmul.f32 0.0078125, %v93_v13  ;;  %v105_v19 = vmul.f32 %v6165_v11, %v6165_v11  ;;  %v5680_v12 = vld [vmem:[%s7309_s0 + $0x40] sm:$0xff]   ;;  %v5681_v13 = vld [vmem:[%s7309_s0 + $0x48] sm:$0xff]  }
  0xa4   :  { %v6169_v17 = vsub.f32 %v81_v2, %v96_v14  ;;  %107 = vadd.xlane.f32.xlu0 %v103_v15  ;;  %v6171_v18 = vsub.f32 %v83_v3, %v98_v16  ;;  %v5682_v14 = vld [vmem:[%s7309_s0 + $0x50] sm:$0xff]   ;;  %v5683_v15 = vld [vmem:[%s7309_s0 + $0x58] sm:$0xff]   ;;  %v5684_v16 = vld [vmem:[%s7309_s0 + $0x60] sm:$0xff]  }
  0xa6   :  { %v104_v20 = vmul.f32 %v6169_v17, %v6169_v17  ;;  %v106_v21 = vmul.f32 %v6171_v18, %v6171_v18 }
  0xa8   :  { %111 = vadd.xlane.f32.xlu0 %v105_v19  ;;  %109 = vadd.xlane.f32.xlu1 %v104_v20  ;;  %v5687_v19 = vld [vmem:[%s7309_s0 + $0x78] sm:$0xff]   ;;  %v4350_v20 = vld [vmem:[%s7312_s25] ss:$0 sm:$0xff] }
  0xac   :  { %113 = vadd.xlane.f32.xlu1 %v106_v21 }
 0x131   :  { %v108_v37 = vpop.xlane.xlu0 %107 }
 0x132   :  { %v115_v38 = vmul.f32 0.0078125, %v108_v37 }
 0x134   :  { %v119_v39 = vadd.f32 1e-05, %v115_v38 }
 0x135   :  { %v110_v40 = vpop.xlane.xlu1 %109  ;;  %v112_v41 = vpop.xlane.xlu0 %111 }
 0x136   :  { %5856 = vrsqrt.f32 %v119_v39  ;;  %v116_v42 = vmul.f32 0.0078125, %v110_v40  ;;  %v117_v43 = vmul.f32 0.0078125, %v112_v41 }
 0x138   :  { %v120_v44 = vadd.f32 1e-05, %v116_v42  ;;  %v121_v45 = vadd.f32 1e-05, %v117_v43 }
 0x139   :  { %v114_v46 = vpop.xlane.xlu1 %113 }
 0x13a   :  { %5858 = vrsqrt.f32 %v120_v44  ;;  %v118_v47 = vmul.f32 0.0078125, %v114_v46  ;;  %v4368_v46 = vld [vmem:[%s7280_s10] ss:$0 sm:$0xff] }
 0x13b   :  { %5860 = vrsqrt.f32 %v121_v45 }
 0x13c   :  { %v122_v48 = vadd.f32 1e-05, %v118_v47 }
 0x13e   :  { %5862 = vrsqrt.f32 %v122_v48 }
 0x140   :  { %v5857_v49 = vpop.eup %5856 }
 0x141   :  { %v127_v50 = vmul.f32 %v5857_v49, %v6163_v10  ;;  %v5678_v10 = vld [vmem:[%s7279_s9 + $0x30] sm:$0xff]  }
 0x143   :  { %v137_v54 = vmul.f32 %v4348_v51, %v127_v50 }
 0x144   :  { %v5859_v52 = vpop.eup %5858 }
 0x145   :  { %v5861_v53 = vpop.eup %5860  ;;  %v128_v55 = vmul.f32 %v5859_v52, %v6169_v17  ;;  %v6233_v60 = vadd.f32 %v4349_v56, %v137_v54  ;;  %v5685_v17 = vld [vmem:[%s7309_s0 + $0x68] sm:$0xff]  }
 0x146   :  { %v129_v57 = vmul.f32 %v5861_v53, %v6165_v11  ;;  %v5679_v11 = vld [vmem:[%s7279_s9 + $0x38] sm:$0xff]  }
 0x147   :  { %v138_v58 = vmul.f32 %v4348_v51, %v128_v55 }
 0x148   :  { %v5863_v59 = vpop.eup %5862  ;;  %v139_v62 = vmul.f32 %v4348_v51, %v129_v57  ;;  %v4432_v57 = vld [vmem:[%s7278_s8 + $0x1] ss:$0 sm:$0xff] }
 0x149   :  { %v6235_v61 = vadd.f32 %v4349_v56, %v138_v58  ;;  %v130_v63 = vmul.f32 %v5863_v59, %v6171_v18  ;;  %v5686_v18 = vld [vmem:[%s7309_s0 + $0x70] sm:$0xff]  }
 0x14a   :  { %v6242_v2 = vadd.f32 %v4349_v56, %v139_v62 }
 0x14b   :  { %v140_v0 = vmul.f32 %v4348_v51, %v130_v63  ;;  %v6240_v1 = vpack.c.bf16 %v6235_v61, %v6233_v60 }
 0x14d   :  { %v6244_v3 = vadd.f32 %v4349_v56, %v140_v0  ;;  %5142 = vmatprep.mubr.bf16.mxu0 %v6240_v1  ;;  %5162 = vmatprep.mubr.bf16.mxu1 %v6240_v1 }
 0x14f   :  { %v6250_v4 = vpack.c.bf16 %v6244_v3, %v6242_v2 }
 0x151   :  { %5143 = vmatmul.mubr.bf16.vlgmr.msra.gmra.mrb[0].mxu0 %v6250_v4  ;;  %5163 = vmatmul.mubr.bf16.vlgmr.msra.gmra.mrb[0].mxu1 %v6250_v4 }
 0x152   :  { %5167 = vmatpush3.bf16.msra.mxu0 %v5672_v36  ;;  %5182 = vmatprep.mubr.bf16.mxu0 %v6240_v1 }
 0x153   :  { %5168 = vmatprep.subr.bf16.mxu0 %v5673_v5 }
 0x156   :  { %5169 = vmatpush3.bf16.msra.mxu0 %v5673_v5 }
 0x157   :  { %5170 = vmatprep.subr.bf16.mxu0 %v5674_v6 }
 0x15a   :  { %5171 = vmatpush3.bf16.msra.mxu0 %v5674_v6 }
 0x15b   :  { %5172 = vmatprep.subr.bf16.mxu0 %v5675_v7 }
 0x15e   :  { %5173 = vmatpush3.bf16.msra.mxu0 %v5675_v7 }
 0x15f   :  { %5174 = vmatprep.subr.bf16.mxu0 %v5676_v8 }
 0x162   :  { %5175 = vmatpush3.bf16.msra.mxu0 %v5676_v8 }
 0x163   :  { %5176 = vmatprep.subr.bf16.mxu0 %v5677_v9 }
 0x166   :  { %5177 = vmatpush3.bf16.msra.mxu0 %v5677_v9  ;;  %v6344_v9 = vld [vmem:[%s7315_s3 + $0x8] sm:$0xff] }
 0x167   :  { %5178 = vmatprep.subr.bf16.mxu0 %v5678_v10 }
 0x16a   :  { %5179 = vmatpush3.bf16.msra.mxu0 %v5678_v10  ;;  %v6349_v10 = vld [vmem:[%s7315_s3] sm:$0xff] }
 0x16b   :  { %5180 = vmatprep.subr.bf16.mxu0 %v5679_v11 }
 0x16e   :  { %5181 = vmatpush3.bf16.msra.mxu0 %v5679_v11 }
 0x16f   :  { %5234 = vmatprep.subr.bf16.mxu0 %v5680_v12 }
 0x171   :  { %5183 = vmatmul.mubr.bf16.vlgmr.msra.gmra.mrb[4].mxu0 %v6250_v4 }
 0x172   :  { %5235 = vmatpush3.bf16.msra.mxu0 %v5680_v12  ;;  %5250 = vmatprep.mubr.bf16.mxu0 %v6240_v1 }
 0x173   :  { %5236 = vmatprep.subr.bf16.mxu0 %v5681_v13 }
 0x176   :  { %5237 = vmatpush3.bf16.msra.mxu0 %v5681_v13 }
 0x177   :  { %5238 = vmatprep.subr.bf16.mxu0 %v5682_v14 }
 0x17a   :  { %5239 = vmatpush3.bf16.msra.mxu0 %v5682_v14 }
 0x17b   :  { %5240 = vmatprep.subr.bf16.mxu0 %v5683_v15 }
 0x17e   :  { %5241 = vmatpush3.bf16.msra.mxu0 %v5683_v15  ;;  %v6356_v15 = vld [vmem:[%s7315_s3 + $0x18] sm:$0xff] }
 0x17f   :  { %5242 = vmatprep.subr.bf16.mxu0 %v5684_v16 }
 0x182   :  { %5243 = vmatpush3.bf16.msra.mxu0 %v5684_v16 }
 0x183   :  { %5244 = vmatprep.subr.bf16.mxu0 %v5685_v17 }
 0x186   :  { %5245 = vmatpush3.bf16.msra.mxu0 %v5685_v17  ;;  %v6362_v17 = vld [vmem:[%s7315_s3 + $0x10] sm:$0xff] }
 0x187   :  { %5246 = vmatprep.subr.bf16.mxu0 %v5686_v18 }
 0x18a   :  { %5247 = vmatpush3.bf16.msra.mxu0 %v5686_v18 }
 0x18b   :  { %5248 = vmatprep.subr.bf16.mxu0 %v5687_v19 }
 0x18e   :  { %5249 = vmatpush3.bf16.msra.mxu0 %v5687_v19 }
 0x191   :  { %5251 = vmatmul.mubr.bf16.vlgmr.msra.gmra.mrb[8].mxu0 %v6250_v4 }
 0x224   :  { %v5144_v21 = vpop.f32.mrb[0].mxu0  ;;  %v5164_v22 = vpop.f32.mrb[0].mxu1 }
 0x225   :  { %v258_v24 = vpop.f32.mrb[1].mxu0  ;;  %v382_v25 = vpop.f32.mrb[1].mxu1  ;;  %v391_v29 = vadd.f32 %v5164_v22, %v4359_v23  ;;  %v267_v40 = vadd.f32 %v5144_v21, %v4350_v20 }
 0x226   :  { %v259_v26 = vadd.f32 %v4350_v20, %v258_v24  ;;  %v5145_v27 = vpop.f32.mrb[2].mxu0  ;;  %v5165_v28 = vpop.f32.mrb[2].mxu1  ;;  %v383_v34 = vadd.f32 %v4359_v23, %v382_v25 }
 0x227   :  { %v394_v30 = vadd.f32 %v5165_v28, %v4359_v23  ;;  %v261_v31 = vpop.f32.mrb[3].mxu0  ;;  %v385_v32 = vpop.f32.mrb[3].mxu1  ;;  %v270_v41 = vadd.f32 %v5145_v27, %v4350_v20  ;;  %v275_v43 = vmul.f32 0.125, %v267_v40 }
 0x228   :  { %v273_v33 = vmul.f32 0.125, %v259_v26  ;;  %v386_v35 = vadd.f32 %v4359_v23, %v385_v32  ;;  %v262_v39 = vadd.f32 %v4350_v20, %v261_v31 }
 0x229   :  { %v5563_v36 = vpack.c.bf16 %v394_v30, %v391_v29  ;;  %v276_v44 = vmul.f32 0.125, %v270_v41 }
 0x22a   :  { %v5557_v38 = vpack.c.bf16 %v386_v35, %v383_v34  ;;  %5194 = vmatprep.mubr.msk.f32.mxu1 %vm517_vm0, %v273_v33  ;;  %v274_v42 = vmul.f32 0.125, %v262_v39 }
 0x22c   :  { %5559 = vmatprep.subr.msk.bf16.mxu1 %vm6311_vm1, %v5557_v38 }
 0x22d   :  { %5562 = vmatpush3.bf16.xpose.msk.msra.mxu1 %vm6311_vm1, %v5557_v38 }
 0x22e   :  { %5565 = vmatprep.subr.msk.bf16.mxu1 %vm6311_vm1, %v5563_v36 }
 0x235   :  { %5568 = vmatpush3.bf16.xpose.msk.msra.mxu1 %vm6311_vm1, %v5563_v36 }
 0x23c   :  { %5195 = vmatmul.mubr.msk.f32.vlgmr.msra.gmra.mrb[4].mxu1 %vm517_vm0, %v274_v42 }
 0x23d   :  { %5197 = vmatprep.mubr.msk.f32.mxu1 %vm517_vm0, %v275_v43 }
 0x240   :  { %5198 = vmatmul.mubr.msk.f32.gmra.mrb[6].mxu1 %vm517_vm0, %v276_v44 }
 0x244   :  { %v5184_v45 = vpop.f32.mrb[4].mxu0 }
 0x245   :  { %v502_v47 = vpop.f32.mrb[5].mxu0  ;;  %v511_v49 = vadd.f32 %v5184_v45, %v4368_v46 }
 0x246   :  { %v5185_v48 = vpop.f32.mrb[6].mxu0  ;;  %v503_v52 = vadd.f32 %v4368_v46, %v502_v47 }
 0x247   :  { %v514_v50 = vadd.f32 %v5185_v48, %v4368_v46  ;;  %v505_v51 = vpop.f32.mrb[7].mxu0 }
 0x248   :  { %v506_v53 = vadd.f32 %v4368_v46, %v505_v51  ;;  %v5688_v46 = vld [vmem:[%s7308_s28 + $0x40] sm:$0xff]  }
 0x249   :  { %v5573_v54 = vpack.c.bf16 %v514_v50, %v511_v49 }
 0x24a   :  { %v5569_v55 = vpack.c.bf16 %v506_v53, %v503_v52 }
 0x24c   :  { %5570 = vmatprep.subr.bf16.mxu1 %v5569_v55 }
 0x24d   :  { %5572 = vmatpush3.bf16.msra.mxu1 %v5569_v55  ;;  %v5689_v55 = vld [vmem:[%s7308_s28 + $0x48] sm:$0xff]  }
 0x24e   :  { %5574 = vmatprep.subr.bf16.mxu1 %v5573_v54 }
 0x251   :  { %5576 = vmatpush3.bf16.msra.mxu1 %v5573_v54 }
 0x252   :  { %5214 = vmatprep.subr.bf16.mxu1 %v5688_v46 }
 0x264   :  { %v5252_v56 = vpop.f32.mrb[8].mxu0 }
 0x265   :  { %v1012_v58 = vpop.f32.mrb[9].mxu0  ;;  %v1021_v62 = vadd.f32 %v5252_v56, %v4432_v57 }
 0x266   :  { %v5253_v59 = vpop.f32.mrb[10].mxu0  ;;  %v1013_v5 = vadd.f32 %v4432_v57, %v1012_v58 }
 0x267   :  { %v1024_v63 = vadd.f32 %v5253_v59, %v4432_v57  ;;  %v1015_v0 = vpop.f32.mrb[11].mxu0 }
 0x268   :  { %v1016_v6 = vadd.f32 %v4432_v57, %v1015_v0  ;;  %v5692_v0 = vld [vmem:[%s7308_s28 + $0x60] sm:$0xff]  }
 0x269   :  { %v5583_v7 = vpack.c.bf16 %v1024_v63, %v1021_v62  ;;  %v5690_v62 = vld [vmem:[%s7308_s28 + $0x50] sm:$0xff]   ;;  %v5691_v63 = vld [vmem:[%s7308_s28 + $0x58] sm:$0xff]  }
 0x26a   :  { %v5577_v8 = vpack.c.bf16 %v1016_v6, %v1013_v5  ;;  %v5693_v5 = vld [vmem:[%s7308_s28 + $0x68] sm:$0xff]   ;;  %v5694_v6 = vld [vmem:[%s7308_s28 + $0x70] sm:$0xff]  }
 0x26c   :  { %5579 = vmatprep.subr.msk.bf16.mxu0 %vm6311_vm1, %v5577_v8 }
 0x26d   :  { %5582 = vmatpush3.bf16.xpose.msk.msra.mxu0 %vm6311_vm1, %v5577_v8  ;;  %v5696_v8 = vld [vmem:[%s7279_s9 + $0x40] sm:$0xff]  }
 0x26e   :  { %5585 = vmatprep.subr.msk.bf16.mxu0 %vm6311_vm1, %v5583_v7 }
 0x275   :  { %5588 = vmatpush3.bf16.xpose.msk.msra.mxu0 %vm6311_vm1, %v5583_v7  ;;  %v5695_v7 = vld [vmem:[%s7308_s28 + $0x78] sm:$0xff]  }
 0x30f   :  { %v5196_v11 = vpop.f32.mrb[4].mxu1 }
 0x310   :  { %v614_v12 = vadd.f32 %v5196_v11, %v6344_v9  ;;  %v608_v13 = vpop.f32.mrb[5].mxu1  ;;  %v5697_v11 = vld [vmem:[%s7279_s9 + $0x48] sm:$0xff]  }
 0x311   :  { %v609_v14 = vadd.f32 %v608_v13, %v6349_v10  ;;  %v5699_v13 = vld [vmem:[%s7279_s9 + $0x58] sm:$0xff]  }
 0x312   :  { %v631_v16 = vsel %vm627_vm2, %v614_v12, -inf }
 0x313   :  { %v5199_v18 = vpop.f32.mrb[6].mxu1  ;;  %632 = vmax.xlane.f32.xlu1 %v631_v16  ;;  %v628_v19 = vsel %vm627_vm2, %v609_v14, -inf  ;;  %v5702_v16 = vld [vmem:[%s7279_s9 + $0x70] sm:$0xff]  }
 0x314   :  { %v624_v20 = vadd.f32 %v5199_v18, %v6356_v15  ;;  %v618_v21 = vpop.f32.mrb[7].mxu1  ;;  %629 = vmax.xlane.f32.xlu0 %v628_v19  ;;  %v5703_v18 = vld [vmem:[%s7279_s9 + $0x78] sm:$0xff]  }
 0x315   :  { %v619_v22 = vadd.f32 %v618_v21, %v6362_v17 }
 0x316   :  { %v637_v23 = vsel %vm627_vm2, %v624_v20, -inf }
 0x317   :  { %638 = vmax.xlane.f32.xlu1 %v637_v23  ;;  %v634_v24 = vsel %vm627_vm2, %v619_v22, -inf }
 0x318   :  { %635 = vmax.xlane.f32.xlu0 %v634_v24 }
 0x3a0   :  { %v633_v25 = vpop.xlane.xlu1 %632 }
 0x3a1   :  { %v641_v26 = vsub.f32 %v614_v12, %v633_v25  ;;  %v630_v27 = vpop.xlane.xlu0 %629  ;;  %v5698_v12 = vld [vmem:[%s7279_s9 + $0x50] sm:$0xff]   ;;  %v4406_v25 = vld [vmem:[%s7312_s25 + $0x1] ss:$0 sm:$0xff] }
 0x3a2   :  { %v640_v28 = vsub.f32 %v609_v14, %v630_v27  ;;  %v5700_v14 = vld [vmem:[%s7279_s9 + $0x60] sm:$0xff]  }
 0x3a3   :  { %v646_v29 = vmul.f32 1.442695, %v641_v26 }
 0x3a4   :  { %v644_v30 = vmul.f32 1.442695, %v640_v28  ;;  %v639_v31 = vpop.xlane.xlu1 %638 }
 0x3a5   :  { %5864 = vpow2.f32 %v646_v29  ;;  %v643_v32 = vsub.f32 %v624_v20, %v639_v31  ;;  %v636_v33 = vpop.xlane.xlu0 %635 }
 0x3a6   :  { %5866 = vpow2.f32 %v644_v30  ;;  %v642_v34 = vsub.f32 %v619_v22, %v636_v33 }
 0x3a7   :  { %v650_v35 = vmul.f32 1.442695, %v643_v32 }
 0x3a8   :  { %v648_v36 = vmul.f32 1.442695, %v642_v34 }
 0x3a9   :  { %5868 = vpow2.f32 %v650_v35 }
 0x3aa   :  { %5870 = vpow2.f32 %v648_v36 }
 0x3af   :  { %v5865_v38 = vpop.eup %5864 }
 0x3b0   :  { %v5867_v39 = vpop.eup %5866  ;;  %v655_v40 = vsel %vm627_vm2, %v5865_v38, 0.0 }
 0x3b1   :  { %656 = vadd.xlane.f32.xlu1 %v655_v40  ;;  %v652_v41 = vsel %vm627_vm2, %v5867_v39, 0.0 }
 0x3b2   :  { %653 = vadd.xlane.f32.xlu0 %v652_v41 }
 0x3b3   :  { %v5869_v42 = vpop.eup %5868 }
 0x3b4   :  { %v5871_v43 = vpop.eup %5870  ;;  %v661_v44 = vsel %vm627_vm2, %v5869_v42, 0.0 }
 0x3b5   :  { %662 = vadd.xlane.f32.xlu1 %v661_v44  ;;  %v658_v45 = vsel %vm627_vm2, %v5871_v43, 0.0 }
 0x3b6   :  { %659 = vadd.xlane.f32.xlu0 %v658_v45 }
 0x43e   :  { %v657_v47 = vpop.xlane.xlu1 %656 }
 0x43f   :  { %5872 = vrcp.f32 %v657_v47  ;;  %v654_v48 = vpop.xlane.xlu0 %653 }
 0x440   :  { %5874 = vrcp.f32 %v654_v48 }
 0x442   :  { %v663_v49 = vpop.xlane.xlu1 %662 }
 0x443   :  { %5876 = vrcp.f32 %v663_v49  ;;  %v660_v50 = vpop.xlane.xlu0 %659 }
 0x444   :  { %5878 = vrcp.f32 %v660_v50 }
 0x449   :  { %v5873_v51 = vpop.eup %5872 }
 0x44a   :  { %v5875_v52 = vpop.eup %5874  ;;  %v669_v54 = vmul.f32 %v5873_v51, %v5865_v38 }
 0x44b   :  { %v668_v53 = vmul.f32 %v5875_v52, %v5867_v39  ;;  %v4458_v39 = vld [vmem:[%s7280_s10 + $0x1] ss:$0 sm:$0xff] }
 0x44d   :  { %v5877_v56 = vpop.eup %5876  ;;  %5208 = vmatprep.mubr.msk.f32.mxu1 %vm627_vm2, %v668_v53 }
 0x44e   :  { %v5879_v57 = vpop.eup %5878  ;;  %5209 = vmatmul.mubr.msk.f32.vlgmr.msra.gmra.mrb[8].mxu1 %vm627_vm2, %v669_v54  ;;  %v671_v59 = vmul.f32 %v5877_v56, %v5869_v42 }
 0x44f   :  { %5215 = vmatpush3.bf16.msra.mxu1 %v5688_v46  ;;  %v670_v58 = vmul.f32 %v5879_v57, %v5871_v43 }
 0x450   :  { %5216 = vmatprep.subr.bf16.mxu1 %v5689_v55 }
 0x451   :  { %5211 = vmatprep.mubr.msk.f32.mxu1 %vm627_vm2, %v670_v58 }
 0x452   :  { %5212 = vmatmul.mubr.msk.f32.gmra.mrb[10].mxu1 %vm627_vm2, %v671_v59 }
 0x453   :  { %5217 = vmatpush3.bf16.msra.mxu1 %v5689_v55  ;;  %5230 = vmatprep.mubr.bf16.mxu1 %v6240_v1 }
 0x454   :  { %5218 = vmatprep.subr.bf16.mxu1 %v5690_v62 }
 0x457   :  { %5219 = vmatpush3.bf16.msra.mxu1 %v5690_v62 }
 0x458   :  { %5220 = vmatprep.subr.bf16.mxu1 %v5691_v63 }
 0x45b   :  { %5221 = vmatpush3.bf16.msra.mxu1 %v5691_v63 }
 0x45c   :  { %5222 = vmatprep.subr.bf16.mxu1 %v5692_v0 }
 0x45f   :  { %5223 = vmatpush3.bf16.msra.mxu1 %v5692_v0 }
 0x460   :  { %5224 = vmatprep.subr.bf16.mxu1 %v5693_v5 }
 0x463   :  { %5225 = vmatpush3.bf16.msra.mxu1 %v5693_v5 }
 0x464   :  { %5226 = vmatprep.subr.bf16.mxu1 %v5694_v6 }
 0x467   :  { %5227 = vmatpush3.bf16.msra.mxu1 %v5694_v6 }
 0x468   :  { %5228 = vmatprep.subr.bf16.mxu1 %v5695_v7 }
 0x46b   :  { %5229 = vmatpush3.bf16.msra.mxu1 %v5695_v7 }
 0x46c   :  { %5254 = vmatprep.subr.bf16.mxu1 %v5696_v8 }
 0x46e   :  { %5231 = vmatmul.mubr.bf16.vlgmr.msra.gmra.mrb[12].mxu1 %v6250_v4 }
 0x46f   :  { %5255 = vmatpush3.bf16.msra.mxu1 %v5696_v8  ;;  %5270 = vmatprep.mubr.bf16.mxu1 %v6240_v1  ;;  %v5701_v1 = vld [vmem:[%s7279_s9 + $0x68] sm:$0xff]  }
 0x470   :  { %5256 = vmatprep.subr.bf16.mxu1 %v5697_v11 }
 0x473   :  { %5257 = vmatpush3.bf16.msra.mxu1 %v5697_v11 }
 0x474   :  { %5258 = vmatprep.subr.bf16.mxu1 %v5698_v12 }
 0x477   :  { %5259 = vmatpush3.bf16.msra.mxu1 %v5698_v12 }
 0x478   :  { %5260 = vmatprep.subr.bf16.mxu1 %v5699_v13 }
 0x47b   :  { %5261 = vmatpush3.bf16.msra.mxu1 %v5699_v13 }
 0x47c   :  { %5262 = vmatprep.subr.bf16.mxu1 %v5700_v14 }
 0x47f   :  { %5263 = vmatpush3.bf16.msra.mxu1 %v5700_v14 }
 0x480   :  { %5264 = vmatprep.subr.bf16.mxu1 %v5701_v1 }
 0x483   :  { %5265 = vmatpush3.bf16.msra.mxu1 %v5701_v1 }
 0x484   :  { %5266 = vmatprep.subr.bf16.mxu1 %v5702_v16 }
 0x487   :  { %5267 = vmatpush3.bf16.msra.mxu1 %v5702_v16 }
 0x488   :  { %5268 = vmatprep.subr.bf16.mxu1 %v5703_v18 }
 0x48b   :  { %5269 = vmatpush3.bf16.msra.mxu1 %v5703_v18 }
 0x48e   :  { %5271 = vmatmul.mubr.bf16.vlgmr.msra.gmra.mrb[16].mxu1 %v6250_v4 }
 0x521   :  { %v6429_v19 = vpop.f32.mrb[8].mxu1 }
 0x522   :  { %v6431_v20 = vpop.f32.mrb[9].mxu1 }
 0x523   :  { %v769_v21 = vpack.c.bf16 %v6429_v19, %v6431_v20  ;;  %v4499_v19 = vld [vmem:[%s7282_s12] ss:$0 sm:$0xff] }
 0x525   :  { %v6435_v22 = vpop.f32.mrb[10].mxu1 }
 0x526   :  { %v6437_v23 = vpop.f32.mrb[11].mxu1 }
 0x527   :  { %v770_v24 = vpack.c.bf16 %v6435_v22, %v6437_v23 }
 0x541   :  { %v5232_v26 = vpop.f32.mrb[12].mxu1 }
 0x542   :  { %v886_v4 = vpop.f32.mrb[13].mxu1  ;;  %v895_v29 = vadd.f32 %v5232_v26, %v4406_v25 }
 0x543   :  { %v887_v27 = vadd.f32 %v4406_v25, %v886_v4  ;;  %v5233_v28 = vpop.f32.mrb[14].mxu1 }
 0x544   :  { %v889_v30 = vpop.f32.mrb[15].mxu1  ;;  %v898_v33 = vadd.f32 %v5233_v28, %v4406_v25  ;;  %v903_v35 = vmul.f32 0.125, %v895_v29  ;;  %v5705_v28 = vld [vmem:[%s7281_s11 + $0x28] sm:$0xff]   ;;  %v5706_v29 = vld [vmem:[%s7281_s11 + $0x30] sm:$0xff]  }
 0x545   :  { %v901_v31 = vmul.f32 0.125, %v887_v27  ;;  %v890_v32 = vadd.f32 %v4406_v25, %v889_v30  ;;  %v5704_v27 = vld [vmem:[%s7281_s11 + $0x20] sm:$0xff]  }
 0x546   :  { %v904_v36 = vmul.f32 0.125, %v898_v33  ;;  %5302 = vmatprep.subr.bf16.mxu0 %v5704_v27 }
 0x547   :  { %v902_v34 = vmul.f32 0.125, %v890_v32  ;;  %5282 = vmatprep.mubr.msk.f32.mxu0 %vm517_vm0, %v901_v31 }
 0x549   :  { %5283 = vmatmul.mubr.msk.f32.vlgmr.msra.gmra.mrb[12].mxu0 %vm517_vm0, %v902_v34 }
 0x54a   :  { %5285 = vmatprep.mubr.msk.f32.mxu0 %vm517_vm0, %v903_v35  ;;  %5303 = vmatpush3.bf16.msra.mxu0 %v5704_v27  ;;  %v5726_v27 = vld [vmem:[%s7285_s15 + $0x44] ss:$8 sps:$4 sm:$0xff]  }
 0x54b   :  { %5304 = vmatprep.subr.bf16.mxu0 %v5705_v28 }
 0x54d   :  { %5286 = vmatmul.mubr.msk.f32.gmra.mrb[14].mxu0 %vm517_vm0, %v904_v36 }
 0x54e   :  { %5305 = vmatpush3.bf16.msra.mxu0 %v5705_v28  ;;  %v5724_v28 = vld [vmem:[%s7285_s15 + $0x40] ss:$8 sps:$4 sm:$0xff]  }
 0x54f   :  { %5306 = vmatprep.subr.bf16.mxu0 %v5706_v29 }
 0x552   :  { %5307 = vmatpush3.bf16.msra.mxu0 %v5706_v29  ;;  %v5729_v29 = vld [vmem:[%s7285_s15 + $0x54] ss:$8 sps:$4 sm:$0xff]  }
 0x561   :  { %v5272_v38 = vpop.f32.mrb[16].mxu1 }
 0x562   :  { %v1134_v40 = vpop.f32.mrb[17].mxu1  ;;  %v1143_v42 = vadd.f32 %v5272_v38, %v4458_v39 }
 0x563   :  { %v5273_v41 = vpop.f32.mrb[18].mxu1  ;;  %v1135_v45 = vadd.f32 %v4458_v39, %v1134_v40 }
 0x564   :  { %v1146_v43 = vadd.f32 %v5273_v41, %v4458_v39  ;;  %v1137_v44 = vpop.f32.mrb[19].mxu1 }
 0x565   :  { %v1138_v46 = vadd.f32 %v4458_v39, %v1137_v44  ;;  %v5708_v44 = vld [vmem:[%s7281_s11] sm:$0xff]  }
 0x566   :  { %v5593_v47 = vpack.c.bf16 %v1146_v43, %v1143_v42  ;;  %v5707_v43 = vld [vmem:[%s7281_s11 + $0x38] sm:$0xff]  }
 0x567   :  { %v5589_v48 = vpack.c.bf16 %v1138_v46, %v1135_v45  ;;  %5308 = vmatprep.subr.bf16.mxu0 %v5707_v43 }
 0x568   :  { %5309 = vmatpush3.bf16.msra.mxu0 %v5707_v43 }
 0x569   :  { %5590 = vmatprep.subr.bf16.mxu1 %v5589_v48  ;;  %5314 = vmatprep.subr.bf16.mxu0 %v5708_v44 }
 0x56a   :  { %5592 = vmatpush3.bf16.msra.mxu1 %v5589_v48 }
 0x56b   :  { %5594 = vmatprep.subr.bf16.mxu1 %v5593_v47 }
 0x56e   :  { %5596 = vmatpush3.bf16.msra.mxu1 %v5593_v47 }
 0x61c   :  { %v5284_v49 = vpop.f32.mrb[12].mxu0 }
 0x61d   :  { %v1245_v50 = vadd.f32 %v5284_v49, %v6344_v9  ;;  %v1239_v51 = vpop.f32.mrb[13].mxu0 }
 0x61e   :  { %v1240_v52 = vadd.f32 %v1239_v51, %v6349_v10  ;;  %v5709_v51 = vld [vmem:[%s7281_s11 + $0x8] sm:$0xff]  }
 0x61f   :  { %v1261_v53 = vsel %vm627_vm2, %v1245_v50, -inf }
 0x620   :  { %1262 = vmax.xlane.f32.xlu1 %v1261_v53  ;;  %v5287_v54 = vpop.f32.mrb[14].mxu0  ;;  %v1258_v55 = vsel %vm627_vm2, %v1240_v52, -inf  ;;  %v5711_v53 = vld [vmem:[%s7281_s11 + $0x18] sm:$0xff]  }
 0x621   :  { %v1255_v56 = vadd.f32 %v5287_v54, %v6356_v15  ;;  %v1249_v57 = vpop.f32.mrb[15].mxu0  ;;  %1259 = vmax.xlane.f32.xlu0 %v1258_v55 }
 0x622   :  { %v1250_v58 = vadd.f32 %v1249_v57, %v6362_v17 }
 0x623   :  { %v1267_v59 = vsel %vm627_vm2, %v1255_v56, -inf }
 0x624   :  { %1268 = vmax.xlane.f32.xlu1 %v1267_v59  ;;  %v1264_v9 = vsel %vm627_vm2, %v1250_v58, -inf }
 0x625   :  { %1265 = vmax.xlane.f32.xlu0 %v1264_v9 }
 0x6ad   :  { %v1263_v62 = vpop.xlane.xlu1 %1262 }
 0x6ae   :  { %v1271_v10 = vsub.f32 %v1245_v50, %v1263_v62  ;;  %v1260_v63 = vpop.xlane.xlu0 %1259 }
 0x6af   :  { %v1270_v0 = vsub.f32 %v1240_v52, %v1260_v63  ;;  %v5710_v52 = vld [vmem:[%s7281_s11 + $0x10] sm:$0xff]  }
 0x6b0   :  { %v1276_v5 = vmul.f32 1.442695, %v1271_v10  ;;  %v5714_v10 = vld [vmem:[%s7285_s15 + $0x4] ss:$8 sps:$4 sm:$0xff]  }
 0x6b1   :  { %v1274_v6 = vmul.f32 1.442695, %v1270_v0  ;;  %v1269_v7 = vpop.xlane.xlu1 %1268  ;;  %1759 = vmatprep.subr.bf16.mxu1 %v5714_v10 }
 0x6b2   :  { %5880 = vpow2.f32 %v1276_v5  ;;  %v1273_v8 = vsub.f32 %v1255_v56, %v1269_v7  ;;  %v1266_v15 = vpop.xlane.xlu0 %1265 }
 0x6b3   :  { %5882 = vpow2.f32 %v1274_v6  ;;  %v1272_v11 = vsub.f32 %v1250_v58, %v1266_v15 }
 0x6b4   :  { %v1280_v12 = vmul.f32 1.442695, %v1273_v8 }
 0x6b5   :  { %v1278_v17 = vmul.f32 1.442695, %v1272_v11 }
 0x6b6   :  { %5884 = vpow2.f32 %v1280_v12 }
 0x6b7   :  { %5886 = vpow2.f32 %v1278_v17 }
 0x6bc   :  { %v5881_v13 = vpop.eup %5880 }
 0x6bd   :  { %v5883_v14 = vpop.eup %5882  ;;  %v1285_v1 = vsel %vm627_vm2, %v5881_v13, 0.0 }
 0x6be   :  { %1286 = vadd.xlane.f32.xlu1 %v1285_v1  ;;  %v1282_v16 = vsel %vm627_vm2, %v5883_v14, 0.0 }
 0x6bf   :  { %1283 = vadd.xlane.f32.xlu0 %v1282_v16 }
 0x6c0   :  { %v5885_v18 = vpop.eup %5884 }
 0x6c1   :  { %v5887_v25 = vpop.eup %5886  ;;  %v1291_v26 = vsel %vm627_vm2, %v5885_v18, 0.0 }
 0x6c2   :  { %1292 = vadd.xlane.f32.xlu1 %v1291_v26  ;;  %v1288_v4 = vsel %vm627_vm2, %v5887_v25, 0.0  ;;  %v5723_v26 = vld [vmem:[%s7285_s15 + $0x34] ss:$8 sps:$4 sm:$0xff]  }
 0x6c3   :  { %1289 = vadd.xlane.f32.xlu0 %v1288_v4  ;;  %v5721_v4 = vld [vmem:[%s7285_s15 + $0x30] ss:$8 sps:$4 sm:$0xff]  }
 0x74b   :  { %v1287_v30 = vpop.xlane.xlu1 %1286 }
 0x74c   :  { %5888 = vrcp.f32 %v1287_v30  ;;  %v1284_v31 = vpop.xlane.xlu0 %1283  ;;  %v5727_v30 = vld [vmem:[%s7285_s15 + $0x50] ss:$8 sps:$4 sm:$0xff]  }
 0x74d   :  { %5890 = vrcp.f32 %v1284_v31  ;;  %v5732_v31 = vld [vmem:[%s7285_s15 + $0x64] ss:$8 sps:$4 sm:$0xff]  }
 0x74f   :  { %v1293_v32 = vpop.xlane.xlu1 %1292 }
 0x750   :  { %5892 = vrcp.f32 %v1293_v32  ;;  %v1290_v33 = vpop.xlane.xlu0 %1289  ;;  %v5730_v32 = vld [vmem:[%s7285_s15 + $0x60] ss:$8 sps:$4 sm:$0xff]  }
 0x751   :  { %5894 = vrcp.f32 %v1290_v33  ;;  %v5733_v33 = vld [vmem:[%s7285_s15 + $0x70] ss:$8 sps:$4 sm:$0xff]  }
 0x756   :  { %v5889_v34 = vpop.eup %5888 }
 0x757   :  { %v5891_v35 = vpop.eup %5890  ;;  %v1299_v38 = vmul.f32 %v5889_v34, %v5881_v13  ;;  %v5735_v34 = vld [vmem:[%s7285_s15 + $0x74] ss:$8 sps:$4 sm:$0xff]  }
 0x758   :  { %v1298_v36 = vmul.f32 %v5891_v35, %v5883_v14  ;;  %v6020_v35 = vmov 0  }
 0x75a   :  { %v5893_v39 = vpop.eup %5892  ;;  %5296 = vmatprep.mubr.msk.f32.mxu1 %vm627_vm2, %v1298_v36 }
 0x75b   :  { %v5895_v40 = vpop.eup %5894  ;;  %5297 = vmatmul.mubr.msk.f32.vlgmr.msra.gmra.mrb[20].mxu1 %vm627_vm2, %v1299_v38  ;;  %v1301_v42 = vmul.f32 %v5893_v39, %v5885_v18  ;;  %v5720_v18 = vld [vmem:[%s7285_s15 + $0x24] ss:$8 sps:$4 sm:$0xff]  }
 0x75c   :  { %v1300_v41 = vmul.f32 %v5895_v40, %v5887_v25  ;;  %v5718_v25 = vld [vmem:[%s7285_s15 + $0x20] ss:$8 sps:$4 sm:$0xff]  }
 0x75e   :  { %5299 = vmatprep.mubr.msk.f32.mxu1 %vm627_vm2, %v1300_v41 }
 0x75f   :  { %5300 = vmatmul.mubr.msk.f32.gmra.mrb[22].mxu1 %vm627_vm2, %v1301_v42 }
 0x760   :  { %1791 = vmatprep.mubr.bf16.mxu1 %v6020_v35 }
 0x82e   :  { %v5298_v45 = vpop.f32.mrb[20].mxu1 }
 0x82f   :  { %v1380_v46 = vpop.f32.mrb[21].mxu1 }
 0x830   :  { %v1399_v47 = vpack.c.bf16 %v5298_v45, %v1380_v46 }
 0x832   :  { %v5301_v48 = vpop.f32.mrb[22].mxu1  ;;  %5310 = vmatprep.mubr.msk.bf16.mxu0 %vm517_vm0, %v1399_v47 }
 0x833   :  { %v1390_v49 = vpop.f32.mrb[23].mxu1 }
 0x834   :  { %v1400_v50 = vpack.c.bf16 %v5301_v48, %v1390_v49 }
 0x836   :  { %5311 = vmatmul.mubr.msk.bf16.vlgmr.msra.gmra.mrb[16].mxu0 %vm517_vm0, %v1400_v50  ;;  %v4500_v50 = vld [vmem:[%s7283_s13] ss:$0 sm:$0xff] }
 0x837   :  { %5315 = vmatpush3.bf16.msra.mxu0 %v5708_v44  ;;  %5322 = vmatprep.mubr.msk.bf16.mxu0 %vm517_vm0, %v769_v21 }
 0x838   :  { %5316 = vmatprep.subr.bf16.mxu0 %v5709_v51 }
 0x83b   :  { %5317 = vmatpush3.bf16.msra.mxu0 %v5709_v51 }
 0x83c   :  { %5318 = vmatprep.subr.bf16.mxu0 %v5710_v52 }
 0x83f   :  { %5319 = vmatpush3.bf16.msra.mxu0 %v5710_v52 }
 0x840   :  { %5320 = vmatprep.subr.bf16.mxu0 %v5711_v53 }
 0x843   :  { %5321 = vmatpush3.bf16.msra.mxu0 %v5711_v53 }
 0x846   :  { %5323 = vmatmul.mubr.msk.bf16.vlgmr.msra.gmra.mrb[16].mxu0 %vm517_vm0, %v770_v24  ;;  %v5712_v24 = vld [vmem:[%s7285_s15] ss:$8 sps:$4 sm:$0xff]  }
 0x847   :  { %1760 = vmatpush1.bf16.msra.mxu1 %v5712_v24 }
 0x919   :  { %v5324_v20 = vpop.f32.mrb[16].mxu0 }
 0x91a   :  { %v1553_v21 = vpop.f32.mrb[17].mxu0  ;;  %v1577_v57 = vadd.f32 %v5324_v20, %v4499_v19 }
 0x91b   :  { %v1575_v54 = vadd.f32 %v4499_v19, %v1553_v21  ;;  %v5325_v55 = vpop.f32.mrb[18].mxu0  ;;  %v4501_v21 = vld [vmem:[%s7284_s14] ss:$0 sm:$0xff] }
 0x91c   :  { %v1556_v56 = vpop.f32.mrb[19].mxu0  ;;  %v1578_v9 = vadd.f32 %v5325_v55, %v4499_v19  ;;  %v1581_v22 = vadd.f32 %v1577_v57, %v6242_v2 }
 0x91d   :  { %v1576_v58 = vadd.f32 %v4499_v19, %v1556_v56  ;;  %v1579_v59 = vadd.f32 %v1575_v54, %v6233_v60  ;;  %v5717_v60 = vld [vmem:[%s7285_s15 + $0x14] ss:$8 sps:$4 sm:$0xff]  }
 0x91e   :  { %v1582_v23 = vadd.f32 %v1578_v9, %v6244_v3  ;;  %1761 = vmatprep.subr.bf16.mxu1 %v5717_v60  ;;  %v5736_v60 = vld [vmem:[%s7287_s17 + $0x40] sm:$0xff]  }
 0x91f   :  { %1585 = vadd.xlane.f32.xlu0 %v1579_v59  ;;  %v1580_v62 = vadd.f32 %v1576_v58, %v6235_v61  ;;  %v5715_v61 = vld [vmem:[%s7285_s15 + $0x10] ss:$8 sps:$4 sm:$0xff]   ;;  %4952 = vmatprep.subr.bf16.mxu0 %v5736_v60 }
 0x920   :  { %1762 = vmatpush1.bf16.msra.mxu1 %v5715_v61  ;;  %v5737_v61 = vld [vmem:[%s7287_s17] sm:$0xff]  }
 0x921   :  { %1587 = vadd.xlane.f32.xlu1 %v1580_v62  ;;  %1763 = vmatprep.subr.bf16.mxu1 %v5720_v18 }
 0x922   :  { %4953 = vmatpush3.bf16.msra.mxu0 %v5737_v61 }
 0x923   :  { %1589 = vadd.xlane.f32.xlu0 %v1581_v22 }
 0x924   :  { %1764 = vmatpush1.bf16.msra.mxu1 %v5718_v25  ;;  %v1667_v25 = vld [vmem:[%s7286_s16] sm:$0x3] }
 0x925   :  { %1591 = vadd.xlane.f32.xlu1 %v1582_v23  ;;  %1765 = vmatprep.subr.bf16.mxu1 %v5723_v26 }
 0x928   :  { %1766 = vmatpush1.bf16.msra.mxu1 %v5721_v4 }
 0x929   :  { %1767 = vmatprep.subr.bf16.mxu1 %v5726_v27 }
 0x92c   :  { %1768 = vmatpush1.bf16.msra.mxu1 %v5724_v28 }
 0x92d   :  { %1769 = vmatprep.subr.bf16.mxu1 %v5729_v29 }
 0x930   :  { %1770 = vmatpush1.bf16.msra.mxu1 %v5727_v30 }
 0x931   :  { %1771 = vmatprep.subr.bf16.mxu1 %v5732_v31 }
 0x934   :  { %1772 = vmatpush1.bf16.msra.mxu1 %v5730_v32 }
 0x935   :  { %1773 = vmatprep.subr.bf16.mxu1 %v5735_v34 }
 0x938   :  { %1774 = vmatpush1.bf16.msra.mxu1 %v5733_v33 }
 0x9ac   :  { %v1586_v2 = vpop.xlane.xlu0 %1585 }
 0x9ad   :  { %v1593_v3 = vmul.f32 0.0078125, %v1586_v2  ;;  %v5738_v2 = vld [vmem:[%s7287_s17 + $0x48] sm:$0xff]  }
 0x9ae   :  { %v1588_v63 = vpop.xlane.xlu1 %1587  ;;  %4954 = vmatprep.subr.bf16.mxu0 %v5738_v2 }
 0x9af   :  { %v1597_v0 = vsub.f32 %v1579_v59, %v1593_v3  ;;  %v1594_v5 = vmul.f32 0.0078125, %v1588_v63  ;;  %v5739_v3 = vld [vmem:[%s7287_s17 + $0x8] sm:$0xff]   ;;  %v5740_v63 = vld [vmem:[%s7287_s17 + $0x50] sm:$0xff]  }
 0x9b0   :  { %v1590_v6 = vpop.xlane.xlu0 %1589  ;;  %4955 = vmatpush3.bf16.msra.mxu0 %v5739_v3 }
 0x9b1   :  { %v1598_v7 = vsub.f32 %v1580_v62, %v1594_v5  ;;  %v1595_v8 = vmul.f32 0.0078125, %v1590_v6  ;;  %v1601_v15 = vmul.f32 %v1597_v0, %v1597_v0  ;;  %4956 = vmatprep.subr.bf16.mxu0 %v5740_v63  ;;  %v5742_v5 = vld [vmem:[%s7287_s17 + $0x58] sm:$0xff]  }
 0x9b2   :  { %v1592_v11 = vpop.xlane.xlu1 %1591  ;;  %v5743_v6 = vld [vmem:[%s7287_s17 + $0x18] sm:$0xff]  }
 0x9b3   :  { %v6520_v12 = vsub.f32 %v1581_v22, %v1595_v8  ;;  %v1596_v17 = vmul.f32 0.0078125, %v1592_v11  ;;  %1605 = vadd.xlane.f32.xlu0 %v1601_v15  ;;  %v1602_v13 = vmul.f32 %v1598_v7, %v1598_v7  ;;  %v5745_v8 = vld [vmem:[%s7287_s17 + $0x20] sm:$0xff]   ;;  %v5746_v15 = vld [vmem:[%s7287_s17 + $0x68] sm:$0xff]  }
 0x9b4   :  { %v5747_v11 = vld [vmem:[%s7287_s17 + $0x28] sm:$0xff]  }
 0x9b5   :  { %v1600_v14 = vsub.f32 %v1582_v23, %v1596_v17  ;;  %1607 = vadd.xlane.f32.xlu1 %v1602_v13  ;;  %v1603_v1 = vmul.f32 %v6520_v12, %v6520_v12  ;;  %v5749_v17 = vld [vmem:[%s7287_s17 + $0x30] sm:$0xff]   ;;  %v5750_v13 = vld [vmem:[%s7287_s17 + $0x78] sm:$0xff]  }
 0x9b7   :  { %1609 = vadd.xlane.f32.xlu0 %v1603_v1  ;;  %v1604_v16 = vmul.f32 %v1600_v14, %v1600_v14  ;;  %v1669_v1 = vlaneseq }
 0x9b9   :  { %1611 = vadd.xlane.f32.xlu1 %v1604_v16  ;;  %v6629_v16 = vshrl.u32 %v1669_v1, 7 }
 0x9bb   :  { %v1671_v18 = vsub.s32 0, %v6629_v16  ;;  %v1675_v26 = vsub.s32 1, %v6629_v16 }
 0x9bd   :  { %v1672_v4 = vrot.slane %v1667_v25, %v1671_v18  ;;  %v1676_v27 = vrot.slane %v1667_v25, %v1675_v26 }
 0xa40   :  { %v1606_v36 = vpop.xlane.xlu0 %1605 }
 0xa41   :  { %v1613_v38 = vmul.f32 0.0078125, %v1606_v36 }
 0xa42   :  { %v1608_v39 = vpop.xlane.xlu1 %1607 }
 0xa43   :  { %v1617_v40 = vadd.f32 1e-05, %v1613_v38  ;;  %v1614_v41 = vmul.f32 0.0078125, %v1608_v39 }
 0xa44   :  { %v1610_v42 = vpop.xlane.xlu0 %1609 }
 0xa45   :  { %5896 = vrsqrt.f32 %v1617_v40  ;;  %v1618_v43 = vadd.f32 1e-05, %v1614_v41  ;;  %v1615_v44 = vmul.f32 0.0078125, %v1610_v42 }
 0xa46   :  { %v1612_v45 = vpop.xlane.xlu1 %1611 }
 0xa47   :  { %5898 = vrsqrt.f32 %v1618_v43  ;;  %v1619_v46 = vadd.f32 1e-05, %v1615_v44  ;;  %v1616_v47 = vmul.f32 0.0078125, %v1612_v45 }
 0xa49   :  { %5900 = vrsqrt.f32 %v1619_v46  ;;  %v1620_v48 = vadd.f32 1e-05, %v1616_v47 }
 0xa4b   :  { %5902 = vrsqrt.f32 %v1620_v48 }
 0xa4f   :  { %v5897_v49 = vpop.eup %5896 }
 0xa50   :  { %v1625_v51 = vmul.f32 %v5897_v49, %v1597_v0  ;;  %v5741_v0 = vld [vmem:[%s7287_s17 + $0x10] sm:$0xff]  }
 0xa51   :  { %v5899_v52 = vpop.eup %5898  ;;  %4957 = vmatpush3.bf16.msra.mxu0 %v5741_v0 }
 0xa52   :  { %v1635_v53 = vmul.f32 %v4500_v50, %v1625_v51  ;;  %v1626_v19 = vmul.f32 %v5899_v52, %v1598_v7  ;;  %4958 = vmatprep.subr.bf16.mxu0 %v5742_v5  ;;  %v5744_v7 = vld [vmem:[%s7287_s17 + $0x60] sm:$0xff]  }
 0xa53   :  { %v5901_v20 = vpop.eup %5900 }
 0xa54   :  { %v1636_v54 = vmul.f32 %v4500_v50, %v1626_v19  ;;  %v6567_v56 = vadd.f32 %v4501_v21, %v1635_v53  ;;  %v1627_v58 = vmul.f32 %v5901_v20, %v6520_v12  ;;  %v5748_v12 = vld [vmem:[%s7287_s17 + $0x70] sm:$0xff]  }
 0xa55   :  { %v5903_v55 = vpop.eup %5902  ;;  %4959 = vmatpush3.bf16.msra.mxu0 %v5743_v6 }
 0xa56   :  { %v6569_v57 = vadd.f32 %v4501_v21, %v1636_v54  ;;  %v1628_v59 = vmul.f32 %v5903_v55, %v1600_v14  ;;  %v1637_v22 = vmul.f32 %v4500_v50, %v1627_v58  ;;  %4960 = vmatprep.subr.bf16.mxu0 %v5744_v7  ;;  %v5751_v14 = vld [vmem:[%s7287_s17 + $0x38] sm:$0xff]  }
 0xa58   :  { %v1649_v9 = vpack.c.bf16 %v6569_v57, %v6567_v56  ;;  %v1638_v62 = vmul.f32 %v4500_v50, %v1628_v59  ;;  %v6577_v24 = vadd.f32 %v4501_v21, %v1637_v22 }
 0xa59   :  { %4961 = vmatpush3.bf16.msra.mxu0 %v5745_v8 }
 0xa5a   :  { %1792 = vmatmul.mubr.bf16.vlgmr.msra.gmra.mrb[24].mxu1 %v1649_v9  ;;  %v6575_v23 = vadd.f32 %v4501_v21, %v1638_v62  ;;  %4962 = vmatprep.subr.bf16.mxu0 %v5746_v15 }
 0xa5b   :  { %1801 = vmatprep.mubr.bf16.mxu1 %v6020_v35 }
 0xa5c   :  { %v1650_v10 = vpack.c.bf16 %v6575_v23, %v6577_v24 }
 0xa5d   :  { %4963 = vmatpush3.bf16.msra.mxu0 %v5747_v11 }
 0xa5e   :  { %4964 = vmatprep.subr.bf16.mxu0 %v5748_v12 }
 0xa61   :  { %4965 = vmatpush3.bf16.msra.mxu0 %v5749_v17 }
 0xa62   :  { %1802 = vmatmul.mubr.bf16.gmra.mrb[28].mxu1 %v1650_v10  ;;  %4966 = vmatprep.subr.bf16.mxu0 %v5750_v13 }
 0xa65   :  { %4967 = vmatpush3.bf16.msra.mxu0 %v5751_v14 }
 0xb2d   :  { %v1793_v28 = vpop.f32.mrb[24].mxu1 }
 0xb2e   :  { %v6640_v29 = vadd.f32 %v1793_v28, %v1672_v4  ;;  %v1795_v30 = vpop.f32.mrb[25].mxu1 }
 0xb2f   :  { %v6642_v31 = vadd.f32 %v1795_v30, %v1676_v27  ;;  %v1797_v32 = vpop.f32.mrb[26].mxu1 }
 0xb30   :  { %v1820_v33 = vmul.f32 0.044715, %v6640_v29  ;;  %v6645_v34 = vadd.f32 %v1797_v32, %v1672_v4  ;;  %v1799_v36 = vpop.f32.mrb[27].mxu1 }
 0xb31   :  { %v1821_v38 = vmul.f32 0.044715, %v6642_v31  ;;  %v6648_v39 = vadd.f32 %v1799_v36, %v1676_v27 }
 0xb32   :  { %v1828_v40 = vmul.f32 %v1820_v33, %v6640_v29  ;;  %v1822_v41 = vmul.f32 0.044715, %v6645_v34 }
 0xb33   :  { %v1829_v42 = vmul.f32 %v1821_v38, %v6642_v31  ;;  %v1823_v43 = vmul.f32 0.044715, %v6648_v39 }
 0xb34   :  { %v1836_v44 = vmul.f32 %v1828_v40, %v6640_v29  ;;  %v1830_v45 = vmul.f32 %v1822_v41, %v6645_v34  ;;  %v1812_v41 = vmul.f32 0.5, %v6640_v29 }
 0xb35   :  { %v1837_v46 = vmul.f32 %v1829_v42, %v6642_v31  ;;  %v1831_v47 = vmul.f32 %v1823_v43, %v6648_v39  ;;  %v1803_v48 = vpop.f32.mrb[28].mxu1  ;;  %v1814_v42 = vmul.f32 0.5, %v6645_v34 }
 0xb36   :  { %v1844_v49 = vadd.f32 %v1836_v44, %v6640_v29  ;;  %v1838_v50 = vmul.f32 %v1830_v45, %v6645_v34  ;;  %v6660_v51 = vadd.f32 %v1803_v48, %v1672_v4  ;;  %v1805_v52 = vpop.f32.mrb[29].mxu1  ;;  %v1813_v44 = vmul.f32 0.5, %v6642_v31 }
 0xb37   :  { %v1839_v53 = vmul.f32 %v1831_v47, %v6648_v39  ;;  %v6663_v19 = vadd.f32 %v1805_v52, %v1676_v27  ;;  %v1807_v20 = vpop.f32.mrb[30].mxu1  ;;  %v1845_v21 = vadd.f32 %v1837_v46, %v6642_v31  ;;  %v1815_v45 = vmul.f32 0.5, %v6648_v39 }
 0xb38   :  { %v1852_v54 = vmul.f32 0.7978846, %v1844_v49  ;;  %v1846_v55 = vadd.f32 %v1838_v50, %v6645_v34  ;;  %v1824_v58 = vmul.f32 0.044715, %v6660_v51  ;;  %v1808_v59 = vadd.f32 %v1807_v20, %v1672_v4  ;;  %v1809_v9 = vpop.f32.mrb[31].mxu1 }
 0xb39   :  { %v1825_v62 = vmul.f32 0.044715, %v6663_v19  ;;  %v1810_v22 = vadd.f32 %v1809_v9, %v1676_v27  ;;  %v1847_v10 = vadd.f32 %v1839_v53, %v6648_v39  ;;  %v1853_v60 = vmul.f32 0.7978846, %v1845_v21 }
 0xb3a   :  { %5904 = vtanh.f32 %v1852_v54  ;;  %v1854_v61 = vmul.f32 0.7978846, %v1846_v55  ;;  %v1832_v2 = vmul.f32 %v1824_v58, %v6660_v51  ;;  %v1826_v3 = vmul.f32 0.044715, %v1808_v59 }
 0xb3b   :  { %v1833_v63 = vmul.f32 %v1825_v62, %v6663_v19  ;;  %v1827_v0 = vmul.f32 0.044715, %v1810_v22  ;;  %v1855_v5 = vmul.f32 0.7978846, %v1847_v10  ;;  %5906 = vtanh.f32 %v1853_v60 }
 0xb3c   :  { %5908 = vtanh.f32 %v1854_v61  ;;  %v1840_v6 = vmul.f32 %v1832_v2, %v6660_v51  ;;  %v1834_v7 = vmul.f32 %v1826_v3, %v1808_v59  ;;  %v1816_v34 = vmul.f32 0.5, %v6660_v51 }
 0xb3d   :  { %v1841_v8 = vmul.f32 %v1833_v63, %v6663_v19  ;;  %v1835_v15 = vmul.f32 %v1827_v0, %v1810_v22  ;;  %5910 = vtanh.f32 %v1855_v5  ;;  %v1818_v31 = vmul.f32 0.5, %v1808_v59 }
 0xb3e   :  { %v1842_v11 = vmul.f32 %v1834_v7, %v1808_v59  ;;  %v1848_v12 = vadd.f32 %v1840_v6, %v6660_v51  ;;  %v1817_v39 = vmul.f32 0.5, %v6663_v19  ;;  %v1819_v62 = vmul.f32 0.5, %v1810_v22  ;;  %v4518_v6 = vld [vmem:[%s7288_s18] ss:$0 sm:$0xff] }
 0xb3f   :  { %v1843_v17 = vmul.f32 %v1835_v15, %v1810_v22  ;;  %v1849_v13 = vadd.f32 %v1841_v8, %v6663_v19 }
 0xb40   :  { %v1850_v14 = vadd.f32 %v1842_v11, %v1808_v59  ;;  %v1856_v1 = vmul.f32 0.7978846, %v1848_v12 }
 0xb41   :  { %v1851_v25 = vadd.f32 %v1843_v17, %v1810_v22  ;;  %v1857_v4 = vmul.f32 0.7978846, %v1849_v13 }
 0xb42   :  { %v1858_v27 = vmul.f32 0.7978846, %v1850_v14  ;;  %5912 = vtanh.f32 %v1856_v1 }
 0xb43   :  { %v1859_v28 = vmul.f32 0.7978846, %v1851_v25  ;;  %5914 = vtanh.f32 %v1857_v4 }
 0xb44   :  { %v5905_v30 = vpop.eup %5904  ;;  %5916 = vtanh.f32 %v1858_v27 }
 0xb45   :  { %v5907_v32 = vpop.eup %5906  ;;  %v1868_v33 = vadd.f32 1.0, %v5905_v30  ;;  %5918 = vtanh.f32 %v1859_v28 }
 0xb46   :  { %v5909_v36 = vpop.eup %5908  ;;  %v1869_v38 = vadd.f32 1.0, %v5907_v32 }
 0xb47   :  { %v5911_v40 = vpop.eup %5910  ;;  %v1870_v43 = vadd.f32 1.0, %v5909_v36  ;;  %v1876_v47 = vmul.f32 %v1868_v33, %v1812_v41 }
 0xb48   :  { %v1871_v46 = vadd.f32 1.0, %v5911_v40  ;;  %v1877_v49 = vmul.f32 %v1869_v38, %v1813_v44 }
 0xb49   :  { %v1878_v48 = vmul.f32 %v1870_v43, %v1814_v42 }
 0xb4a   :  { %v1879_v50 = vmul.f32 %v1871_v46, %v1815_v45 }
 0xb4b   :  { %v1884_v52 = vpack.c.bf16 %v1878_v48, %v1876_v47 }
 0xb4c   :  { %v5913_v53 = vpop.eup %5912  ;;  %v1885_v20 = vpack.c.bf16 %v1879_v50, %v1877_v49  ;;  %v5752_v49 = vld [vmem:[%s7308_s28 + $0x80] sm:$0xff]  }
 0xb4d   :  { %v5915_v21 = vpop.eup %5914  ;;  %v1872_v54 = vadd.f32 1.0, %v5913_v53  ;;  %v5753_v50 = vld [vmem:[%s7309_s0 + $0x80] sm:$0xff]   ;;  %5326 = vmatprep.subr.bf16.mxu1 %v5752_v49  ;;  %v5755_v53 = vld [vmem:[%s7309_s0 + $0x88] sm:$0xff]  }
 0xb4e   :  { %v5917_v55 = vpop.eup %5916  ;;  %2055 = vmatprep.mubr.bf16.mxu0 %v1885_v20  ;;  %v1873_v29 = vadd.f32 1.0, %v5915_v21  ;;  %5327 = vmatpush3.bf16.msra.mxu1 %v5752_v49  ;;  %v5756_v20 = vld [vmem:[%s7308_s28 + $0x90] sm:$0xff]   ;;  %v4580_v49 = vld [vmem:[%s7278_s8 + $0x2] ss:$0 sm:$0xff] }
 0xb4f   :  { %v5919_v58 = vpop.eup %5918  ;;  %2056 = vmatmul.mubr.bf16.vlgmr.msra.gmra.mrb[20].mxu0 %v1884_v52  ;;  %v1874_v9 = vadd.f32 1.0, %v5917_v55  ;;  %v1880_v60 = vmul.f32 %v1872_v54, %v1816_v34  ;;  %5346 = vmatprep.subr.bf16.mxu0 %v5753_v50  ;;  %v5754_v52 = vld [vmem:[%s7308_s28 + $0x88] sm:$0xff]   ;;  %v5757_v21 = vld [vmem:[%s7309_s0 + $0x90] sm:$0xff]   ;;  %v5758_v54 = vld [vmem:[%s7308_s28 + $0x98] sm:$0xff]  }
 0xb50   :  { %v1875_v10 = vadd.f32 1.0, %v5919_v58  ;;  %v1881_v2 = vmul.f32 %v1873_v29, %v1817_v39  ;;  %5347 = vmatpush3.bf16.msra.mxu0 %v5753_v50  ;;  %5328 = vmatprep.subr.bf16.mxu1 %v5754_v52  ;;  %v5759_v55 = vld [vmem:[%s7309_s0 + $0x98] sm:$0xff]   ;;  %v5760_v29 = vld [vmem:[%s7308_s28 + $0xa0] sm:$0xff]   ;;  %v5762_v34 = vld [vmem:[%s7308_s28 + $0xa8] sm:$0xff]  }
 0xb51   :  { %v1882_v61 = vmul.f32 %v1874_v9, %v1818_v31  ;;  %5348 = vmatprep.subr.bf16.mxu0 %v5755_v53  ;;  %v5761_v58 = vld [vmem:[%s7309_s0 + $0xa0] sm:$0xff]   ;;  %v5763_v31 = vld [vmem:[%s7309_s0 + $0xa8] sm:$0xff]   ;;  %v5764_v9 = vld [vmem:[%s7308_s28 + $0xb0] sm:$0xff]  }
 0xb52   :  { %v1883_v3 = vmul.f32 %v1875_v10, %v1819_v62  ;;  %5329 = vmatpush3.bf16.msra.mxu1 %v5754_v52  ;;  %v5765_v39 = vld [vmem:[%s7309_s0 + $0xb0] sm:$0xff]   ;;  %v5766_v62 = vld [vmem:[%s7308_s28 + $0xb8] sm:$0xff]  }
 0xb53   :  { %v1886_v63 = vpack.c.bf16 %v1882_v61, %v1880_v60  ;;  %5330 = vmatprep.subr.bf16.mxu1 %v5756_v20  ;;  %v5767_v10 = vld [vmem:[%s7309_s0 + $0xb8] sm:$0xff]   ;;  %v5768_v60 = vld [vmem:[%s7279_s9 + $0x80] sm:$0xff]  }
 0xb54   :  { %v1887_v0 = vpack.c.bf16 %v1883_v3, %v1881_v2  ;;  %5349 = vmatpush3.bf16.msra.mxu0 %v5755_v53 }
 0xb55   :  { %5350 = vmatprep.subr.bf16.mxu0 %v5757_v21 }
 0xb56   :  { %2063 = vmatprep.mubr.bf16.mxu0 %v1887_v0  ;;  %5331 = vmatpush3.bf16.msra.mxu1 %v5756_v20 }
 0xb57   :  { %2064 = vmatmul.mubr.bf16.gmra.mrb[24].mxu0 %v1886_v63  ;;  %5332 = vmatprep.subr.bf16.mxu1 %v5758_v54 }
 0xb58   :  { %5351 = vmatpush3.bf16.msra.mxu0 %v5757_v21 }
 0xb59   :  { %5352 = vmatprep.subr.bf16.mxu0 %v5759_v55 }
 0xb5a   :  { %5333 = vmatpush3.bf16.msra.mxu1 %v5758_v54 }
 0xb5b   :  { %5334 = vmatprep.subr.bf16.mxu1 %v5760_v29 }
 0xb5c   :  { %5353 = vmatpush3.bf16.msra.mxu0 %v5759_v55 }
 0xb5d   :  { %5354 = vmatprep.subr.bf16.mxu0 %v5761_v58 }
 0xb5e   :  { %5335 = vmatpush3.bf16.msra.mxu1 %v5760_v29 }
 0xb5f   :  { %5336 = vmatprep.subr.bf16.mxu1 %v5762_v34 }
 0xb60   :  { %5355 = vmatpush3.bf16.msra.mxu0 %v5761_v58 }
 0xb61   :  { %5356 = vmatprep.subr.bf16.mxu0 %v5763_v31 }
 0xb62   :  { %5337 = vmatpush3.bf16.msra.mxu1 %v5762_v34 }
 0xb63   :  { %5338 = vmatprep.subr.bf16.mxu1 %v5764_v9 }
 0xb64   :  { %5357 = vmatpush3.bf16.msra.mxu0 %v5763_v31 }
 0xb65   :  { %5358 = vmatprep.subr.bf16.mxu0 %v5765_v39 }
 0xb66   :  { %5339 = vmatpush3.bf16.msra.mxu1 %v5764_v9 }
 0xb67   :  { %5340 = vmatprep.subr.bf16.mxu1 %v5766_v62 }
 0xb68   :  { %5359 = vmatpush3.bf16.msra.mxu0 %v5765_v39 }
 0xb69   :  { %5360 = vmatprep.subr.bf16.mxu0 %v5767_v10 }
 0xb6a   :  { %5341 = vmatpush3.bf16.msra.mxu1 %v5766_v62 }
 0xb6b   :  { %5366 = vmatprep.subr.bf16.mxu1 %v5768_v60 }
 0xb6c   :  { %5361 = vmatpush3.bf16.msra.mxu0 %v5767_v10  ;;  %v5776_v10 = vld [vmem:[%s7309_s0 + $0xc0] sm:$0xff]  }
 0xc22   :  { %v4968_v5 = vpop.f32.mrb[20].mxu0 }
 0xc23   :  { %v4969_v51 = vpop.f32.mrb[21].mxu0 }
 0xc24   :  { %v4970_v59 = vadd.f32 %v4969_v51, %v4968_v5  ;;  %v4971_v7 = vpop.f32.mrb[22].mxu0 }
 0xc25   :  { %v4972_v8 = vpop.f32.mrb[23].mxu0 }
 0xc26   :  { %v2058_v19 = vadd.f32 %v4970_v59, %v4518_v6  ;;  %v4973_v22 = vadd.f32 %v4972_v8, %v4971_v7 }
 0xc28   :  { %v2061_v15 = vadd.f32 %v4973_v22, %v4518_v6  ;;  %v2072_v11 = vadd.f32 %v2058_v19, %v6567_v56 }
 0xc2a   :  { %2078 = vadd.xlane.f32.xlu0 %v2072_v11  ;;  %v4974_v12 = vpop.f32.mrb[24].mxu0  ;;  %v2073_v17 = vadd.f32 %v2061_v15, %v6569_v57  ;;  %v4535_v15 = vld [vmem:[%s7289_s19] ss:$0 sm:$0xff] }
 0xc2b   :  { %v4975_v13 = vpop.f32.mrb[25].mxu0 }
 0xc2c   :  { %v4976_v14 = vadd.f32 %v4975_v13, %v4974_v12  ;;  %2080 = vadd.xlane.f32.xlu1 %v2073_v17  ;;  %v4977_v1 = vpop.f32.mrb[26].mxu0 }
 0xc2d   :  { %v4978_v25 = vpop.f32.mrb[27].mxu0 }
 0xc2e   :  { %v2066_v4 = vadd.f32 %v4976_v14, %v4518_v6  ;;  %v4979_v27 = vadd.f32 %v4978_v25, %v4977_v1  ;;  %v4536_v14 = vld [vmem:[%s7290_s20] ss:$0 sm:$0xff] }
 0xc30   :  { %v2069_v28 = vadd.f32 %v4979_v27, %v4518_v6  ;;  %v2074_v30 = vadd.f32 %v2066_v4, %v6577_v24 }
 0xc32   :  { %2082 = vadd.xlane.f32.xlu0 %v2074_v30  ;;  %v2075_v32 = vadd.f32 %v2069_v28, %v6575_v23 }
 0xc34   :  { %2084 = vadd.xlane.f32.xlu1 %v2075_v32 }
 0xcb7   :  { %v2079_v33 = vpop.xlane.xlu0 %2078 }
 0xcb8   :  { %v2086_v56 = vmul.f32 0.0078125, %v2079_v33 }
 0xcb9   :  { %v2081_v36 = vpop.xlane.xlu1 %2080 }
 0xcba   :  { %v6689_v38 = vsub.f32 %v2072_v11, %v2086_v56  ;;  %v2087_v57 = vmul.f32 0.0078125, %v2081_v36 }
 0xcbc   :  { %v6691_v40 = vsub.f32 %v2073_v17, %v2087_v57  ;;  %v2094_v41 = vmul.f32 %v6689_v38, %v6689_v38 }
 0xcbe   :  { %2098 = vadd.xlane.f32.xlu0 %v2094_v41  ;;  %v2095_v42 = vmul.f32 %v6691_v40, %v6691_v40  ;;  %v5769_v41 = vld [vmem:[%s7279_s9 + $0x88] sm:$0xff]  }
 0xcbf   :  { %v2083_v24 = vpop.xlane.xlu0 %2082 }
 0xcc0   :  { %v2088_v43 = vmul.f32 0.0078125, %v2083_v24  ;;  %2100 = vadd.xlane.f32.xlu1 %v2095_v42  ;;  %v5770_v42 = vld [vmem:[%s7279_s9 + $0x90] sm:$0xff]   ;;  %v5771_v24 = vld [vmem:[%s7279_s9 + $0x98] sm:$0xff]  }
 0xcc1   :  { %v2085_v23 = vpop.xlane.xlu1 %2084 }
 0xcc2   :  { %v6697_v44 = vsub.f32 %v2074_v30, %v2088_v43  ;;  %v2089_v45 = vmul.f32 0.0078125, %v2085_v23  ;;  %v5772_v43 = vld [vmem:[%s7279_s9 + $0xa0] sm:$0xff]   ;;  %v5773_v23 = vld [vmem:[%s7279_s9 + $0xa8] sm:$0xff]  }
 0xcc4   :  { %v6699_v46 = vsub.f32 %v2075_v32, %v2089_v45  ;;  %v2096_v47 = vmul.f32 %v6697_v44, %v6697_v44  ;;  %v5775_v45 = vld [vmem:[%s7279_s9 + $0xb8] sm:$0xff]  }
 0xcc6   :  { %2102 = vadd.xlane.f32.xlu0 %v2096_v47  ;;  %v2097_v48 = vmul.f32 %v6699_v46, %v6699_v46 }
 0xcc8   :  { %2104 = vadd.xlane.f32.xlu1 %v2097_v48 }
 0xd4b   :  { %v2099_v61 = vpop.xlane.xlu0 %2098 }
 0xd4c   :  { %v2106_v2 = vmul.f32 0.0078125, %v2099_v61 }
 0xd4d   :  { %v2101_v3 = vpop.xlane.xlu1 %2100 }
 0xd4e   :  { %v2110_v63 = vadd.f32 1e-05, %v2106_v2  ;;  %v2107_v0 = vmul.f32 0.0078125, %v2101_v3 }
 0xd50   :  { %5920 = vrsqrt.f32 %v2110_v63  ;;  %v2111_v5 = vadd.f32 1e-05, %v2107_v0  ;;  %v5777_v63 = vld [vmem:[%s7309_s0 + $0xc8] sm:$0xff]  }
 0xd52   :  { %5922 = vrsqrt.f32 %v2111_v5 }
 0xd53   :  { %v2103_v6 = vpop.xlane.xlu0 %2102 }
 0xd54   :  { %v2108_v51 = vmul.f32 0.0078125, %v2103_v6  ;;  %v5778_v6 = vld [vmem:[%s7309_s0 + $0xd0] sm:$0xff]  }
 0xd55   :  { %v2105_v59 = vpop.xlane.xlu1 %2104 }
 0xd56   :  { %v2112_v7 = vadd.f32 1e-05, %v2108_v51  ;;  %v2109_v8 = vmul.f32 0.0078125, %v2105_v59  ;;  %v5779_v51 = vld [vmem:[%s7309_s0 + $0xd8] sm:$0xff]  }
 0xd58   :  { %5924 = vrsqrt.f32 %v2112_v7  ;;  %v2113_v19 = vadd.f32 1e-05, %v2109_v8  ;;  %v4606_v7 = vld [vmem:[%s7280_s10 + $0x2] ss:$0 sm:$0xff] }
 0xd5a   :  { %v5921_v22 = vpop.eup %5920  ;;  %5926 = vrsqrt.f32 %v2113_v19 }
 0xd5b   :  { %v2118_v11 = vmul.f32 %v5921_v22, %v6689_v38  ;;  %v5780_v22 = vld [vmem:[%s7309_s0 + $0xe0] sm:$0xff]  }
 0xd5c   :  { %v5923_v12 = vpop.eup %5922 }
 0xd5d   :  { %v2128_v17 = vmul.f32 %v4535_v15, %v2118_v11  ;;  %v2119_v13 = vmul.f32 %v5923_v12, %v6691_v40 }
 0xd5f   :  { %v2129_v1 = vmul.f32 %v4535_v15, %v2119_v13  ;;  %v6764_v25 = vadd.f32 %v4536_v14, %v2128_v17 }
 0xd61   :  { %v6766_v4 = vadd.f32 %v4536_v14, %v2129_v1 }
 0xd62   :  { %v5925_v27 = vpop.eup %5924 }
 0xd63   :  { %v2120_v28 = vmul.f32 %v5925_v27, %v6697_v44  ;;  %v6771_v30 = vpack.c.bf16 %v6766_v4, %v6764_v25  ;;  %v5774_v44 = vld [vmem:[%s7279_s9 + $0xb0] sm:$0xff]   ;;  %v5781_v27 = vld [vmem:[%s7309_s0 + $0xe8] sm:$0xff]  }
 0xd64   :  { %v5927_v32 = vpop.eup %5926 }
 0xd65   :  { %v2130_v33 = vmul.f32 %v4535_v15, %v2120_v28  ;;  %v2121_v56 = vmul.f32 %v5927_v32, %v6699_v46  ;;  %5342 = vmatprep.mubr.bf16.mxu1 %v6771_v30  ;;  %5362 = vmatprep.mubr.bf16.mxu0 %v6771_v30  ;;  %v4554_v46 = vld [vmem:[%s7312_s25 + $0x2] ss:$0 sm:$0xff]  ;;  %v5782_v28 = vld [vmem:[%s7309_s0 + $0xf0] sm:$0xff]   ;;  %v5783_v32 = vld [vmem:[%s7309_s0 + $0xf8] sm:$0xff]  }
 0xd67   :  { %v2131_v36 = vmul.f32 %v4535_v15, %v2121_v56  ;;  %v6776_v38 = vadd.f32 %v4536_v14, %v2130_v33  ;;  %v6859_v56 = vld [vmem:[%s7315_s3 + $0x8] sm:$0xff] }
 0xd69   :  { %v6778_v57 = vadd.f32 %v4536_v14, %v2131_v36 }
 0xd6b   :  { %v6782_v40 = vpack.c.bf16 %v6778_v57, %v6776_v38 }
 0xd6d   :  { %5343 = vmatmul.mubr.bf16.vlgmr.msra.gmra.mrb[32].mxu1 %v6782_v40  ;;  %5363 = vmatmul.mubr.bf16.vlgmr.msra.gmra.mrb[28].mxu0 %v6782_v40 }
 0xd6e   :  { %5367 = vmatpush3.bf16.msra.mxu1 %v5768_v60  ;;  %5382 = vmatprep.mubr.bf16.mxu1 %v6771_v30 }
 0xd6f   :  { %5368 = vmatprep.subr.bf16.mxu1 %v5769_v41 }
 0xd72   :  { %5369 = vmatpush3.bf16.msra.mxu1 %v5769_v41 }
 0xd73   :  { %5370 = vmatprep.subr.bf16.mxu1 %v5770_v42 }
 0xd76   :  { %5371 = vmatpush3.bf16.msra.mxu1 %v5770_v42  ;;  %v6865_v42 = vld [vmem:[%s7315_s3] sm:$0xff] }
 0xd77   :  { %5372 = vmatprep.subr.bf16.mxu1 %v5771_v24 }
 0xd7a   :  { %5373 = vmatpush3.bf16.msra.mxu1 %v5771_v24 }
 0xd7b   :  { %5374 = vmatprep.subr.bf16.mxu1 %v5772_v43 }
 0xd7e   :  { %5375 = vmatpush3.bf16.msra.mxu1 %v5772_v43 }
 0xd7f   :  { %5376 = vmatprep.subr.bf16.mxu1 %v5773_v23 }
 0xd82   :  { %5377 = vmatpush3.bf16.msra.mxu1 %v5773_v23 }
 0xd83   :  { %5378 = vmatprep.subr.bf16.mxu1 %v5774_v44 }
 0xd86   :  { %5379 = vmatpush3.bf16.msra.mxu1 %v5774_v44 }
 0xd87   :  { %5380 = vmatprep.subr.bf16.mxu1 %v5775_v45 }
 0xd8a   :  { %5381 = vmatpush3.bf16.msra.mxu1 %v5775_v45  ;;  %v6873_v45 = vld [vmem:[%s7315_s3 + $0x18] sm:$0xff] }
 0xd8d   :  { %5383 = vmatmul.mubr.bf16.vlgmr.msra.gmra.mrb[36].mxu1 %v6782_v40 }
 0xe40   :  { %v5344_v47 = vpop.f32.mrb[32].mxu1  ;;  %v5364_v48 = vpop.f32.mrb[28].mxu0 }
 0xe41   :  { %v2251_v50 = vpop.f32.mrb[33].mxu1  ;;  %v2377_v52 = vpop.f32.mrb[29].mxu0  ;;  %v2386_v54 = vadd.f32 %v5364_v48, %v4580_v49  ;;  %v2260_v61 = vadd.f32 %v5344_v47, %v4554_v46  ;;  %v6879_v48 = vld [vmem:[%s7315_s3 + $0x10] sm:$0xff] }
 0xe42   :  { %v2252_v53 = vadd.f32 %v4554_v46, %v2251_v50  ;;  %v5345_v20 = vpop.f32.mrb[34].mxu1  ;;  %v5365_v21 = vpop.f32.mrb[30].mxu0  ;;  %v2378_v31 = vadd.f32 %v4580_v49, %v2377_v52 }
 0xe43   :  { %v2389_v55 = vadd.f32 %v5365_v21, %v4580_v49  ;;  %v2254_v29 = vpop.f32.mrb[35].mxu1  ;;  %v2380_v58 = vpop.f32.mrb[31].mxu0  ;;  %v2263_v2 = vadd.f32 %v5345_v20, %v4554_v46  ;;  %v2268_v0 = vmul.f32 0.125, %v2260_v61  ;;  %v4678_v20 = vld [vmem:[%s7278_s8 + $0x3] ss:$0 sm:$0xff] }
 0xe44   :  { %v2266_v34 = vmul.f32 0.125, %v2252_v53  ;;  %v2381_v9 = vadd.f32 %v4580_v49, %v2380_v58  ;;  %v2255_v60 = vadd.f32 %v4554_v46, %v2254_v29 }
 0xe45   :  { %v5603_v39 = vpack.c.bf16 %v2389_v55, %v2386_v54  ;;  %v2269_v5 = vmul.f32 0.125, %v2263_v2 }
 0xe46   :  { %v5597_v62 = vpack.c.bf16 %v2381_v9, %v2378_v31  ;;  %5394 = vmatprep.mubr.msk.f32.mxu0 %vm517_vm0, %v2266_v34  ;;  %v2267_v3 = vmul.f32 0.125, %v2255_v60 }
 0xe48   :  { %5599 = vmatprep.subr.msk.bf16.mxu0 %vm6311_vm1, %v5597_v62 }
 0xe49   :  { %5602 = vmatpush3.bf16.xpose.msk.msra.mxu0 %vm6311_vm1, %v5597_v62 }
 0xe4a   :  { %5605 = vmatprep.subr.msk.bf16.mxu0 %vm6311_vm1, %v5603_v39 }
 0xe51   :  { %5608 = vmatpush3.bf16.xpose.msk.msra.mxu0 %vm6311_vm1, %v5603_v39 }
 0xe52   :  { %5434 = vmatprep.subr.bf16.mxu0 %v5776_v10 }
 0xe58   :  { %5395 = vmatmul.mubr.msk.f32.vlgmr.msra.gmra.mrb[32].mxu0 %vm517_vm0, %v2267_v3 }
 0xe59   :  { %5397 = vmatprep.mubr.msk.f32.mxu0 %vm517_vm0, %v2268_v0  ;;  %5435 = vmatpush3.bf16.msra.mxu0 %v5776_v10 }
 0xe5a   :  { %5436 = vmatprep.subr.bf16.mxu0 %v5777_v63 }
 0xe5c   :  { %5398 = vmatmul.mubr.msk.f32.gmra.mrb[34].mxu0 %vm517_vm0, %v2269_v5 }
 0xe5d   :  { %5437 = vmatpush3.bf16.msra.mxu0 %v5777_v63  ;;  %5450 = vmatprep.mubr.bf16.mxu0 %v6771_v30 }
 0xe5e   :  { %5438 = vmatprep.subr.bf16.mxu0 %v5778_v6 }
 0xe60   :  { %v5384_v59 = vpop.f32.mrb[36].mxu1 }
 0xe61   :  { %v2499_v8 = vpop.f32.mrb[37].mxu1  ;;  %5439 = vmatpush3.bf16.msra.mxu0 %v5778_v6  ;;  %v2508_v15 = vadd.f32 %v5384_v59, %v4606_v7 }
 0xe62   :  { %v5385_v19 = vpop.f32.mrb[38].mxu1  ;;  %5440 = vmatprep.subr.bf16.mxu0 %v5779_v51  ;;  %v2500_v17 = vadd.f32 %v4606_v7, %v2499_v8 }
 0xe63   :  { %v2511_v11 = vadd.f32 %v5385_v19, %v4606_v7  ;;  %v2502_v12 = vpop.f32.mrb[39].mxu1 }
 0xe64   :  { %v2503_v13 = vadd.f32 %v4606_v7, %v2502_v12 }
 0xe65   :  { %v5613_v14 = vpack.c.bf16 %v2511_v11, %v2508_v15  ;;  %5441 = vmatpush3.bf16.msra.mxu0 %v5779_v51 }
 0xe66   :  { %v5609_v1 = vpack.c.bf16 %v2503_v13, %v2500_v17  ;;  %5442 = vmatprep.subr.bf16.mxu0 %v5780_v22  ;;  %v5784_v17 = vld [vmem:[%s7308_s28 + $0xc0] sm:$0xff]  }
 0xe68   :  { %5610 = vmatprep.subr.bf16.mxu1 %v5609_v1 }
 0xe69   :  { %5612 = vmatpush3.bf16.msra.mxu1 %v5609_v1  ;;  %5443 = vmatpush3.bf16.msra.mxu0 %v5780_v22 }
 0xe6a   :  { %5614 = vmatprep.subr.bf16.mxu1 %v5613_v14  ;;  %5444 = vmatprep.subr.bf16.mxu0 %v5781_v27 }
 0xe6d   :  { %5616 = vmatpush3.bf16.msra.mxu1 %v5613_v14  ;;  %5445 = vmatpush3.bf16.msra.mxu0 %v5781_v27 }
 0xe6e   :  { %5446 = vmatprep.subr.bf16.mxu0 %v5782_v28  ;;  %5414 = vmatprep.subr.bf16.mxu1 %v5784_v17 }
 0xe71   :  { %5447 = vmatpush3.bf16.msra.mxu0 %v5782_v28 }
 0xe72   :  { %5448 = vmatprep.subr.bf16.mxu0 %v5783_v32 }
 0xe75   :  { %5449 = vmatpush3.bf16.msra.mxu0 %v5783_v32 }
 0xe78   :  { %5451 = vmatmul.mubr.bf16.vlgmr.msra.gmra.mrb[36].mxu0 %v6782_v40 }
 0xf2b   :  { %v5396_v33 = vpop.f32.mrb[32].mxu0 }
 0xf2c   :  { %v2610_v36 = vadd.f32 %v6859_v56, %v5396_v33  ;;  %v2604_v41 = vpop.f32.mrb[33].mxu0 }
 0xf2d   :  { %v2605_v24 = vadd.f32 %v6865_v42, %v2604_v41  ;;  %v5785_v41 = vld [vmem:[%s7308_s28 + $0xc8] sm:$0xff]  }
 0xf2e   :  { %v2626_v43 = vsel %vm627_vm2, %v2610_v36, -inf }
 0xf2f   :  { %2627 = vmax.xlane.f32.xlu1 %v2626_v43  ;;  %v5399_v23 = vpop.f32.mrb[34].mxu0  ;;  %v2623_v44 = vsel %vm627_vm2, %v2605_v24, -inf }
 0xf30   :  { %v2620_v46 = vadd.f32 %v6873_v45, %v5399_v23  ;;  %v2614_v47 = vpop.f32.mrb[35].mxu0  ;;  %2624 = vmax.xlane.f32.xlu0 %v2623_v44 }
 0xf31   :  { %v2615_v49 = vadd.f32 %v6879_v48, %v2614_v47  ;;  %v5787_v47 = vld [vmem:[%s7308_s28 + $0xd8] sm:$0xff]  }
 0xf32   :  { %v2632_v50 = vsel %vm627_vm2, %v2620_v46, -inf }
 0xf33   :  { %2633 = vmax.xlane.f32.xlu1 %v2632_v50  ;;  %v2629_v52 = vsel %vm627_vm2, %v2615_v49, -inf  ;;  %v5789_v50 = vld [vmem:[%s7308_s28 + $0xe8] sm:$0xff]  }
 0xf34   :  { %2630 = vmax.xlane.f32.xlu0 %v2629_v52  ;;  %v5790_v52 = vld [vmem:[%s7308_s28 + $0xf0] sm:$0xff]  }
 0xf4b   :  { %v5452_v53 = vpop.f32.mrb[36].mxu0 }
 0xf4c   :  { %v3008_v21 = vpop.f32.mrb[37].mxu0  ;;  %v3017_v55 = vadd.f32 %v5452_v53, %v4678_v20  ;;  %v5791_v53 = vld [vmem:[%s7308_s28 + $0xf8] sm:$0xff]  }
 0xf4d   :  { %v5453_v54 = vpop.f32.mrb[38].mxu0  ;;  %v3009_v34 = vadd.f32 %v4678_v20, %v3008_v21  ;;  %v5793_v21 = vld [vmem:[%s7279_s9 + $0xc8] sm:$0xff]  }
 0xf4e   :  { %v3020_v29 = vadd.f32 %v5453_v54, %v4678_v20  ;;  %v3011_v58 = vpop.f32.mrb[39].mxu0  ;;  %v5794_v54 = vld [vmem:[%s7279_s9 + $0xd0] sm:$0xff]  }
 0xf4f   :  { %v3012_v31 = vadd.f32 %v4678_v20, %v3011_v58  ;;  %v5792_v20 = vld [vmem:[%s7279_s9 + $0xc0] sm:$0xff]   ;;  %v5798_v58 = vld [vmem:[%s7279_s9 + $0xf0] sm:$0xff]  }
 0xf50   :  { %v5623_v9 = vpack.c.bf16 %v3020_v29, %v3017_v55  ;;  %v5795_v55 = vld [vmem:[%s7279_s9 + $0xd8] sm:$0xff]   ;;  %v5796_v29 = vld [vmem:[%s7279_s9 + $0xe0] sm:$0xff]  }
 0xf51   :  { %v5617_v39 = vpack.c.bf16 %v3012_v31, %v3009_v34  ;;  %v5799_v34 = vld [vmem:[%s7279_s9 + $0xf8] sm:$0xff]  }
 0xf53   :  { %5619 = vmatprep.subr.msk.bf16.mxu0 %vm6311_vm1, %v5617_v39 }
 0xf54   :  { %5622 = vmatpush3.bf16.xpose.msk.msra.mxu0 %vm6311_vm1, %v5617_v39 }
 0xf55   :  { %5625 = vmatprep.subr.msk.bf16.mxu0 %vm6311_vm1, %v5623_v9 }
 0xf5c   :  { %5628 = vmatpush3.bf16.xpose.msk.msra.mxu0 %vm6311_vm1, %v5623_v9 }
 0xfbc   :  { %v2628_v62 = vpop.xlane.xlu1 %2627 }
 0xfbd   :  { %v2636_v10 = vsub.f32 %v2610_v36, %v2628_v62  ;;  %v2625_v60 = vpop.xlane.xlu0 %2624 }
 0xfbe   :  { %v2635_v61 = vsub.f32 %v2605_v24, %v2625_v60 }
 0xfbf   :  { %v2641_v2 = vmul.f32 1.442695, %v2636_v10 }
 0xfc0   :  { %v2639_v3 = vmul.f32 1.442695, %v2635_v61  ;;  %v2634_v63 = vpop.xlane.xlu1 %2633 }
 0xfc1   :  { %5928 = vpow2.f32 %v2641_v2  ;;  %v2638_v0 = vsub.f32 %v2620_v46, %v2634_v63  ;;  %v2631_v5 = vpop.xlane.xlu0 %2630  ;;  %v5786_v46 = vld [vmem:[%s7308_s28 + $0xd0] sm:$0xff]  }
 0xfc2   :  { %5930 = vpow2.f32 %v2639_v3  ;;  %v2637_v6 = vsub.f32 %v2615_v49, %v2631_v5  ;;  %v5788_v49 = vld [vmem:[%s7308_s28 + $0xe0] sm:$0xff]  }
 0xfc3   :  { %v2645_v51 = vmul.f32 1.442695, %v2638_v0 }
 0xfc4   :  { %v2643_v59 = vmul.f32 1.442695, %v2637_v6 }
 0xfc5   :  { %5932 = vpow2.f32 %v2645_v51 }
 0xfc6   :  { %5934 = vpow2.f32 %v2643_v59 }
 0xfcb   :  { %v5929_v7 = vpop.eup %5928 }
 0xfcc   :  { %v5931_v8 = vpop.eup %5930  ;;  %v2650_v37 = vsel %vm627_vm2, %v5929_v7, 0.0 }
 0xfcd   :  { %2651 = vadd.xlane.f32.xlu1 %v2650_v37  ;;  %v2647_v19 = vsel %vm627_vm2, %v5931_v8, 0.0 }
 0xfce   :  { %2648 = vadd.xlane.f32.xlu0 %v2647_v19 }
 0xfcf   :  { %v5933_v22 = vpop.eup %5932 }
 0xfd0   :  { %v5935_v15 = vpop.eup %5934  ;;  %v2656_v11 = vsel %vm627_vm2, %v5933_v22, 0.0 }
 0xfd1   :  { %2657 = vadd.xlane.f32.xlu1 %v2656_v11  ;;  %v2653_v12 = vsel %vm627_vm2, %v5935_v15, 0.0 }
 0xfd2   :  { %2654 = vadd.xlane.f32.xlu0 %v2653_v12 }
0x105a   :  { %v2652_v13 = vpop.xlane.xlu1 %2651 }
0x105b   :  { %5936 = vrcp.f32 %v2652_v13  ;;  %v2649_v14 = vpop.xlane.xlu0 %2648 }
0x105c   :  { %5938 = vrcp.f32 %v2649_v14 }
0x105e   :  { %v2658_v1 = vpop.xlane.xlu1 %2657 }
0x105f   :  { %5940 = vrcp.f32 %v2658_v1  ;;  %v2655_v27 = vpop.xlane.xlu0 %2654 }
0x1060   :  { %5942 = vrcp.f32 %v2655_v27 }
0x1065   :  { %v5937_v28 = vpop.eup %5936 }
0x1066   :  { %v5939_v32 = vpop.eup %5938  ;;  %v2664_v36 = vmul.f32 %v5937_v28, %v5929_v7 }
0x1067   :  { %v2663_v33 = vmul.f32 %v5939_v32, %v5931_v8 }
0x1069   :  { %v5941_v24 = vpop.eup %5940  ;;  %5408 = vmatprep.mubr.msk.f32.mxu1 %vm627_vm2, %v2663_v33 }
0x106a   :  { %v5943_v43 = vpop.eup %5942  ;;  %5409 = vmatmul.mubr.msk.f32.vlgmr.msra.gmra.mrb[40].mxu1 %vm627_vm2, %v2664_v36  ;;  %v2666_v44 = vmul.f32 %v5941_v24, %v5933_v22  ;;  %v4704_v22 = vld [vmem:[%s7280_s10 + $0x3] ss:$0 sm:$0xff] }
0x106b   :  { %5415 = vmatpush3.bf16.msra.mxu1 %v5784_v17  ;;  %v2665_v23 = vmul.f32 %v5943_v43, %v5935_v15 }
0x106c   :  { %5416 = vmatprep.subr.bf16.mxu1 %v5785_v41 }
0x106d   :  { %5411 = vmatprep.mubr.msk.f32.mxu1 %vm627_vm2, %v2665_v23 }
0x106e   :  { %5412 = vmatmul.mubr.msk.f32.gmra.mrb[42].mxu1 %vm627_vm2, %v2666_v44 }
0x106f   :  { %5417 = vmatpush3.bf16.msra.mxu1 %v5785_v41  ;;  %5430 = vmatprep.mubr.bf16.mxu1 %v6771_v30 }
0x1070   :  { %5418 = vmatprep.subr.bf16.mxu1 %v5786_v46 }
0x1073   :  { %5419 = vmatpush3.bf16.msra.mxu1 %v5786_v46 }
0x1074   :  { %5420 = vmatprep.subr.bf16.mxu1 %v5787_v47 }
0x1077   :  { %5421 = vmatpush3.bf16.msra.mxu1 %v5787_v47 }
0x1078   :  { %5422 = vmatprep.subr.bf16.mxu1 %v5788_v49 }
0x107b   :  { %5423 = vmatpush3.bf16.msra.mxu1 %v5788_v49 }
0x107c   :  { %5424 = vmatprep.subr.bf16.mxu1 %v5789_v50 }
0x107f   :  { %5425 = vmatpush3.bf16.msra.mxu1 %v5789_v50 }
0x1080   :  { %5426 = vmatprep.subr.bf16.mxu1 %v5790_v52 }
0x1083   :  { %5427 = vmatpush3.bf16.msra.mxu1 %v5790_v52 }
0x1084   :  { %5428 = vmatprep.subr.bf16.mxu1 %v5791_v53 }
0x1087   :  { %5429 = vmatpush3.bf16.msra.mxu1 %v5791_v53 }
0x1088   :  { %5454 = vmatprep.subr.bf16.mxu1 %v5792_v20 }
0x108a   :  { %5431 = vmatmul.mubr.bf16.vlgmr.msra.gmra.mrb[44].mxu1 %v6782_v40 }
0x108b   :  { %5455 = vmatpush3.bf16.msra.mxu1 %v5792_v20  ;;  %5470 = vmatprep.mubr.bf16.mxu1 %v6771_v30  ;;  %v5797_v30 = vld [vmem:[%s7279_s9 + $0xe8] sm:$0xff]  }
0x108c   :  { %5456 = vmatprep.subr.bf16.mxu1 %v5793_v21 }
0x108f   :  { %5457 = vmatpush3.bf16.msra.mxu1 %v5793_v21 }
0x1090   :  { %5458 = vmatprep.subr.bf16.mxu1 %v5794_v54 }
0x1093   :  { %5459 = vmatpush3.bf16.msra.mxu1 %v5794_v54 }
0x1094   :  { %5460 = vmatprep.subr.bf16.mxu1 %v5795_v55 }
0x1097   :  { %5461 = vmatpush3.bf16.msra.mxu1 %v5795_v55 }
0x1098   :  { %5462 = vmatprep.subr.bf16.mxu1 %v5796_v29 }
0x109b   :  { %5463 = vmatpush3.bf16.msra.mxu1 %v5796_v29 }
0x109c   :  { %5464 = vmatprep.subr.bf16.mxu1 %v5797_v30 }
0x109f   :  { %5465 = vmatpush3.bf16.msra.mxu1 %v5797_v30 }
0x10a0   :  { %5466 = vmatprep.subr.bf16.mxu1 %v5798_v58 }
0x10a3   :  { %5467 = vmatpush3.bf16.msra.mxu1 %v5798_v58 }
0x10a4   :  { %5468 = vmatprep.subr.bf16.mxu1 %v5799_v34 }
0x10a7   :  { %5469 = vmatpush3.bf16.msra.mxu1 %v5799_v34 }
0x10aa   :  { %5471 = vmatmul.mubr.bf16.vlgmr.msra.gmra.mrb[48].mxu1 %v6782_v40  ;;  %v4652_v40 = vld [vmem:[%s7312_s25 + $0x3] ss:$0 sm:$0xff] }
0x10ab   :  { %3792 = vmatprep.mubr.bf16.mxu1 %v6020_v35 }
0x113d   :  { %v6956_v31 = vpop.f32.mrb[40].mxu1 }
0x113e   :  { %v6958_v9 = vpop.f32.mrb[41].mxu1 }
0x113f   :  { %v2764_v39 = vpack.c.bf16 %v6956_v31, %v6958_v9  ;;  %v4746_v31 = vld [vmem:[%s7282_s12 + $0x1] ss:$0 sm:$0xff] }
0x1141   :  { %v6962_v62 = vpop.f32.mrb[42].mxu1 }
0x1142   :  { %v6964_v10 = vpop.f32.mrb[43].mxu1 }
0x1143   :  { %v2765_v60 = vpack.c.bf16 %v6962_v62, %v6964_v10 }
0x115d   :  { %v5432_v61 = vpop.f32.mrb[44].mxu1 }
0x115e   :  { %v2882_v2 = vpop.f32.mrb[45].mxu1  ;;  %v2891_v0 = vadd.f32 %v5432_v61, %v4652_v40 }
0x115f   :  { %v2883_v3 = vadd.f32 %v4652_v40, %v2882_v2  ;;  %v5433_v63 = vpop.f32.mrb[46].mxu1 }
0x1160   :  { %v2885_v5 = vpop.f32.mrb[47].mxu1  ;;  %v2894_v59 = vadd.f32 %v5433_v63, %v4652_v40  ;;  %v2899_v8 = vmul.f32 0.125, %v2891_v0 }
0x1161   :  { %v2897_v6 = vmul.f32 0.125, %v2883_v3  ;;  %v2886_v51 = vadd.f32 %v4652_v40, %v2885_v5  ;;  %v5800_v5 = vld [vmem:[%s7281_s11 + $0x60] sm:$0xff]  }
0x1162   :  { %v2900_v37 = vmul.f32 0.125, %v2894_v59 }
0x1163   :  { %v2898_v7 = vmul.f32 0.125, %v2886_v51  ;;  %5482 = vmatprep.mubr.msk.f32.mxu0 %vm517_vm0, %v2897_v6 }
0x1165   :  { %5483 = vmatmul.mubr.msk.f32.vlgmr.msra.gmra.mrb[40].mxu0 %vm517_vm0, %v2898_v7 }
0x1166   :  { %5485 = vmatprep.mubr.msk.f32.mxu0 %vm517_vm0, %v2899_v8 }
0x1169   :  { %5486 = vmatmul.mubr.msk.f32.gmra.mrb[42].mxu0 %vm517_vm0, %v2900_v37 }
0x117d   :  { %v5472_v19 = vpop.f32.mrb[48].mxu1 }
0x117e   :  { %v3130_v15 = vpop.f32.mrb[49].mxu1  ;;  %v3139_v12 = vadd.f32 %v5472_v19, %v4704_v22 }
0x117f   :  { %v5473_v11 = vpop.f32.mrb[50].mxu1  ;;  %v3131_v14 = vadd.f32 %v4704_v22, %v3130_v15  ;;  %v5801_v15 = vld [vmem:[%s7281_s11 + $0x68] sm:$0xff]  }
0x1180   :  { %v3142_v17 = vadd.f32 %v5473_v11, %v4704_v22  ;;  %v3133_v13 = vpop.f32.mrb[51].mxu1 }
0x1181   :  { %v3134_v1 = vadd.f32 %v4704_v22, %v3133_v13 }
0x1182   :  { %v5633_v27 = vpack.c.bf16 %v3142_v17, %v3139_v12 }
0x1183   :  { %v5629_v28 = vpack.c.bf16 %v3134_v1, %v3131_v14  ;;  %v5802_v14 = vld [vmem:[%s7281_s11 + $0x70] sm:$0xff]   ;;  %v5803_v1 = vld [vmem:[%s7281_s11 + $0x78] sm:$0xff]  }
0x1185   :  { %5630 = vmatprep.subr.bf16.mxu0 %v5629_v28 }
0x1186   :  { %5632 = vmatpush3.bf16.msra.mxu0 %v5629_v28 }
0x1187   :  { %5634 = vmatprep.subr.bf16.mxu0 %v5633_v27 }
0x118a   :  { %5636 = vmatpush3.bf16.msra.mxu0 %v5633_v27  ;;  %v5804_v27 = vld [vmem:[%s7281_s11 + $0x40] sm:$0xff]  }
0x118b   :  { %5502 = vmatprep.subr.bf16.mxu0 %v5800_v5 }
0x1238   :  { %v5484_v32 = vpop.f32.mrb[40].mxu0 }
0x1239   :  { %v3241_v33 = vadd.f32 %v6859_v56, %v5484_v32  ;;  %v3235_v36 = vpop.f32.mrb[41].mxu0 }
0x123a   :  { %v3236_v41 = vadd.f32 %v6865_v42, %v3235_v36 }
0x123b   :  { %v3257_v24 = vsel %vm627_vm2, %v3241_v33, -inf }
0x123c   :  { %3258 = vmax.xlane.f32.xlu1 %v3257_v24  ;;  %v5487_v43 = vpop.f32.mrb[42].mxu0  ;;  %v3254_v23 = vsel %vm627_vm2, %v3236_v41, -inf }
0x123d   :  { %v3251_v44 = vadd.f32 %v6873_v45, %v5487_v43  ;;  %v3245_v46 = vpop.f32.mrb[43].mxu0  ;;  %3255 = vmax.xlane.f32.xlu0 %v3254_v23  ;;  %v5805_v43 = vld [vmem:[%s7281_s11 + $0x48] sm:$0xff]   ;;  %v5806_v23 = vld [vmem:[%s7281_s11 + $0x50] sm:$0xff]  }
0x123e   :  { %v3246_v47 = vadd.f32 %v6879_v48, %v3245_v46 }
0x123f   :  { %v3263_v49 = vsel %vm627_vm2, %v3251_v44, -inf }
0x1240   :  { %3264 = vmax.xlane.f32.xlu1 %v3263_v49  ;;  %v3260_v56 = vsel %vm627_vm2, %v3246_v47, -inf }
0x1241   :  { %3261 = vmax.xlane.f32.xlu0 %v3260_v56 }
0x12c9   :  { %v3259_v50 = vpop.xlane.xlu1 %3258 }
0x12ca   :  { %v3267_v42 = vsub.f32 %v3241_v33, %v3259_v50  ;;  %v3256_v52 = vpop.xlane.xlu0 %3255 }
0x12cb   :  { %v3266_v53 = vsub.f32 %v3236_v41, %v3256_v52 }
0x12cc   :  { %v3272_v20 = vmul.f32 1.442695, %v3267_v42 }
0x12cd   :  { %v3270_v21 = vmul.f32 1.442695, %v3266_v53  ;;  %v3265_v54 = vpop.xlane.xlu1 %3264 }
0x12ce   :  { %5944 = vpow2.f32 %v3272_v20  ;;  %v3269_v55 = vsub.f32 %v3251_v44, %v3265_v54  ;;  %v3262_v45 = vpop.xlane.xlu0 %3261  ;;  %v5807_v44 = vld [vmem:[%s7281_s11 + $0x58] sm:$0xff]   ;;  %v5810_v20 = vld [vmem:[%s7285_s15 + $0x84] ss:$8 sps:$4 sm:$0xff]  }
0x12cf   :  { %5946 = vpow2.f32 %v3270_v21  ;;  %v3268_v29 = vsub.f32 %v3246_v47, %v3262_v45  ;;  %3760 = vmatprep.subr.bf16.mxu1 %v5810_v20 }
0x12d0   :  { %v3276_v30 = vmul.f32 1.442695, %v3269_v55 }
0x12d1   :  { %v3274_v48 = vmul.f32 1.442695, %v3268_v29 }
0x12d2   :  { %5948 = vpow2.f32 %v3276_v30 }
0x12d3   :  { %5950 = vpow2.f32 %v3274_v48 }
0x12d8   :  { %v5945_v58 = vpop.eup %5944 }
0x12d9   :  { %v5947_v34 = vpop.eup %5946  ;;  %v3281_v40 = vsel %vm627_vm2, %v5945_v58, 0.0 }
0x12da   :  { %3282 = vadd.xlane.f32.xlu1 %v3281_v40  ;;  %v3278_v61 = vsel %vm627_vm2, %v5947_v34, 0.0 }
0x12db   :  { %3279 = vadd.xlane.f32.xlu0 %v3278_v61 }
0x12dc   :  { %v5949_v2 = vpop.eup %5948 }
0x12dd   :  { %v5951_v3 = vpop.eup %5950  ;;  %v3287_v63 = vsel %vm627_vm2, %v5949_v2, 0.0 }
0x12de   :  { %3288 = vadd.xlane.f32.xlu1 %v3287_v63  ;;  %v3284_v0 = vsel %vm627_vm2, %v5951_v3, 0.0 }
0x12df   :  { %3285 = vadd.xlane.f32.xlu0 %v3284_v0  ;;  %v5816_v0 = vld [vmem:[%s7285_s15 + $0xa4] ss:$8 sps:$4 sm:$0xff]  }
0x1367   :  { %v3283_v6 = vpop.xlane.xlu1 %3282 }
0x1368   :  { %5952 = vrcp.f32 %v3283_v6  ;;  %v3280_v51 = vpop.xlane.xlu0 %3279  ;;  %v5819_v6 = vld [vmem:[%s7285_s15 + $0xb4] ss:$8 sps:$4 sm:$0xff]  }
0x1369   :  { %5954 = vrcp.f32 %v3280_v51  ;;  %v5817_v51 = vld [vmem:[%s7285_s15 + $0xb0] ss:$8 sps:$4 sm:$0xff]  }
0x136b   :  { %v3289_v59 = vpop.xlane.xlu1 %3288 }
0x136c   :  { %5956 = vrcp.f32 %v3289_v59  ;;  %v3286_v7 = vpop.xlane.xlu0 %3285  ;;  %v5822_v59 = vld [vmem:[%s7285_s15 + $0xc4] ss:$8 sps:$4 sm:$0xff]  }
0x136d   :  { %5958 = vrcp.f32 %v3286_v7  ;;  %v5820_v7 = vld [vmem:[%s7285_s15 + $0xc0] ss:$8 sps:$4 sm:$0xff]  }
0x1372   :  { %v5953_v8 = vpop.eup %5952 }
0x1373   :  { %v5955_v37 = vpop.eup %5954  ;;  %v3295_v22 = vmul.f32 %v5953_v8, %v5945_v58  ;;  %v5825_v8 = vld [vmem:[%s7285_s15 + $0xd4] ss:$8 sps:$4 sm:$0xff]  }
0x1374   :  { %v3294_v19 = vmul.f32 %v5955_v37, %v5947_v34  ;;  %v5823_v37 = vld [vmem:[%s7285_s15 + $0xd0] ss:$8 sps:$4 sm:$0xff]  }
0x1376   :  { %v5957_v11 = vpop.eup %5956  ;;  %5496 = vmatprep.mubr.msk.f32.mxu0 %vm627_vm2, %v3294_v19  ;;  %v5828_v19 = vld [vmem:[%s7285_s15 + $0xe4] ss:$8 sps:$4 sm:$0xff]  }
0x1377   :  { %v5959_v12 = vpop.eup %5958  ;;  %5497 = vmatmul.mubr.msk.f32.vlgmr.msra.gmra.mrb[44].mxu0 %vm627_vm2, %v3295_v22  ;;  %v3297_v13 = vmul.f32 %v5957_v11, %v5949_v2  ;;  %v5826_v22 = vld [vmem:[%s7285_s15 + $0xe0] ss:$8 sps:$4 sm:$0xff]   ;;  %v5829_v11 = vld [vmem:[%s7285_s15 + $0xf0] ss:$8 sps:$4 sm:$0xff]  }
0x1378   :  { %v3296_v17 = vmul.f32 %v5959_v12, %v5951_v3  ;;  %5503 = vmatpush3.bf16.msra.mxu0 %v5800_v5  ;;  %v5814_v5 = vld [vmem:[%s7285_s15 + $0xa0] ss:$8 sps:$4 sm:$0xff]  }
0x1379   :  { %5504 = vmatprep.subr.bf16.mxu0 %v5801_v15 }
0x137a   :  { %5499 = vmatprep.mubr.msk.f32.mxu0 %vm627_vm2, %v3296_v17 }
0x137b   :  { %5500 = vmatmul.mubr.msk.f32.gmra.mrb[46].mxu0 %vm627_vm2, %v3297_v13 }
0x137c   :  { %5505 = vmatpush3.bf16.msra.mxu0 %v5801_v15  ;;  %v5831_v15 = vld [vmem:[%s7285_s15 + $0xf4] ss:$8 sps:$4 sm:$0xff]  }
0x137d   :  { %5506 = vmatprep.subr.bf16.mxu0 %v5802_v14 }
0x1380   :  { %5507 = vmatpush3.bf16.msra.mxu0 %v5802_v14 }
0x1381   :  { %5508 = vmatprep.subr.bf16.mxu0 %v5803_v1 }
0x1384   :  { %5509 = vmatpush3.bf16.msra.mxu0 %v5803_v1 }
0x1385   :  { %5514 = vmatprep.subr.bf16.mxu0 %v5804_v27 }
0x144a   :  { %v5498_v28 = vpop.f32.mrb[44].mxu0 }
0x144b   :  { %v3376_v32 = vpop.f32.mrb[45].mxu0 }
0x144c   :  { %v3395_v33 = vpack.c.bf16 %v5498_v28, %v3376_v32 }
0x144e   :  { %v5501_v36 = vpop.f32.mrb[46].mxu0  ;;  %5510 = vmatprep.mubr.msk.bf16.mxu0 %vm517_vm0, %v3395_v33 }
0x144f   :  { %v3386_v41 = vpop.f32.mrb[47].mxu0 }
0x1450   :  { %v3396_v24 = vpack.c.bf16 %v5501_v36, %v3386_v41 }
0x1452   :  { %5511 = vmatmul.mubr.msk.bf16.vlgmr.msra.gmra.mrb[48].mxu0 %vm517_vm0, %v3396_v24 }
0x1453   :  { %5515 = vmatpush3.bf16.msra.mxu0 %v5804_v27  ;;  %5522 = vmatprep.mubr.msk.bf16.mxu0 %vm517_vm0, %v2764_v39 }
0x1454   :  { %5516 = vmatprep.subr.bf16.mxu0 %v5805_v43 }
0x1457   :  { %5517 = vmatpush3.bf16.msra.mxu0 %v5805_v43 }
0x1458   :  { %5518 = vmatprep.subr.bf16.mxu0 %v5806_v23 }
0x145b   :  { %5519 = vmatpush3.bf16.msra.mxu0 %v5806_v23  ;;  %v4749_v23 = vld [vmem:[%s7283_s13 + $0x1] ss:$0 sm:$0xff] }
0x145c   :  { %5520 = vmatprep.subr.bf16.mxu0 %v5807_v44 }
0x145f   :  { %5521 = vmatpush3.bf16.msra.mxu0 %v5807_v44 }
0x1462   :  { %5523 = vmatmul.mubr.msk.bf16.vlgmr.msra.gmra.mrb[48].mxu0 %vm517_vm0, %v2765_v60  ;;  %v5808_v60 = vld [vmem:[%s7285_s15 + $0x80] ss:$8 sps:$4 sm:$0xff]  }
0x1463   :  { %3761 = vmatpush1.bf16.msra.mxu1 %v5808_v60 }
0x1535   :  { %v5524_v9 = vpop.f32.mrb[48].mxu0 }
0x1536   :  { %v3549_v39 = vpop.f32.mrb[49].mxu0  ;;  %v3574_v56 = vadd.f32 %v5524_v9, %v4746_v31 }
0x1537   :  { %v3572_v46 = vadd.f32 %v4746_v31, %v3549_v39  ;;  %v5525_v47 = vpop.f32.mrb[50].mxu0 }
0x1538   :  { %v3552_v49 = vpop.f32.mrb[51].mxu0  ;;  %v3575_v52 = vadd.f32 %v5525_v47, %v4746_v31  ;;  %v3578_v62 = vadd.f32 %v3574_v56, %v6776_v38  ;;  %v4750_v47 = vld [vmem:[%s7284_s14 + $0x1] ss:$0 sm:$0xff] }
0x1539   :  { %v3573_v50 = vadd.f32 %v4746_v31, %v3552_v49  ;;  %v3576_v42 = vadd.f32 %v3572_v46, %v6764_v25  ;;  %v5813_v25 = vld [vmem:[%s7285_s15 + $0x94] ss:$8 sps:$4 sm:$0xff]  }
0x153a   :  { %v3579_v10 = vadd.f32 %v3575_v52, %v6778_v57  ;;  %3762 = vmatprep.subr.bf16.mxu1 %v5813_v25 }
0x153b   :  { %3584 = vadd.xlane.f32.xlu0 %v3576_v42  ;;  %v3577_v53 = vadd.f32 %v3573_v50, %v6766_v4  ;;  %v5811_v4 = vld [vmem:[%s7285_s15 + $0x90] ss:$8 sps:$4 sm:$0xff]  }
0x153c   :  { %3763 = vmatpush1.bf16.msra.mxu1 %v5811_v4 }
0x153d   :  { %3586 = vadd.xlane.f32.xlu1 %v3577_v53  ;;  %3764 = vmatprep.subr.bf16.mxu1 %v5816_v0 }
0x153f   :  { %3588 = vadd.xlane.f32.xlu0 %v3578_v62 }
0x1540   :  { %3765 = vmatpush1.bf16.msra.mxu1 %v5814_v5 }
0x1541   :  { %3590 = vadd.xlane.f32.xlu1 %v3579_v10  ;;  %3766 = vmatprep.subr.bf16.mxu1 %v5819_v6 }
0x1544   :  { %3767 = vmatpush1.bf16.msra.mxu1 %v5817_v51 }
0x1545   :  { %3768 = vmatprep.subr.bf16.mxu1 %v5822_v59 }
0x1548   :  { %3769 = vmatpush1.bf16.msra.mxu1 %v5820_v7 }
0x1549   :  { %3770 = vmatprep.subr.bf16.mxu1 %v5825_v8 }
0x154c   :  { %3771 = vmatpush1.bf16.msra.mxu1 %v5823_v37 }
0x154d   :  { %3772 = vmatprep.subr.bf16.mxu1 %v5828_v19 }
0x1550   :  { %3773 = vmatpush1.bf16.msra.mxu1 %v5826_v22 }
0x1551   :  { %3774 = vmatprep.subr.bf16.mxu1 %v5831_v15 }
0x1554   :  { %3775 = vmatpush1.bf16.msra.mxu1 %v5829_v11 }
0x15c8   :  { %v3585_v38 = vpop.xlane.xlu0 %3584 }
0x15c9   :  { %v3592_v57 = vmul.f32 0.0078125, %v3585_v38  ;;  %v5832_v38 = vld [vmem:[%s7287_s17 + $0xc0] sm:$0xff]  }
0x15ca   :  { %v3587_v21 = vpop.xlane.xlu1 %3586  ;;  %5084 = vmatprep.subr.bf16.mxu0 %v5832_v38 }
0x15cb   :  { %v3596_v54 = vsub.f32 %v3576_v42, %v3592_v57  ;;  %v3593_v55 = vmul.f32 0.0078125, %v3587_v21  ;;  %v5833_v57 = vld [vmem:[%s7287_s17 + $0x80] sm:$0xff]   ;;  %v5835_v21 = vld [vmem:[%s7287_s17 + $0x88] sm:$0xff]  }
0x15cc   :  { %v3589_v45 = vpop.xlane.xlu0 %3588  ;;  %5085 = vmatpush3.bf16.msra.mxu0 %v5833_v57 }
0x15cd   :  { %v3597_v29 = vsub.f32 %v3577_v53, %v3593_v55  ;;  %v3594_v30 = vmul.f32 0.0078125, %v3589_v45  ;;  %v3600_v48 = vmul.f32 %v3596_v54, %v3596_v54  ;;  %v5837_v55 = vld [vmem:[%s7287_s17 + $0x90] sm:$0xff]   ;;  %v5838_v45 = vld [vmem:[%s7287_s17 + $0xd8] sm:$0xff]  }
0x15ce   :  { %v3591_v58 = vpop.xlane.xlu1 %3590 }
0x15cf   :  { %v3598_v34 = vsub.f32 %v3578_v62, %v3594_v30  ;;  %v3595_v40 = vmul.f32 0.0078125, %v3591_v58  ;;  %3604 = vadd.xlane.f32.xlu0 %v3600_v48  ;;  %v3601_v61 = vmul.f32 %v3597_v29, %v3597_v29  ;;  %v5840_v30 = vld [vmem:[%s7287_s17 + $0xe0] sm:$0xff]   ;;  %v5842_v58 = vld [vmem:[%s7287_s17 + $0xe8] sm:$0xff]  }
0x15d0   :  { %v5841_v48 = vld [vmem:[%s7287_s17 + $0xa0] sm:$0xff]  }
0x15d1   :  { %v3599_v2 = vsub.f32 %v3579_v10, %v3595_v40  ;;  %3606 = vadd.xlane.f32.xlu1 %v3601_v61  ;;  %v3602_v3 = vmul.f32 %v3598_v34, %v3598_v34  ;;  %v5844_v40 = vld [vmem:[%s7287_s17 + $0xf0] sm:$0xff]  }
0x15d2   :  { %v5845_v61 = vld [vmem:[%s7287_s17 + $0xb0] sm:$0xff]  }
0x15d3   :  { %3608 = vadd.xlane.f32.xlu0 %v3602_v3  ;;  %v3603_v63 = vmul.f32 %v3599_v2, %v3599_v2  ;;  %v5847_v3 = vld [vmem:[%s7287_s17 + $0xb8] sm:$0xff]  }
0x15d5   :  { %3610 = vadd.xlane.f32.xlu1 %v3603_v63  ;;  %v4767_v63 = vld [vmem:[%s7286_s16 + $0x2] sm:$0x3]  ;;  %s4340_s16 = sshll.u32 %s6024_s7, 4  ;;  %s4341_s16 = int_to_ptr.vmem [resolvable:$true] %s4340_s16 }
0x15d6   :  { %v3673_v0 = vrot.slane %v4767_v63, %v1671_v18  ;;  %v3677_v5 = vrot.slane %v4767_v63, %v1675_v26  ;;  %p6001_p1 = scmp.lt.s32.totalorder %s4341_s16, %s4341_s16 }
0x165c   :  { %v3605_v12 = vpop.xlane.xlu0 %3604 }
0x165d   :  { %v3612_v17 = vmul.f32 0.0078125, %v3605_v12 }
0x165e   :  { %v3607_v13 = vpop.xlane.xlu1 %3606 }
0x165f   :  { %v3616_v14 = vadd.f32 1e-05, %v3612_v17  ;;  %v3613_v1 = vmul.f32 0.0078125, %v3607_v13 }
0x1660   :  { %v3609_v27 = vpop.xlane.xlu0 %3608 }
0x1661   :  { %5960 = vrsqrt.f32 %v3616_v14  ;;  %v3617_v28 = vadd.f32 1e-05, %v3613_v1  ;;  %v3614_v32 = vmul.f32 0.0078125, %v3609_v27 }
0x1662   :  { %v3611_v33 = vpop.xlane.xlu1 %3610 }
0x1663   :  { %5962 = vrsqrt.f32 %v3617_v28  ;;  %v3618_v36 = vadd.f32 1e-05, %v3614_v32  ;;  %v3615_v41 = vmul.f32 0.0078125, %v3611_v33 }
0x1665   :  { %5964 = vrsqrt.f32 %v3618_v36  ;;  %v3619_v24 = vadd.f32 1e-05, %v3615_v41 }
0x1667   :  { %5966 = vrsqrt.f32 %v3619_v24 }
0x166b   :  { %v5961_v43 = vpop.eup %5960 }
0x166c   :  { %v3624_v44 = vmul.f32 %v5961_v43, %v3596_v54  ;;  %v5836_v54 = vld [vmem:[%s7287_s17 + $0xd0] sm:$0xff]  }
0x166d   :  { %v5963_v31 = vpop.eup %5962 }
0x166e   :  { %v3625_v9 = vmul.f32 %v5963_v31, %v3597_v29  ;;  %v3634_v39 = vmul.f32 %v4749_v23, %v3624_v44  ;;  %v5839_v29 = vld [vmem:[%s7287_s17 + $0x98] sm:$0xff]  }
0x166f   :  { %v5965_v46 = vpop.eup %5964 }
0x1670   :  { %v3635_v49 = vmul.f32 %v4749_v23, %v3625_v9  ;;  %v7089_v50 = vadd.f32 %v4750_v47, %v3634_v39  ;;  %v3626_v52 = vmul.f32 %v5965_v46, %v3598_v34  ;;  %v5843_v34 = vld [vmem:[%s7287_s17 + $0xa8] sm:$0xff]  }
0x1671   :  { %v5967_v56 = vpop.eup %5966 }
0x1672   :  { %v7091_v42 = vadd.f32 %v4750_v47, %v3635_v49  ;;  %v3627_v53 = vmul.f32 %v5967_v56, %v3599_v2  ;;  %v3636_v60 = vmul.f32 %v4749_v23, %v3626_v52  ;;  %v5846_v2 = vld [vmem:[%s7287_s17 + $0xf8] sm:$0xff]  }
0x1674   :  { %v3648_v62 = vpack.c.bf16 %v7091_v42, %v7089_v50  ;;  %v3637_v10 = vmul.f32 %v4749_v23, %v3627_v53  ;;  %v7098_v25 = vadd.f32 %v4750_v47, %v3636_v60 }
0x1676   :  { %3793 = vmatmul.mubr.bf16.vlgmr.msra.gmra.mrb[52].mxu1 %v3648_v62  ;;  %v7096_v20 = vadd.f32 %v4750_v47, %v3637_v10 }
0x1677   :  { %3802 = vmatprep.mubr.bf16.mxu1 %v6020_v35  ;;  %v5834_v35 = vld [vmem:[%s7287_s17 + $0xc8] sm:$0xff]   ;;  %s5996_s17 = scalar_lea.vmem %s4341_s16, 32 }
0x1678   :  { %v3649_v4 = vpack.c.bf16 %v7096_v20, %v7098_v25  ;;  %5086 = vmatprep.subr.bf16.mxu0 %v5834_v35  ;;  %p5997_p0 = scmp.ne.s32.totalorder %s4341_s16, %s5996_s17  ;;  %p6002_p2 = scmp.lt.s32.totalorder %s5996_s17, %s5996_s17 }
0x1679   :  { %5087 = vmatpush3.bf16.msra.mxu0 %v5835_v21 }
0x167a   :  { %5088 = vmatprep.subr.bf16.mxu0 %v5836_v54  ;;  %p6003_p3 = por %p6002_p2, %p6001_p1 }
0x167c   :  { %p6004_p4 = pnand %p6003_p3, %p5997_p0 }
0x167d   :  { %5089 = vmatpush3.bf16.msra.mxu0 %v5837_v55 }
0x167e   :  { %3803 = vmatmul.mubr.bf16.gmra.mrb[56].mxu1 %v3649_v4  ;;  %5090 = vmatprep.subr.bf16.mxu0 %v5838_v45 }
0x1681   :  { %5091 = vmatpush3.bf16.msra.mxu0 %v5839_v29 }
0x1682   :  { %5092 = vmatprep.subr.bf16.mxu0 %v5840_v30 }
0x1685   :  { %5093 = vmatpush3.bf16.msra.mxu0 %v5841_v48 }
0x1686   :  { %5094 = vmatprep.subr.bf16.mxu0 %v5842_v58 }
0x1689   :  { %5095 = vmatpush3.bf16.msra.mxu0 %v5843_v34 }
0x168a   :  { %5096 = vmatprep.subr.bf16.mxu0 %v5844_v40 }
0x168d   :  { %5097 = vmatpush3.bf16.msra.mxu0 %v5845_v61 }
0x168e   :  { %5098 = vmatprep.subr.bf16.mxu0 %v5846_v2 }
0x1691   :  { %5099 = vmatpush3.bf16.msra.mxu0 %v5847_v3 }
0x1749   :  { %v3794_v6 = vpop.f32.mrb[52].mxu1 }
0x174a   :  { %v7157_v51 = vadd.f32 %v3794_v6, %v3673_v0  ;;  %v3796_v59 = vpop.f32.mrb[53].mxu1 }
0x174b   :  { %v7159_v7 = vadd.f32 %v3796_v59, %v3677_v5  ;;  %v3798_v8 = vpop.f32.mrb[54].mxu1 }
0x174c   :  { %v3821_v37 = vmul.f32 0.044715, %v7157_v51  ;;  %v7162_v19 = vadd.f32 %v3798_v8, %v3673_v0  ;;  %v3800_v22 = vpop.f32.mrb[55].mxu1  ;;  %v3813_v8 = vmul.f32 0.5, %v7157_v51 }
0x174d   :  { %v3822_v15 = vmul.f32 0.044715, %v7159_v7  ;;  %v7165_v11 = vadd.f32 %v3800_v22, %v3677_v5 }
0x174e   :  { %v3829_v18 = vmul.f32 %v3821_v37, %v7157_v51  ;;  %v3823_v16 = vmul.f32 0.044715, %v7162_v19  ;;  %v3815_v37 = vmul.f32 0.5, %v7162_v19 }
0x174f   :  { %v3830_v26 = vmul.f32 %v3822_v15, %v7159_v7  ;;  %v3824_v12 = vmul.f32 0.044715, %v7165_v11  ;;  %v3814_v15 = vmul.f32 0.5, %v7159_v7 }
0x1750   :  { %v3837_v17 = vmul.f32 %v3829_v18, %v7157_v51  ;;  %v3831_v13 = vmul.f32 %v3823_v16, %v7162_v19  ;;  %v3816_v18 = vmul.f32 0.5, %v7165_v11 }
0x1751   :  { %v3838_v14 = vmul.f32 %v3830_v26, %v7159_v7  ;;  %v3832_v1 = vmul.f32 %v3824_v12, %v7165_v11  ;;  %v3804_v27 = vpop.f32.mrb[56].mxu1 }
0x1752   :  { %v3845_v28 = vadd.f32 %v3837_v17, %v7157_v51  ;;  %v3839_v32 = vmul.f32 %v3831_v13, %v7162_v19  ;;  %v7177_v33 = vadd.f32 %v3804_v27, %v3673_v0  ;;  %v3806_v36 = vpop.f32.mrb[57].mxu1 }
0x1753   :  { %v3840_v41 = vmul.f32 %v3832_v1, %v7165_v11  ;;  %v7180_v24 = vadd.f32 %v3806_v36, %v3677_v5  ;;  %v3808_v43 = vpop.f32.mrb[58].mxu1  ;;  %v3846_v23 = vadd.f32 %v3838_v14, %v7159_v7 }
0x1754   :  { %v3853_v44 = vmul.f32 0.7978846, %v3845_v28  ;;  %v3847_v31 = vadd.f32 %v3839_v32, %v7162_v19  ;;  %v3825_v9 = vmul.f32 0.044715, %v7177_v33  ;;  %v3809_v39 = vadd.f32 %v3808_v43, %v3673_v0  ;;  %v3810_v46 = vpop.f32.mrb[59].mxu1 }
0x1755   :  { %v3826_v47 = vmul.f32 0.044715, %v7180_v24  ;;  %v3811_v49 = vadd.f32 %v3810_v46, %v3677_v5  ;;  %v3848_v56 = vadd.f32 %v3840_v41, %v7165_v11  ;;  %v3854_v52 = vmul.f32 0.7978846, %v3846_v23 }
0x1756   :  { %5968 = vtanh.f32 %v3853_v44  ;;  %v3855_v53 = vmul.f32 0.7978846, %v3847_v31  ;;  %v3833_v62 = vmul.f32 %v3825_v9, %v7177_v33  ;;  %v3827_v10 = vmul.f32 0.044715, %v3809_v39 }
0x1757   :  { %v3834_v60 = vmul.f32 %v3826_v47, %v7180_v24  ;;  %v3828_v4 = vmul.f32 0.044715, %v3811_v49  ;;  %v3856_v38 = vmul.f32 0.7978846, %v3848_v56  ;;  %5970 = vtanh.f32 %v3854_v52 }
0x1758   :  { %5972 = vtanh.f32 %v3855_v53  ;;  %v3841_v57 = vmul.f32 %v3833_v62, %v7177_v33  ;;  %v3835_v35 = vmul.f32 %v3827_v10, %v3809_v39  ;;  %v3817_v19 = vmul.f32 0.5, %v7177_v33  ;;  %v4817_v62 = vld [vmem:[%s7288_s18 + $0x1] ss:$0 sm:$0xff] }
0x1759   :  { %v3842_v21 = vmul.f32 %v3834_v60, %v7180_v24  ;;  %v3836_v54 = vmul.f32 %v3828_v4, %v3811_v49  ;;  %5974 = vtanh.f32 %v3856_v38  ;;  %v3819_v7 = vmul.f32 0.5, %v3809_v39 }
0x175a   :  { %v3843_v55 = vmul.f32 %v3835_v35, %v3809_v39  ;;  %v3849_v45 = vadd.f32 %v3841_v57, %v7177_v33  ;;  %v3818_v11 = vmul.f32 0.5, %v7180_v24  ;;  %v3820_v23 = vmul.f32 0.5, %v3811_v49 }
0x175b   :  { %v3844_v29 = vmul.f32 %v3836_v54, %v3811_v49  ;;  %v3850_v30 = vadd.f32 %v3842_v21, %v7180_v24 }
0x175c   :  { %v3851_v48 = vadd.f32 %v3843_v55, %v3809_v39  ;;  %v3857_v58 = vmul.f32 0.7978846, %v3849_v45 }
0x175d   :  { %v3852_v34 = vadd.f32 %v3844_v29, %v3811_v49  ;;  %v3858_v40 = vmul.f32 0.7978846, %v3850_v30 }
0x175e   :  { %v3859_v61 = vmul.f32 0.7978846, %v3851_v48  ;;  %5976 = vtanh.f32 %v3857_v58 }
0x175f   :  { %v3860_v2 = vmul.f32 0.7978846, %v3852_v34  ;;  %5978 = vtanh.f32 %v3858_v40 }
0x1760   :  { %v5969_v3 = vpop.eup %5968  ;;  %5980 = vtanh.f32 %v3859_v61 }
0x1761   :  { %v5971_v63 = vpop.eup %5970  ;;  %v3869_v0 = vadd.f32 1.0, %v5969_v3  ;;  %5982 = vtanh.f32 %v3860_v2 }
0x1762   :  { %v5973_v5 = vpop.eup %5972  ;;  %v3870_v6 = vadd.f32 1.0, %v5971_v63 }
0x1763   :  { %v5975_v59 = vpop.eup %5974  ;;  %v3871_v22 = vadd.f32 1.0, %v5973_v5  ;;  %v3877_v26 = vmul.f32 %v3869_v0, %v3813_v8 }
0x1764   :  { %v3872_v16 = vadd.f32 1.0, %v5975_v59  ;;  %v3878_v17 = vmul.f32 %v3870_v6, %v3814_v15  ;;  %v6021_v15 = vmov 0.0|0.0  }
0x1765   :  { %v3879_v12 = vmul.f32 %v3871_v22, %v3815_v37  ;;  %5637 = vmatprep.subr.bf16.mxu0 %v6021_v15 }
0x1766   :  { %v3880_v13 = vmul.f32 %v3872_v16, %v3816_v18  ;;  %v6023_v18 = vmov 0.0   ;;  %v5848_v16 = vld [vmem:[%s7291_s21] sm:$0xff]  }
0x1767   :  { %v3885_v14 = vpack.c.bf16 %v3879_v12, %v3877_v26  ;;  %5537 = vmatprep.subr.bf16.mxu1 %v6023_v18  ;;  %5553 = vmatprep.mubr.msk.bf16.mxu1 %vm6022_vm3, %v6023_v18  ;;  %v5849_v26 = vld [vmem:[%s7291_s21 + $0x8] sm:$0xff]   ;;  %v5850_v12 = vld [vmem:[%s7291_s21 + $0x10] sm:$0xff]  }
0x1768   :  { %v5977_v1 = vpop.eup %5976  ;;  %v3886_v27 = vpack.c.bf16 %v3880_v13, %v3878_v17  ;;  %5538 = vmatpush3.bf16.msra.mxu1 %v5848_v16  ;;  %v5851_v17 = vld [vmem:[%s7291_s21 + $0x18] sm:$0xff]   ;;  %v5852_v13 = vld [vmem:[%s7291_s21 + $0x20] sm:$0xff]  }
0x1769   :  { %v5979_v28 = vpop.eup %5978  ;;  %v3873_v32 = vadd.f32 1.0, %v5977_v1  ;;  %5539 = vmatprep.subr.bf16.mxu1 %v6023_v18  ;;  %v5854_v1 = vld [vmem:[%s7291_s21 + $0x30] sm:$0xff]  }
0x176a   :  { %v5981_v36 = vpop.eup %5980  ;;  %4058 = vmatprep.mubr.bf16.mxu0 %v3886_v27  ;;  %v3874_v51 = vadd.f32 1.0, %v5979_v28 }
0x176b   :  { %v5983_v41 = vpop.eup %5982  ;;  %4059 = vmatmul.mubr.bf16.vlgmr.msra.gmra.mrb[52].mxu0 %v3885_v14  ;;  %v3875_v43 = vadd.f32 1.0, %v5981_v36  ;;  %v3881_v31 = vmul.f32 %v3873_v32, %v3817_v19  ;;  %v5853_v14 = vld [vmem:[%s7291_s21 + $0x28] sm:$0xff]  }
0x176c   :  { %v3876_v44 = vadd.f32 1.0, %v5983_v41  ;;  %v3882_v46 = vmul.f32 %v3874_v51, %v3818_v11  ;;  %5540 = vmatpush3.bf16.msra.mxu1 %v5849_v26 }
0x176d   :  { %v3883_v9 = vmul.f32 %v3875_v43, %v3819_v7  ;;  %5541 = vmatprep.subr.bf16.mxu1 %v6023_v18 }
0x176e   :  { %v3884_v47 = vmul.f32 %v3876_v44, %v3820_v23 }
0x176f   :  { %v3887_v56 = vpack.c.bf16 %v3883_v9, %v3881_v31  ;;  %v4836_v9 = vld [vmem:[%s7289_s19 + $0x1] ss:$0 sm:$0xff] }
0x1770   :  { %v3888_v52 = vpack.c.bf16 %v3884_v47, %v3882_v46  ;;  %5542 = vmatpush3.bf16.msra.mxu1 %v5850_v12 }
0x1771   :  { %5543 = vmatprep.subr.bf16.mxu1 %v6023_v18 }
0x1772   :  { %4066 = vmatprep.mubr.bf16.mxu0 %v3888_v52 }
0x1773   :  { %4067 = vmatmul.mubr.bf16.gmra.mrb[56].mxu0 %v3887_v56 }
0x1774   :  { %5534 = vmatprep.mubr.msk.f32.mxu0 %vm6022_vm3, %v6023_v18  ;;  %5544 = vmatpush3.bf16.msra.mxu1 %v5851_v17 }
0x1775   :  { %5545 = vmatprep.subr.bf16.mxu1 %v6023_v18 }
0x1778   :  { %5546 = vmatpush3.bf16.msra.mxu1 %v5852_v13 }
0x1779   :  { %5547 = vmatprep.subr.bf16.mxu1 %v6023_v18 }
0x177c   :  { %5548 = vmatpush3.bf16.msra.mxu1 %v5853_v14 }
0x177d   :  { %5549 = vmatprep.subr.bf16.mxu1 %v6023_v18 }
0x1780   :  { %5550 = vmatpush3.bf16.msra.mxu1 %v5854_v1 }
0x1781   :  { %5551 = vmatprep.subr.bf16.mxu1 %v6023_v18 }
0x183e   :  { %v5100_v53 = vpop.f32.mrb[52].mxu0 }
0x183f   :  { %v5101_v33 = vpop.f32.mrb[53].mxu0 }
0x1840   :  { %v5102_v39 = vadd.f32 %v5101_v33, %v5100_v53  ;;  %v5103_v10 = vpop.f32.mrb[54].mxu0  ;;  %v4837_v53 = vld [vmem:[%s7290_s20 + $0x1] ss:$0 sm:$0xff]  ;;  %s7316_s20 = sld [smem:[#allocation7_spill]] }
0x1841   :  { %v5104_v60 = vpop.f32.mrb[55].mxu0 }
0x1842   :  { %v4061_v24 = vadd.f32 %v5102_v39, %v4817_v62  ;;  %v5105_v49 = vadd.f32 %v5104_v60, %v5103_v10 }
0x1844   :  { %v4064_v4 = vadd.f32 %v5105_v49, %v4817_v62  ;;  %v4075_v38 = vadd.f32 %v4061_v24, %v7089_v50 }
0x1846   :  { %4083 = vadd.xlane.f32.xlu0 %v4075_v38  ;;  %v5106_v57 = vpop.f32.mrb[56].mxu0  ;;  %v4076_v35 = vadd.f32 %v4064_v4, %v7091_v42 }
0x1847   :  { %v5107_v21 = vpop.f32.mrb[57].mxu0 }
0x1848   :  { %v5108_v54 = vadd.f32 %v5107_v21, %v5106_v57  ;;  %4085 = vadd.xlane.f32.xlu1 %v4076_v35  ;;  %v5109_v55 = vpop.f32.mrb[58].mxu0 }
0x1849   :  { %v5110_v45 = vpop.f32.mrb[59].mxu0 }
0x184a   :  { %v4069_v29 = vadd.f32 %v5108_v54, %v4817_v62  ;;  %v5111_v30 = vadd.f32 %v5110_v45, %v5109_v55  ;;  %v4147_v55 = vld [vmem:[%s7316_s20] sm:$0x3]  ;;  %v5855_v45 = vld [vmem:[%s7291_s21 + $0x38] sm:$0xff]  }
0x184b   :  { %5552 = vmatpush3.bf16.msra.mxu1 %v5855_v45 }
0x184c   :  { %v4072_v48 = vadd.f32 %v5111_v30, %v4817_v62  ;;  %v4077_v58 = vadd.f32 %v4069_v29, %v7098_v25 }
0x184e   :  { %4087 = vadd.xlane.f32.xlu0 %v4077_v58  ;;  %v4078_v34 = vadd.f32 %v4072_v48, %v7096_v20 }
0x1850   :  { %4089 = vadd.xlane.f32.xlu1 %v4078_v34 }
0x18d3   :  { %v4084_v40 = vpop.xlane.xlu0 %4083 }
0x18d4   :  { %v4091_v50 = vmul.f32 0.0078125, %v4084_v40 }
0x18d5   :  { %v4086_v61 = vpop.xlane.xlu1 %4085 }
0x18d6   :  { %v7206_v2 = vsub.f32 %v4075_v38, %v4091_v50  ;;  %v4092_v42 = vmul.f32 0.0078125, %v4086_v61 }
0x18d8   :  { %v7208_v3 = vsub.f32 %v4076_v35, %v4092_v42  ;;  %v4099_v63 = vmul.f32 %v7206_v2, %v7206_v2 }
0x18da   :  { %4103 = vadd.xlane.f32.xlu0 %v4099_v63  ;;  %v4100_v0 = vmul.f32 %v7208_v3, %v7208_v3 }
0x18db   :  { %v4088_v25 = vpop.xlane.xlu0 %4087 }
0x18dc   :  { %v4093_v5 = vmul.f32 0.0078125, %v4088_v25  ;;  %4105 = vadd.xlane.f32.xlu1 %v4100_v0 }
0x18dd   :  { %v4090_v20 = vpop.xlane.xlu1 %4089 }
0x18de   :  { %v4097_v6 = vsub.f32 %v4077_v58, %v4093_v5  ;;  %v4094_v59 = vmul.f32 0.0078125, %v4090_v20  ;;  %v4839_v58 = vld [vmem:[%s7292_s22] ss:$0 sm:$0xff] }
0x18e0   :  { %v7214_v8 = vsub.f32 %v4078_v34, %v4094_v59  ;;  %v4101_v37 = vmul.f32 %v4097_v6, %v4097_v6 }
0x18e2   :  { %4107 = vadd.xlane.f32.xlu0 %v4101_v37  ;;  %v4102_v22 = vmul.f32 %v7214_v8, %v7214_v8 }
0x18e4   :  { %4109 = vadd.xlane.f32.xlu1 %v4102_v22 }
0x1967   :  { %v4104_v27 = vpop.xlane.xlu0 %4103 }
0x1968   :  { %v4111_v28 = vmul.f32 0.0078125, %v4104_v27 }
0x1969   :  { %v4106_v32 = vpop.xlane.xlu1 %4105 }
0x196a   :  { %v4115_v36 = vadd.f32 1e-05, %v4111_v28  ;;  %v4112_v51 = vmul.f32 0.0078125, %v4106_v32 }
0x196c   :  { %5984 = vrsqrt.f32 %v4115_v36  ;;  %v4116_v41 = vadd.f32 1e-05, %v4112_v51 }
0x196e   :  { %5986 = vrsqrt.f32 %v4116_v41 }
0x196f   :  { %v4108_v19 = vpop.xlane.xlu0 %4107 }
0x1970   :  { %v4113_v7 = vmul.f32 0.0078125, %v4108_v19 }
0x1971   :  { %v4110_v43 = vpop.xlane.xlu1 %4109 }
0x1972   :  { %v4117_v11 = vadd.f32 1e-05, %v4113_v7  ;;  %v4114_v23 = vmul.f32 0.0078125, %v4110_v43 }
0x1974   :  { %5988 = vrsqrt.f32 %v4117_v11  ;;  %v4118_v44 = vadd.f32 1e-05, %v4114_v23 }
0x1976   :  { %v5985_v31 = vpop.eup %5984  ;;  %5990 = vrsqrt.f32 %v4118_v44 }
0x1977   :  { %v4123_v46 = vmul.f32 %v5985_v31, %v7206_v2 }
0x1978   :  { %v5987_v47 = vpop.eup %5986 }
0x1979   :  { %v4124_v56 = vmul.f32 %v5987_v47, %v7208_v3  ;;  %v4133_v52 = vmul.f32 %v4836_v9, %v4123_v46 }
0x197b   :  { %v4134_v62 = vmul.f32 %v4836_v9, %v4124_v56  ;;  %v4143_v33 = vadd.f32 %v4837_v53, %v4133_v52 }
0x197d   :  { %v4144_v39 = vadd.f32 %v4837_v53, %v4134_v62 }
0x197e   :  { %v5989_v10 = vpop.eup %5988 }
0x197f   :  { %v4125_v60 = vmul.f32 %v5989_v10, %v4097_v6  ;;  %v5638_v24 = vpack.c.bf16 %v4144_v39, %v4143_v33 }
0x1980   :  { %v5991_v49 = vpop.eup %5990 }
0x1981   :  { %v4126_v4 = vmul.f32 %v5991_v49, %v7214_v8  ;;  %5639 = vmatpush3.bf16.msra.mxu0 %v5638_v24  ;;  %v4135_v38 = vmul.f32 %v4836_v9, %v4125_v60 }
0x1982   :  { %5640 = vmatprep.subr.bf16.mxu0 %v6021_v15 }
0x1983   :  { %v4136_v57 = vmul.f32 %v4836_v9, %v4126_v4  ;;  %v4145_v35 = vadd.f32 %v4837_v53, %v4135_v38 }
0x1985   :  { %v4146_v21 = vadd.f32 %v4837_v53, %v4136_v57 }
0x1987   :  { %v5641_v54 = vpack.c.bf16 %v4146_v21, %v4145_v35 }
0x1989   :  { %5642 = vmatpush3.bf16.msra.mxu0 %v5641_v54 }
0x198c   :  { %5535 = vmatmul.mubr.msk.f32.vlgmr.msra.gmra.mrb[60].mxu0 %vm627_vm2, %v4147_v55 }
0x1a5f   :  { %v4217_v29 = vpop.f32.mrb[60].mxu0 }
0x1a60   :  { %v4221_v30 = vpack.c.bf16 %v4217_v29, %v4217_v29  ;;  %v5536_v48 = vpop.f32.mrb[61].mxu0 }
0x1a62   :  { %5554 = vmatmul.mubr.bf16.vlgmr.msra.gmra.mrb[60].mxu1 %v4221_v30 }
0x1b35   :  { %v4327_v34 = vpop.f32.mrb[60].mxu1 }
0x1b36   :  { %v4328_v40 = vadd.f32 %v4839_v58, %v4327_v34  ;;  %v5555_v50 = vpop.f32.mrb[61].mxu1 }
0x1b37   :  { %v4330_v61 = vpop.f32.mrb[62].mxu1 }
0x1b38   :  { %4333 = vst [vmem:[#allocation2] sm:$0x3] %v4328_v40  ;;  %v5556_v2 = vpop.f32.mrb[63].mxu1 }
0x1b39   :  { %6007 = shalt.err (!%p6004_p4)
}
0x1b3a   :  { %s6008_s22 = scalar_lea.hbm %s7293_s23, 32 }
0x1b3b   :  { %p6009_p5 = scmp.ne.s32.totalorder %s7293_s23, %s6008_s22  ;;  %p6012_p6 = scmp.lt.u32.totalorder %s6008_s22, %s7293_s23 }
0x1b3d   :  { %p6014_p7 = pnand %p6012_p6, %p6009_p5 }
0x1b3f   :  { %6017 = shalt.err (!%p6014_p7)
}
0x1b40   :  { %4343 = dma.vmem_to_hbm [thread:$0]  %s4341_s16, 32, %s7293_s23, [#allocation3]  }
0x1b41   :  { %6018 = dma.done.wait [#allocation3], 32  }
0x1b42   :  { %6019 = vsyncadd [#allocation3], 4294967264 }
0x1b43   :  { %4347 = vsyncpa [#allocation3], 1 }

</bundles_post_ra>
